<compile_context>
chip_gen: v7x
topology: tpu7x:2x2x1
jax: 0.10.0
libtpu: 0.0.40
codegen_flags: <defaults>
</compile_context>

<pallas_src>
import functools

import jax
import jax.numpy as jnp
from jax import lax
from jax.experimental import pallas as pl
from jax.experimental.pallas import tpu as pltpu


def _pick_tile_rows(h, target):
    """Largest divisor of h that is <= target (always >= 1)."""
    t = max(1, min(target, h))
    while h % t:
        t -= 1
    return t


def _fused_samus_kernel(
    img_ref,      # (H+2, W, C_in)      bf16  per-batch image with +/-1 zero-row halo
    fa_w_ref,     # (C_in, 256)         bf16  feature_adapter 1x1 conv weight
    fa_b_ref,     # (1, 256)            f32
    w1_ref,       # (9, 256, 64)        bf16  seg_head conv1 (ky*3+kx, Cin, Cout)
    bns_ref,      # (1, 64)             f32   folded BN scale
    bnb_ref,      # (1, 64)             f32   folded conv1 bias + BN shift
    w2_ref,       # (64, NC)            bf16  seg_head conv2 1x1
    b2_ref,       # (1, NC)             f32
    cw1_ref,      # (256, 128)          f32   [cls2 | cls4] first Linear
    cb1_ref,      # (1, 128)            f32
    cw2_ref,      # (128, 128)          f32   block-diagonal second Linear (lane-padded)
    cb2_ref,      # (1, 128)            f32
    logits_ref,   # out (TH, W, NC)     f32
    cls_ref,      # out (1, 128)        f32
    pooled_ref,   # scratch (1, 256)    f32   running spatial sum for avg-pool
    acc_ref,      # scratch (TH, W+2, 64) f32 column-padded conv accumulator
    *, TH, H, W, C_feat, C_mid, NC):
    r = pl.program_id(1)
    n_r = pl.num_programs(1)
    rows = TH + 2

    @pl.when(r == 0)
    def _():
        pooled_ref[...] = jnp.zeros_like(pooled_ref)
        acc_ref[...] = jnp.zeros_like(acc_ref)

    # ---- feature_adapter: 1x1 conv (C_in -> 256) on the haloed row window ----------
    img_rows = img_ref[pl.ds(r * TH, rows)]                      # (rows, W, C_in) bf16
    c_in = img_rows.shape[-1]
    feat = jnp.dot(img_rows.reshape(rows * W, c_in), fa_w_ref[...],
                   preferred_element_type=jnp.float32)
    feat = (feat + fa_b_ref[...]).reshape(rows, W, C_feat)
    # zero feature rows that fall outside the image (conv zero-padding semantics)
    gy = (r * TH - 1) + lax.broadcasted_iota(jnp.int32, (rows, 1, 1), 0)
    feat = jnp.where((gy >= 0) & (gy < H), feat, 0.0)            # (rows, W, 256) f32

    # ---- classifier AdaptiveAvgPool2d(1): accumulate the spatial sum on the fly ----
    pooled_ref[...] += jnp.sum(feat[1:TH + 1].reshape(TH * W, C_feat),
                               axis=0, keepdims=True)

    # ---- seg_head conv1 3x3 (pad=1) + folded BatchNorm + ReLU -----------------------
    # out[y, x] = sum_{ky,kx} feat[y+ky, x+kx-1] @ w1[ky, kx]  (zero outside columns).
    # Column shifts are handled on the small 64-ch contributions via a (W+2)-wide
    # padded accumulator; row shifts are free slices of the haloed feature tile.
    featb = feat.astype(jnp.bfloat16)
    flat = [featb[ky:ky + TH].reshape(TH * W, C_feat) for ky in range(3)]
    for kx in (1, 0, 2):                       # centre tap first: plain store, no re-zero
        s = jnp.dot(flat[0], w1_ref[kx], preferred_element_type=jnp.float32)
        s += jnp.dot(flat[1], w1_ref[3 + kx], preferred_element_type=jnp.float32)
        s += jnp.dot(flat[2], w1_ref[6 + kx], preferred_element_type=jnp.float32)
        s = s.reshape(TH, W, C_mid)
        off = 2 - kx
        if kx == 1:
            acc_ref[:, off:off + W, :] = s
        else:
            acc_ref[:, off:off + W, :] += s

    h = acc_ref[:, 1:W + 1, :] * bns_ref[...] + bnb_ref[...]     # BN(eval) folded
    h = jnp.maximum(h, 0.0)                                      # ReLU

    # ---- seg_head conv2 1x1 (64 -> NC), fused (h never leaves VMEM) ----------------
    logits = jnp.dot(h.astype(jnp.bfloat16).reshape(TH * W, C_mid), w2_ref[...],
                     preferred_element_type=jnp.float32) + b2_ref[...]
    logits_ref[...] = logits.reshape(TH, W, NC)

    # ---- classifier_2_way / classifier_4_way on the finished pooled average --------
    @pl.when(r == n_r - 1)
    def _():
        pooled = pooled_ref[...] * (1.0 / (H * W))               # (1, 256)
        hid = jnp.dot(pooled, cw1_ref[...], preferred_element_type=jnp.float32)
        hid = jnp.maximum(hid + cb1_ref[...], 0.0)               # [hid_2way | hid_4way]
        # Dropout(0.2) -> identity in eval mode.
        cls = jnp.dot(hid, cw2_ref[...],
                      preferred_element_type=jnp.float32) + cb2_ref[...]
        cls_ref[...] = cls                                       # (1, 128)


def samus_adapter_forward(x_nchw, params, num_classes, *, tile_rows=16,
                          vmem_limit_bytes=48 * 1024 * 1024):
    B, C_in, H, W = x_nchw.shape
    C_feat = params["fa_w"].shape[1]             # 256
    C_mid = params["conv2_w"].shape[0]           # 64
    NC = num_classes
    TH = _pick_tile_rows(H, tile_rows)
    n_r = H // TH

    # preprocess_input(): channel-repeat / bilinear resize are identity at these shapes.
    # TODO(synk): SAMUS ViT-B backbone stand-in (see module header).
    img = jnp.transpose(x_nchw, (0, 2, 3, 1))                    # NHWC
    img_p = jnp.pad(img, ((0, 0), (1, 1), (0, 0), (0, 0))).astype(jnp.bfloat16)

    # Fold BatchNorm2d (eval) and the conv1 bias into a per-channel scale/shift.
    bn_scale = params["bn_gamma"] / jnp.sqrt(params["bn_var"] + 1e-5)
    bn_shift = (params["conv1_b"] - params["bn_mean"]) * bn_scale + params["bn_beta"]

    # conv1 weight stored as (ky, kx, Cin, Cout).
    # NOTE: a real PyTorch OIHW checkpoint needs w.transpose(2, 3, 1, 0) first.
    w1 = params["conv1_w"].reshape(9, C_feat, C_mid).astype(jnp.bfloat16)

    # Pack the two independent classifier heads into one lane-dense 128-wide MLP:
    # hidden = [hid_2way | hid_4way]; second layer is block-diagonal, output lanes
    # [0:n2) hold the 2-way logits and [n2:n2+n4) the 4-way logits.
    h2 = params["cls2_w1"].shape[1]
    h4 = params["cls4_w1"].shape[1]
    n2 = params["cls2_w2"].shape[1]
    n4 = params["cls4_w2"].shape[1]
    cw1 = jnp.concatenate([params["cls2_w1"], params["cls4_w1"]], axis=1)
    cb1 = jnp.concatenate([params["cls2_b1"], params["cls4_b1"]]).reshape(1, h2 + h4)
    cw2 = jnp.zeros((h2 + h4, 128), jnp.float32)
    cw2 = cw2.at[:h2, :n2].set(params["cls2_w2"])
    cw2 = cw2.at[h2:, n2:n2 + n4].set(params["cls4_w2"])
    cb2 = jnp.zeros((1, 128), jnp.float32)
    cb2 = cb2.at[0, :n2].set(params["cls2_b2"])
    cb2 = cb2.at[0, n2:n2 + n4].set(params["cls4_b2"])

    kernel = functools.partial(_fused_samus_kernel, TH=TH, H=H, W=W,
                               C_feat=C_feat, C_mid=C_mid, NC=NC)

    def _full(shape):
        nd = len(shape)
        return pl.BlockSpec(shape, lambda b, r, _n=nd: (0,) * _n)

    logits_nhwc, cls_pad = pl.pallas_call(
        kernel,
        out_shape=(jax.ShapeDtypeStruct((B, H, W, NC), jnp.float32),
                   jax.ShapeDtypeStruct((B, 1, 128), jnp.float32)),
        grid=(B, n_r),
        in_specs=[
            pl.BlockSpec((None, H + 2, W, C_in), lambda b, r: (b, 0, 0, 0)),
            _full((C_in, C_feat)),
            _full((1, C_feat)),
            _full((9, C_feat, C_mid)),
            _full((1, C_mid)),
            _full((1, C_mid)),
            _full((C_mid, NC)),
            _full((1, NC)),
            _full((C_feat, h2 + h4)),
            _full((1, h2 + h4)),
            _full((h2 + h4, 128)),
            _full((1, 128)),
        ],
        out_specs=(
            pl.BlockSpec((None, TH, W, NC), lambda b, r: (b, r, 0, 0)),
            pl.BlockSpec((None, 1, 128), lambda b, r: (b, 0, 0)),
        ),
        scratch_shapes=[
            pltpu.VMEM((1, C_feat), jnp.float32),
            pltpu.VMEM((TH, W + 2, C_mid), jnp.float32),
        ],
        compiler_params=pltpu.CompilerParams(
            dimension_semantics=("parallel", "arbitrary"),
            vmem_limit_bytes=vmem_limit_bytes,
        ),
    )(
        img_p,
        params["fa_w"].astype(jnp.bfloat16),
        params["fa_b"].reshape(1, C_feat).astype(jnp.float32),
        w1,
        bn_scale.reshape(1, C_mid).astype(jnp.float32),
        bn_shift.reshape(1, C_mid).astype(jnp.float32),
        params["conv2_w"].astype(jnp.bfloat16),
        params["conv2_b"].reshape(1, NC).astype(jnp.float32),
        cw1.astype(jnp.float32),
        cb1.astype(jnp.float32),
        cw2,
        cb2,
    )

    seg_logits = jnp.transpose(logits_nhwc, (0, 3, 1, 2))        # back to NCHW
    cls2 = cls_pad[:, 0, :n2]
    cls4 = cls_pad[:, 0, n2:n2 + n4]
    return seg_logits, cls2, cls4


if __name__ == "__main__":
    key = jax.random.PRNGKey(0)
    B, C_IN, H, W = 2, 3, 16, 16            # small spatial stand-in for 224x224
    C_FEAT, C_MID, NUM_CLASSES = 256, 64, 4

    keys = jax.random.split(key, 20)
    f32 = jnp.float32
    params = {
        # feature_adapter Conv2d(3, 256, 1): weight stored as (Cin, Cout)
        "fa_w": 0.05 * jax.random.normal(keys[0], (C_IN, C_FEAT), f32),
        "fa_b": 0.05 * jax.random.normal(keys[1], (C_FEAT,), f32),
        # seg_head Conv2d(256, 64, 3): weight stored as (ky, kx, Cin, Cout)
        "conv1_w": 0.02 * jax.random.normal(keys[2], (3, 3, C_FEAT, C_MID), f32),
        "conv1_b": 0.05 * jax.random.normal(keys[3], (C_MID,), f32),
        "bn_gamma": 1.0 + 0.1 * jax.random.normal(keys[4], (C_MID,), f32),
        "bn_beta": 0.1 * jax.random.normal(keys[5], (C_MID,), f32),
        "bn_mean": 0.1 * jax.random.normal(keys[6], (C_MID,), f32),
        "bn_var": 1.0 + 0.1 * jnp.abs(jax.random.normal(keys[7], (C_MID,), f32)),
        # seg_head Conv2d(64, NUM_CLASSES, 1): weight stored as (Cin, Cout)
        "conv2_w": 0.05 * jax.random.normal(keys[8], (C_MID, NUM_CLASSES), f32),
        "conv2_b": 0.05 * jax.random.normal(keys[9], (NUM_CLASSES,), f32),
        # classifier_2_way: Linear(256,64) + Linear(64,2)
        "cls2_w1": 0.05 * jax.random.normal(keys[10], (C_FEAT, 64), f32),
        "cls2_b1": 0.05 * jax.random.normal(keys[11], (64,), f32),
        "cls2_w2": 0.05 * jax.random.normal(keys[12], (64, 2), f32),
        "cls2_b2": 0.05 * jax.random.normal(keys[13], (2,), f32),
        # classifier_4_way: Linear(256,64) + Linear(64,4)
        "cls4_w1": 0.05 * jax.random.normal(keys[14], (C_FEAT, 64), f32),
        "cls4_b1": 0.05 * jax.random.normal(keys[15], (64,), f32),
        "cls4_w2": 0.05 * jax.random.normal(keys[16], (64, 4), f32),
        "cls4_b2": 0.05 * jax.random.normal(keys[17], (4,), f32),
    }

    x = jax.random.normal(jax.random.PRNGKey(1), (B, C_IN, H, W), f32)  # NCHW

    # tile_rows=8 exercises the multi-tile halo / pooled-accumulation path (grid (2, 2)).
    seg_logits, cls2, cls4 = samus_adapter_forward(x, params, NUM_CLASSES, tile_rows=8)
    jax.block_until_ready((seg_logits, cls2, cls4))
    assert seg_logits.shape == (B, NUM_CLASSES, H, W)
    assert cls2.shape == (B, 2) and cls4.shape == (B, 4)

    # Pure-JAX reference for correctness.
    img = jnp.transpose(x, (0, 2, 3, 1))
    m = B * H * W
    ref_feat = (img.reshape(m, C_IN) @ params["fa_w"] + params["fa_b"]
                ).reshape(B, H, W, C_FEAT)
    xp = jnp.pad(ref_feat, ((0, 0), (1, 1), (1, 1), (0, 0)))
    cols = jnp.concatenate(
        [xp[:, dy:dy + H, dx:dx + W, :] for dy in range(3) for dx in range(3)],
        axis=-1).reshape(m, 9 * C_FEAT)
    bn_scale = params["bn_gamma"] / jnp.sqrt(params["bn_var"] + 1e-5)
    bn_shift = (params["conv1_b"] - params["bn_mean"]) * bn_scale + params["bn_beta"]
    ref_h = jnp.maximum(cols @ params["conv1_w"].reshape(9 * C_FEAT, C_MID)
                        * bn_scale + bn_shift, 0.0)
    ref_seg = jnp.transpose(
        (ref_h @ params["conv2_w"] + params["conv2_b"]).reshape(B, H, W, NUM_CLASSES),
        (0, 3, 1, 2))
    pooled = ref_feat.reshape(B, H * W, C_FEAT).mean(axis=1)
    hid2 = jnp.maximum(pooled @ params["cls2_w1"] + params["cls2_b1"], 0.0)
    ref_cls2 = hid2 @ params["cls2_w2"] + params["cls2_b2"]
    hid4 = jnp.maximum(pooled @ params["cls4_w1"] + params["cls4_b1"], 0.0)
    ref_cls4 = hid4 @ params["cls4_w2"] + params["cls4_b2"]

    assert jnp.allclose(seg_logits, ref_seg, rtol=2e-2, atol=2e-2), \
        float(jnp.max(jnp.abs(seg_logits - ref_seg)))
    assert jnp.allclose(cls2, ref_cls2, rtol=2e-2, atol=2e-2), \
        float(jnp.max(jnp.abs(cls2 - ref_cls2)))
    assert jnp.allclose(cls4, ref_cls4, rtol=2e-2, atol=2e-2), \
        float(jnp.max(jnp.abs(cls4 - ref_cls4)))

    print("KERNEL_OK")
</pallas_src>

<mosaic_0001>
module attributes {stable_mosaic.version = 11 : i64} {
  func.func @_fused_samus_kernel(%arg0: i32, %arg1: i32, %arg2: memref<1x18x16x3xbf16, #tpu.memory_space<vmem>>, %arg3: memref<3x256xbf16, #tpu.memory_space<vmem>>, %arg4: memref<1x256xf32, #tpu.memory_space<vmem>>, %arg5: memref<9x256x64xbf16, #tpu.memory_space<vmem>>, %arg6: memref<1x64xf32, #tpu.memory_space<vmem>>, %arg7: memref<1x64xf32, #tpu.memory_space<vmem>>, %arg8: memref<64x4xbf16, #tpu.memory_space<vmem>>, %arg9: memref<1x4xf32, #tpu.memory_space<vmem>>, %arg10: memref<256x128xf32, #tpu.memory_space<vmem>>, %arg11: memref<1x128xf32, #tpu.memory_space<vmem>>, %arg12: memref<128x128xf32, #tpu.memory_space<vmem>>, %arg13: memref<1x128xf32, #tpu.memory_space<vmem>>, %arg14: memref<1x8x16x4xf32, #tpu.memory_space<vmem>>, %arg15: memref<1x1x128xf32, #tpu.memory_space<vmem>>, %arg16: memref<1x256xf32, #tpu.memory_space<vmem>>, %arg17: memref<8x18x64xf32, #tpu.memory_space<vmem>>) attributes {dimension_semantics = [#tpu.dimension_semantics<parallel>, #tpu.dimension_semantics<arbitrary>], iteration_bounds = array<i64: 2, 2>, scalar_prefetch = 0 : i64, scratch_operands = 2 : i64, tpu.core_type = #tpu.core_type<tc>, window_params = [{transform_indices = @transform_0, window_bounds = array<i64: 1, 18, 16, 3>}, {pipeline_mode = #tpu.pipeline_mode<synchronous>, transform_indices = @transform_1, window_bounds = array<i64: 3, 256>}, {pipeline_mode = #tpu.pipeline_mode<synchronous>, transform_indices = @transform_2, window_bounds = array<i64: 1, 256>}, {pipeline_mode = #tpu.pipeline_mode<synchronous>, transform_indices = @transform_3, window_bounds = array<i64: 9, 256, 64>}, {pipeline_mode = #tpu.pipeline_mode<synchronous>, transform_indices = @transform_4, window_bounds = array<i64: 1, 64>}, {pipeline_mode = #tpu.pipeline_mode<synchronous>, transform_indices = @transform_5, window_bounds = array<i64: 1, 64>}, {pipeline_mode = #tpu.pipeline_mode<synchronous>, transform_indices = @transform_6, window_bounds = array<i64: 64, 4>}, {pipeline_mode = #tpu.pipeline_mode<synchronous>, transform_indices = @transform_7, window_bounds = array<i64: 1, 4>}, {pipeline_mode = #tpu.pipeline_mode<synchronous>, transform_indices = @transform_8, window_bounds = array<i64: 256, 128>}, {pipeline_mode = #tpu.pipeline_mode<synchronous>, transform_indices = @transform_9, window_bounds = array<i64: 1, 128>}, {pipeline_mode = #tpu.pipeline_mode<synchronous>, transform_indices = @transform_10, window_bounds = array<i64: 128, 128>}, {pipeline_mode = #tpu.pipeline_mode<synchronous>, transform_indices = @transform_11, window_bounds = array<i64: 1, 128>}, {transform_indices = @transform_12, window_bounds = array<i64: 1, 8, 16, 4>}, {transform_indices = @transform_13, window_bounds = array<i64: 1, 1, 128>}]} {
    %c0_i32 = arith.constant 0 : i32
    %0 = arith.cmpi eq, %arg1, %c0_i32 : i32
    %1 = arith.extui %0 : i1 to i32
    %c0_i32_0 = arith.constant 0 : i32
    %2 = arith.cmpi ne, %1, %c0_i32_0 : i32
    scf.if %2 {
      %cst_77 = arith.constant 0.000000e+00 : f32
      %110 = vector.broadcast %cst_77 : f32 to vector<1x256xf32>
      %c0_78 = arith.constant 0 : index
      %c0_79 = arith.constant 0 : index
      %111 = vector.load %arg16[%c0_78, %c0_79] : memref<1x256xf32, #tpu.memory_space<vmem>>, vector<1x256xf32>
      tpu.vector_store %arg16[%c0_78, %c0_79], %110 {strides = array<i32>} : memref<1x256xf32, #tpu.memory_space<vmem>>, vector<1x256xf32>,
      %cst_80 = arith.constant 0.000000e+00 : f32
      %112 = vector.broadcast %cst_80 : f32 to vector<8x18x64xf32>
      %c0_81 = arith.constant 0 : index
      %c0_82 = arith.constant 0 : index
      %c0_83 = arith.constant 0 : index
      %113 = vector.load %arg17[%c0_81, %c0_82, %c0_83] : memref<8x18x64xf32, #tpu.memory_space<vmem>>, vector<8x18x64xf32>
      tpu.vector_store %arg17[%c0_81, %c0_82, %c0_83], %112 {strides = array<i32>} : memref<8x18x64xf32, #tpu.memory_space<vmem>>, vector<8x18x64xf32>,
    } else {
    }
    %c8_i32 = arith.constant 8 : i32
    %3 = arith.muli %arg1, %c8_i32 : i32
    %c0 = arith.constant 0 : index
    %4 = arith.index_cast %3 : i32 to index
    %c0_1 = arith.constant 0 : index
    %c0_2 = arith.constant 0 : index
    %5 = vector.load %arg2[%c0, %4, %c0_1, %c0_2] : memref<1x18x16x3xbf16, #tpu.memory_space<vmem>>, vector<1x10x16x3xbf16>
    %6 = vector.shape_cast %5 : vector<1x10x16x3xbf16> to vector<10x16x3xbf16>
    %7 = vector.shape_cast %6 : vector<10x16x3xbf16> to vector<160x3xbf16>
    %c0_3 = arith.constant 0 : index
    %c0_4 = arith.constant 0 : index
    %8 = vector.load %arg3[%c0_3, %c0_4] : memref<3x256xbf16, #tpu.memory_space<vmem>>, vector<3x256xbf16>
    %cst = arith.constant dense<0.000000e+00> : vector<160x256xf32>
    %9 = tpu.matmul %7, %8, %cst {dimension_numbers = #tpu.dot_dimension_numbers<[1], [0], [0], [1], [0, 0, 1, 1], [], []>} : vector<160x3xbf16>, vector<3x256xbf16>, vector<160x256xf32> -> vector<160x256xf32>
    %c0_5 = arith.constant 0 : index
    %c0_6 = arith.constant 0 : index
    %10 = vector.load %arg4[%c0_5, %c0_6] : memref<1x256xf32, #tpu.memory_space<vmem>>, vector<1x256xf32>
    %11 = vector.broadcast %10 : vector<1x256xf32> to vector<160x256xf32>
    %12 = arith.addf %9, %11 : vector<160x256xf32>
    %13 = vector.shape_cast %12 : vector<160x256xf32> to vector<10x16x256xf32>
    %c8_i32_7 = arith.constant 8 : i32
    %14 = arith.muli %arg1, %c8_i32_7 : i32
    %c1_i32 = arith.constant 1 : i32
    %15 = arith.subi %14, %c1_i32 : i32
    %16 = tpu.iota {dimensions = array<i32: 0>} : vector<10x1x1xi32>
    %17 = vector.broadcast %15 : i32 to vector<10x1x1xi32>
    %18 = arith.addi %17, %16 : vector<10x1x1xi32>
    %c0_i32_8 = arith.constant 0 : i32
    %19 = vector.broadcast %c0_i32_8 : i32 to vector<10x1x1xi32>
    %20 = arith.cmpi sge, %18, %19 : vector<10x1x1xi32>
    %c16_i32 = arith.constant 16 : i32
    %21 = vector.broadcast %c16_i32 : i32 to vector<10x1x1xi32>
    %22 = arith.cmpi slt, %18, %21 : vector<10x1x1xi32>
    %23 = arith.andi %20, %22 : vector<10x1x1xi1>
    %cst_9 = arith.constant 0.000000e+00 : f32
    %24 = vector.shape_cast %23 : vector<10x1x1xi1> to vector<10x1x1xi1>
    %25 = vector.broadcast %24 : vector<10x1x1xi1> to vector<10x16x256xi1>
    %26 = vector.broadcast %cst_9 : f32 to vector<10x16x256xf32>
    %27 = arith.select %25, %13, %26 : vector<10x16x256xi1>, vector<10x16x256xf32>
    %c0_10 = arith.constant 0 : index
    %c0_11 = arith.constant 0 : index
    %28 = vector.load %arg16[%c0_10, %c0_11] : memref<1x256xf32, #tpu.memory_space<vmem>>, vector<1x256xf32>
    %29 = vector.extract_strided_slice %27 {offsets = [1, 0, 0], sizes = [8, 16, 256], strides = [1, 1, 1]} : vector<10x16x256xf32> to vector<8x16x256xf32>
    %30 = vector.shape_cast %29 : vector<8x16x256xf32> to vector<128x256xf32>
    %cst_12 = arith.constant dense<0.000000e+00> : vector<256xf32>
    %31 = vector.multi_reduction <add>, %30, %cst_12 [0] : vector<128x256xf32> to vector<256xf32>
    %32 = vector.shape_cast %31 : vector<256xf32> to vector<1x256xf32>
    %33 = arith.addf %28, %32 : vector<1x256xf32>
    %c0_13 = arith.constant 0 : index
    %c0_14 = arith.constant 0 : index
    %34 = vector.load %arg16[%c0_13, %c0_14] : memref<1x256xf32, #tpu.memory_space<vmem>>, vector<1x256xf32>
    tpu.vector_store %arg16[%c0_13, %c0_14], %33 {strides = array<i32>} : memref<1x256xf32, #tpu.memory_space<vmem>>, vector<1x256xf32>,
    %35 = arith.truncf %27 : vector<10x16x256xf32> to vector<10x16x256xbf16>
    %36 = vector.extract_strided_slice %35 {offsets = [0, 0, 0], sizes = [8, 16, 256], strides = [1, 1, 1]} : vector<10x16x256xbf16> to vector<8x16x256xbf16>
    %37 = vector.shape_cast %36 : vector<8x16x256xbf16> to vector<128x256xbf16>
    %38 = vector.extract_strided_slice %35 {offsets = [1, 0, 0], sizes = [8, 16, 256], strides = [1, 1, 1]} : vector<10x16x256xbf16> to vector<8x16x256xbf16>
    %39 = vector.shape_cast %38 : vector<8x16x256xbf16> to vector<128x256xbf16>
    %40 = vector.extract_strided_slice %35 {offsets = [2, 0, 0], sizes = [8, 16, 256], strides = [1, 1, 1]} : vector<10x16x256xbf16> to vector<8x16x256xbf16>
    %41 = vector.shape_cast %40 : vector<8x16x256xbf16> to vector<128x256xbf16>
    %c1 = arith.constant 1 : index
    %c0_15 = arith.constant 0 : index
    %c0_16 = arith.constant 0 : index
    %42 = vector.load %arg5[%c1, %c0_15, %c0_16] : memref<9x256x64xbf16, #tpu.memory_space<vmem>>, vector<1x256x64xbf16>
    %43 = vector.shape_cast %42 : vector<1x256x64xbf16> to vector<256x64xbf16>
    %cst_17 = arith.constant dense<0.000000e+00> : vector<128x64xf32>
    %44 = tpu.matmul %37, %43, %cst_17 {dimension_numbers = #tpu.dot_dimension_numbers<[1], [0], [0], [1], [0, 0, 1, 1], [], []>} : vector<128x256xbf16>, vector<256x64xbf16>, vector<128x64xf32> -> vector<128x64xf32>
    %c4 = arith.constant 4 : index
    %c0_18 = arith.constant 0 : index
    %c0_19 = arith.constant 0 : index
    %45 = vector.load %arg5[%c4, %c0_18, %c0_19] : memref<9x256x64xbf16, #tpu.memory_space<vmem>>, vector<1x256x64xbf16>
    %46 = vector.shape_cast %45 : vector<1x256x64xbf16> to vector<256x64xbf16>
    %cst_20 = arith.constant dense<0.000000e+00> : vector<128x64xf32>
    %47 = tpu.matmul %39, %46, %cst_20 {dimension_numbers = #tpu.dot_dimension_numbers<[1], [0], [0], [1], [0, 0, 1, 1], [], []>} : vector<128x256xbf16>, vector<256x64xbf16>, vector<128x64xf32> -> vector<128x64xf32>
    %48 = arith.addf %44, %47 : vector<128x64xf32>
    %c7 = arith.constant 7 : index
    %c0_21 = arith.constant 0 : index
    %c0_22 = arith.constant 0 : index
    %49 = vector.load %arg5[%c7, %c0_21, %c0_22] : memref<9x256x64xbf16, #tpu.memory_space<vmem>>, vector<1x256x64xbf16>
    %50 = vector.shape_cast %49 : vector<1x256x64xbf16> to vector<256x64xbf16>
    %cst_23 = arith.constant dense<0.000000e+00> : vector<128x64xf32>
    %51 = tpu.matmul %41, %50, %cst_23 {dimension_numbers = #tpu.dot_dimension_numbers<[1], [0], [0], [1], [0, 0, 1, 1], [], []>} : vector<128x256xbf16>, vector<256x64xbf16>, vector<128x64xf32> -> vector<128x64xf32>
    %52 = arith.addf %48, %51 : vector<128x64xf32>
    %53 = vector.shape_cast %52 : vector<128x64xf32> to vector<8x16x64xf32>
    %c0_24 = arith.constant 0 : index
    %c1_25 = arith.constant 1 : index
    %c0_26 = arith.constant 0 : index
    %54 = vector.load %arg17[%c0_24, %c1_25, %c0_26] : memref<8x18x64xf32, #tpu.memory_space<vmem>>, vector<8x16x64xf32>
    tpu.vector_store %arg17[%c0_24, %c1_25, %c0_26], %53 {strides = array<i32>} : memref<8x18x64xf32, #tpu.memory_space<vmem>>, vector<8x16x64xf32>,
    %c0_27 = arith.constant 0 : index
    %c0_28 = arith.constant 0 : index
    %c0_29 = arith.constant 0 : index
    %55 = vector.load %arg5[%c0_27, %c0_28, %c0_29] : memref<9x256x64xbf16, #tpu.memory_space<vmem>>, vector<1x256x64xbf16>
    %56 = vector.shape_cast %55 : vector<1x256x64xbf16> to vector<256x64xbf16>
    %cst_30 = arith.constant dense<0.000000e+00> : vector<128x64xf32>
    %57 = tpu.matmul %37, %56, %cst_30 {dimension_numbers = #tpu.dot_dimension_numbers<[1], [0], [0], [1], [0, 0, 1, 1], [], []>} : vector<128x256xbf16>, vector<256x64xbf16>, vector<128x64xf32> -> vector<128x64xf32>
    %c3 = arith.constant 3 : index
    %c0_31 = arith.constant 0 : index
    %c0_32 = arith.constant 0 : index
    %58 = vector.load %arg5[%c3, %c0_31, %c0_32] : memref<9x256x64xbf16, #tpu.memory_space<vmem>>, vector<1x256x64xbf16>
    %59 = vector.shape_cast %58 : vector<1x256x64xbf16> to vector<256x64xbf16>
    %cst_33 = arith.constant dense<0.000000e+00> : vector<128x64xf32>
    %60 = tpu.matmul %39, %59, %cst_33 {dimension_numbers = #tpu.dot_dimension_numbers<[1], [0], [0], [1], [0, 0, 1, 1], [], []>} : vector<128x256xbf16>, vector<256x64xbf16>, vector<128x64xf32> -> vector<128x64xf32>
    %61 = arith.addf %57, %60 : vector<128x64xf32>
    %c6 = arith.constant 6 : index
    %c0_34 = arith.constant 0 : index
    %c0_35 = arith.constant 0 : index
    %62 = vector.load %arg5[%c6, %c0_34, %c0_35] : memref<9x256x64xbf16, #tpu.memory_space<vmem>>, vector<1x256x64xbf16>
    %63 = vector.shape_cast %62 : vector<1x256x64xbf16> to vector<256x64xbf16>
    %cst_36 = arith.constant dense<0.000000e+00> : vector<128x64xf32>
    %64 = tpu.matmul %41, %63, %cst_36 {dimension_numbers = #tpu.dot_dimension_numbers<[1], [0], [0], [1], [0, 0, 1, 1], [], []>} : vector<128x256xbf16>, vector<256x64xbf16>, vector<128x64xf32> -> vector<128x64xf32>
    %65 = arith.addf %61, %64 : vector<128x64xf32>
    %66 = vector.shape_cast %65 : vector<128x64xf32> to vector<8x16x64xf32>
    %c0_37 = arith.constant 0 : index
    %c2 = arith.constant 2 : index
    %c0_38 = arith.constant 0 : index
    %67 = vector.load %arg17[%c0_37, %c2, %c0_38] : memref<8x18x64xf32, #tpu.memory_space<vmem>>, vector<8x16x64xf32>
    %68 = arith.addf %67, %66 : vector<8x16x64xf32>
    %c0_39 = arith.constant 0 : index
    %c2_40 = arith.constant 2 : index
    %c0_41 = arith.constant 0 : index
    %69 = vector.load %arg17[%c0_39, %c2_40, %c0_41] : memref<8x18x64xf32, #tpu.memory_space<vmem>>, vector<8x16x64xf32>
    tpu.vector_store %arg17[%c0_39, %c2_40, %c0_41], %68 {strides = array<i32>} : memref<8x18x64xf32, #tpu.memory_space<vmem>>, vector<8x16x64xf32>,
    %c2_42 = arith.constant 2 : index
    %c0_43 = arith.constant 0 : index
    %c0_44 = arith.constant 0 : index
    %70 = vector.load %arg5[%c2_42, %c0_43, %c0_44] : memref<9x256x64xbf16, #tpu.memory_space<vmem>>, vector<1x256x64xbf16>
    %71 = vector.shape_cast %70 : vector<1x256x64xbf16> to vector<256x64xbf16>
    %cst_45 = arith.constant dense<0.000000e+00> : vector<128x64xf32>
    %72 = tpu.matmul %37, %71, %cst_45 {dimension_numbers = #tpu.dot_dimension_numbers<[1], [0], [0], [1], [0, 0, 1, 1], [], []>} : vector<128x256xbf16>, vector<256x64xbf16>, vector<128x64xf32> -> vector<128x64xf32>
    %c5 = arith.constant 5 : index
    %c0_46 = arith.constant 0 : index
    %c0_47 = arith.constant 0 : index
    %73 = vector.load %arg5[%c5, %c0_46, %c0_47] : memref<9x256x64xbf16, #tpu.memory_space<vmem>>, vector<1x256x64xbf16>
    %74 = vector.shape_cast %73 : vector<1x256x64xbf16> to vector<256x64xbf16>
    %cst_48 = arith.constant dense<0.000000e+00> : vector<128x64xf32>
    %75 = tpu.matmul %39, %74, %cst_48 {dimension_numbers = #tpu.dot_dimension_numbers<[1], [0], [0], [1], [0, 0, 1, 1], [], []>} : vector<128x256xbf16>, vector<256x64xbf16>, vector<128x64xf32> -> vector<128x64xf32>
    %76 = arith.addf %72, %75 : vector<128x64xf32>
    %c8 = arith.constant 8 : index
    %c0_49 = arith.constant 0 : index
    %c0_50 = arith.constant 0 : index
    %77 = vector.load %arg5[%c8, %c0_49, %c0_50] : memref<9x256x64xbf16, #tpu.memory_space<vmem>>, vector<1x256x64xbf16>
    %78 = vector.shape_cast %77 : vector<1x256x64xbf16> to vector<256x64xbf16>
    %cst_51 = arith.constant dense<0.000000e+00> : vector<128x64xf32>
    %79 = tpu.matmul %41, %78, %cst_51 {dimension_numbers = #tpu.dot_dimension_numbers<[1], [0], [0], [1], [0, 0, 1, 1], [], []>} : vector<128x256xbf16>, vector<256x64xbf16>, vector<128x64xf32> -> vector<128x64xf32>
    %80 = arith.addf %76, %79 : vector<128x64xf32>
    %81 = vector.shape_cast %80 : vector<128x64xf32> to vector<8x16x64xf32>
    %c0_52 = arith.constant 0 : index
    %c0_53 = arith.constant 0 : index
    %c0_54 = arith.constant 0 : index
    %82 = vector.load %arg17[%c0_52, %c0_53, %c0_54] : memref<8x18x64xf32, #tpu.memory_space<vmem>>, vector<8x16x64xf32>
    %83 = arith.addf %82, %81 : vector<8x16x64xf32>
    %c0_55 = arith.constant 0 : index
    %c0_56 = arith.constant 0 : index
    %c0_57 = arith.constant 0 : index
    %84 = vector.load %arg17[%c0_55, %c0_56, %c0_57] : memref<8x18x64xf32, #tpu.memory_space<vmem>>, vector<8x16x64xf32>
    tpu.vector_store %arg17[%c0_55, %c0_56, %c0_57], %83 {strides = array<i32>} : memref<8x18x64xf32, #tpu.memory_space<vmem>>, vector<8x16x64xf32>,
    %c0_58 = arith.constant 0 : index
    %c1_59 = arith.constant 1 : index
    %c0_60 = arith.constant 0 : index
    %85 = vector.load %arg17[%c0_58, %c1_59, %c0_60] : memref<8x18x64xf32, #tpu.memory_space<vmem>>, vector<8x16x64xf32>
    %c0_61 = arith.constant 0 : index
    %c0_62 = arith.constant 0 : index
    %86 = vector.load %arg6[%c0_61, %c0_62] : memref<1x64xf32, #tpu.memory_space<vmem>>, vector<1x64xf32>
    %87 = vector.shape_cast %86 : vector<1x64xf32> to vector<1x1x64xf32>
    %88 = vector.broadcast %87 : vector<1x1x64xf32> to vector<8x16x64xf32>
    %89 = arith.mulf %85, %88 : vector<8x16x64xf32>
    %c0_63 = arith.constant 0 : index
    %c0_64 = arith.constant 0 : index
    %90 = vector.load %arg7[%c0_63, %c0_64] : memref<1x64xf32, #tpu.memory_space<vmem>>, vector<1x64xf32>
    %91 = vector.shape_cast %90 : vector<1x64xf32> to vector<1x1x64xf32>
    %92 = vector.broadcast %91 : vector<1x1x64xf32> to vector<8x16x64xf32>
    %93 = arith.addf %89, %92 : vector<8x16x64xf32>
    %cst_65 = arith.constant 0.000000e+00 : f32
    %94 = vector.broadcast %cst_65 : f32 to vector<8x16x64xf32>
    %95 = arith.maximumf %93, %94 : vector<8x16x64xf32>
    %96 = arith.truncf %95 : vector<8x16x64xf32> to vector<8x16x64xbf16>
    %97 = vector.shape_cast %96 : vector<8x16x64xbf16> to vector<128x64xbf16>
    %c0_66 = arith.constant 0 : index
    %c0_67 = arith.constant 0 : index
    %98 = vector.load %arg8[%c0_66, %c0_67] : memref<64x4xbf16, #tpu.memory_space<vmem>>, vector<64x4xbf16>
    %cst_68 = arith.constant dense<0.000000e+00> : vector<128x4xf32>
    %99 = tpu.matmul %97, %98, %cst_68 {dimension_numbers = #tpu.dot_dimension_numbers<[1], [0], [0], [1], [0, 0, 1, 1], [], []>} : vector<128x64xbf16>, vector<64x4xbf16>, vector<128x4xf32> -> vector<128x4xf32>
    %c0_69 = arith.constant 0 : index
    %c0_70 = arith.constant 0 : index
    %100 = vector.load %arg9[%c0_69, %c0_70] : memref<1x4xf32, #tpu.memory_space<vmem>>, vector<1x4xf32>
    %101 = vector.broadcast %100 : vector<1x4xf32> to vector<128x4xf32>
    %102 = arith.addf %99, %101 : vector<128x4xf32>
    %103 = vector.shape_cast %102 : vector<128x4xf32> to vector<8x16x4xf32>
    %c0_71 = arith.constant 0 : index
    %c0_72 = arith.constant 0 : index
    %c0_73 = arith.constant 0 : index
    %c0_74 = arith.constant 0 : index
    %104 = vector.load %arg14[%c0_71, %c0_72, %c0_73, %c0_74] : memref<1x8x16x4xf32, #tpu.memory_space<vmem>>, vector<1x8x16x4xf32>
    %105 = vector.shape_cast %104 : vector<1x8x16x4xf32> to vector<8x16x4xf32>
    %106 = vector.shape_cast %103 : vector<8x16x4xf32> to vector<1x8x16x4xf32>
    tpu.vector_store %arg14[%c0_71, %c0_72, %c0_73, %c0_74], %106 {strides = array<i32>} : memref<1x8x16x4xf32, #tpu.memory_space<vmem>>, vector<1x8x16x4xf32>,
    %c1_i32_75 = arith.constant 1 : i32
    %107 = arith.cmpi eq, %arg1, %c1_i32_75 : i32
    %108 = arith.extui %107 : i1 to i32
    %c0_i32_76 = arith.constant 0 : i32
    %109 = arith.cmpi ne, %108, %c0_i32_76 : i32
    scf.if %109 {
      %c0_77 = arith.constant 0 : index
      %c0_78 = arith.constant 0 : index
      %110 = vector.load %arg16[%c0_77, %c0_78] : memref<1x256xf32, #tpu.memory_space<vmem>>, vector<1x256xf32>
      %cst_79 = arith.constant 3.906250e-03 : f32
      %111 = vector.broadcast %cst_79 : f32 to vector<1x256xf32>
      %112 = arith.mulf %110, %111 : vector<1x256xf32>
      %c0_80 = arith.constant 0 : index
      %c0_81 = arith.constant 0 : index
      %113 = vector.load %arg10[%c0_80, %c0_81] : memref<256x128xf32, #tpu.memory_space<vmem>>, vector<256x128xf32>
      %cst_82 = arith.constant dense<0.000000e+00> : vector<1x128xf32>
      %114 = tpu.matmul %112, %113, %cst_82 {dimension_numbers = #tpu.dot_dimension_numbers<[1], [0], [0], [1], [0, 0, 1, 1], [], []>} : vector<1x256xf32>, vector<256x128xf32>, vector<1x128xf32> -> vector<1x128xf32>
      %c0_83 = arith.constant 0 : index
      %c0_84 = arith.constant 0 : index
      %115 = vector.load %arg11[%c0_83, %c0_84] : memref<1x128xf32, #tpu.memory_space<vmem>>, vector<1x128xf32>
      %116 = arith.addf %114, %115 : vector<1x128xf32>
      %cst_85 = arith.constant 0.000000e+00 : f32
      %117 = vector.broadcast %cst_85 : f32 to vector<1x128xf32>
      %118 = arith.maximumf %116, %117 : vector<1x128xf32>
      %c0_86 = arith.constant 0 : index
      %c0_87 = arith.constant 0 : index
      %119 = vector.load %arg12[%c0_86, %c0_87] : memref<128x128xf32, #tpu.memory_space<vmem>>, vector<128x128xf32>
      %cst_88 = arith.constant dense<0.000000e+00> : vector<1x128xf32>
      %120 = tpu.matmul %118, %119, %cst_88 {dimension_numbers = #tpu.dot_dimension_numbers<[1], [0], [0], [1], [0, 0, 1, 1], [], []>} : vector<1x128xf32>, vector<128x128xf32>, vector<1x128xf32> -> vector<1x128xf32>
      %c0_89 = arith.constant 0 : index
      %c0_90 = arith.constant 0 : index
      %121 = vector.load %arg13[%c0_89, %c0_90] : memref<1x128xf32, #tpu.memory_space<vmem>>, vector<1x128xf32>
      %122 = arith.addf %120, %121 : vector<1x128xf32>
      %c0_91 = arith.constant 0 : index
      %c0_92 = arith.constant 0 : index
      %c0_93 = arith.constant 0 : index
      %123 = vector.load %arg15[%c0_91, %c0_92, %c0_93] : memref<1x1x128xf32, #tpu.memory_space<vmem>>, vector<1x1x128xf32>
      %124 = vector.shape_cast %123 : vector<1x1x128xf32> to vector<1x128xf32>
      %125 = vector.shape_cast %122 : vector<1x128xf32> to vector<1x1x128xf32>
      tpu.vector_store %arg15[%c0_91, %c0_92, %c0_93], %125 {strides = array<i32>} : memref<1x1x128xf32, #tpu.memory_space<vmem>>, vector<1x1x128xf32>,
    } else {
    }
    return
  }
  func.func @transform_0(%arg0: i32, %arg1: i32) -> (i32, i32, i32, i32) {
    %c0_i32 = arith.constant 0 : i32
    %c0_i32_0 = arith.constant 0 : i32
    %c0_i32_1 = arith.constant 0 : i32
    %c0_i32_2 = arith.constant 0 : i32
    return %arg0, %c0_i32, %c0_i32_0, %c0_i32_1 : i32, i32, i32, i32
  }
  func.func @transform_1(%arg0: i32, %arg1: i32) -> (i32, i32) {
    %c0_i32 = arith.constant 0 : i32
    %c0_i32_0 = arith.constant 0 : i32
    %c0_i32_1 = arith.constant 0 : i32
    return %c0_i32, %c0_i32_0 : i32, i32
  }
  func.func @transform_2(%arg0: i32, %arg1: i32) -> (i32, i32) {
    %c0_i32 = arith.constant 0 : i32
    %c0_i32_0 = arith.constant 0 : i32
    %c0_i32_1 = arith.constant 0 : i32
    return %c0_i32, %c0_i32_0 : i32, i32
  }
  func.func @transform_3(%arg0: i32, %arg1: i32) -> (i32, i32, i32) {
    %c0_i32 = arith.constant 0 : i32
    %c0_i32_0 = arith.constant 0 : i32
    %c0_i32_1 = arith.constant 0 : i32
    %c0_i32_2 = arith.constant 0 : i32
    return %c0_i32, %c0_i32_0, %c0_i32_1 : i32, i32, i32
  }
  func.func @transform_4(%arg0: i32, %arg1: i32) -> (i32, i32) {
    %c0_i32 = arith.constant 0 : i32
    %c0_i32_0 = arith.constant 0 : i32
    %c0_i32_1 = arith.constant 0 : i32
    return %c0_i32, %c0_i32_0 : i32, i32
  }
  func.func @transform_5(%arg0: i32, %arg1: i32) -> (i32, i32) {
    %c0_i32 = arith.constant 0 : i32
    %c0_i32_0 = arith.constant 0 : i32
    %c0_i32_1 = arith.constant 0 : i32
    return %c0_i32, %c0_i32_0 : i32, i32
  }
  func.func @transform_6(%arg0: i32, %arg1: i32) -> (i32, i32) {
    %c0_i32 = arith.constant 0 : i32
    %c0_i32_0 = arith.constant 0 : i32
    %c0_i32_1 = arith.constant 0 : i32
    return %c0_i32, %c0_i32_0 : i32, i32
  }
  func.func @transform_7(%arg0: i32, %arg1: i32) -> (i32, i32) {
    %c0_i32 = arith.constant 0 : i32
    %c0_i32_0 = arith.constant 0 : i32
    %c0_i32_1 = arith.constant 0 : i32
    return %c0_i32, %c0_i32_0 : i32, i32
  }
  func.func @transform_8(%arg0: i32, %arg1: i32) -> (i32, i32) {
    %c0_i32 = arith.constant 0 : i32
    %c0_i32_0 = arith.constant 0 : i32
    %c0_i32_1 = arith.constant 0 : i32
    return %c0_i32, %c0_i32_0 : i32, i32
  }
  func.func @transform_9(%arg0: i32, %arg1: i32) -> (i32, i32) {
    %c0_i32 = arith.constant 0 : i32
    %c0_i32_0 = arith.constant 0 : i32
    %c0_i32_1 = arith.constant 0 : i32
    return %c0_i32, %c0_i32_0 : i32, i32
  }
  func.func @transform_10(%arg0: i32, %arg1: i32) -> (i32, i32) {
    %c0_i32 = arith.constant 0 : i32
    %c0_i32_0 = arith.constant 0 : i32
    %c0_i32_1 = arith.constant 0 : i32
    return %c0_i32, %c0_i32_0 : i32, i32
  }
  func.func @transform_11(%arg0: i32, %arg1: i32) -> (i32, i32) {
    %c0_i32 = arith.constant 0 : i32
    %c0_i32_0 = arith.constant 0 : i32
    %c0_i32_1 = arith.constant 0 : i32
    return %c0_i32, %c0_i32_0 : i32, i32
  }
  func.func @transform_12(%arg0: i32, %arg1: i32) -> (i32, i32, i32, i32) {
    %c0_i32 = arith.constant 0 : i32
    %c0_i32_0 = arith.constant 0 : i32
    %c0_i32_1 = arith.constant 0 : i32
    return %arg0, %arg1, %c0_i32, %c0_i32_0 : i32, i32, i32, i32
  }
  func.func @transform_13(%arg0: i32, %arg1: i32) -> (i32, i32, i32) {
    %c0_i32 = arith.constant 0 : i32
    %c0_i32_0 = arith.constant 0 : i32
    %c0_i32_1 = arith.constant 0 : i32
    return %arg0, %c0_i32, %c0_i32_0 : i32, i32, i32
  }
}

</mosaic_0001>

<bundles_post_ra>
// kernel: tpu_custom_call.1
= control target key start
LH: loop header
LB: loop body
LE: loop exit
PB: predicated region body
PF: predicated region fallthrough
CT: control target
= control target key end

     0   :  { %s7640_s0 = inlined_call_operand.vmem [shape: bf16[2,18,16,3], index: 0, kind: input, shape index: {}]   ;;  %s7641_s1 = inlined_call_operand.vmem [shape: bf16[3,256], index: 1, kind: input, shape index: {}]   ;;  %s7642_s2 = inlined_call_operand.vmem [shape: f32[1,256], index: 2, kind: input, shape index: {}]   ;;  %s7643_s3 = inlined_call_operand.vmem [shape: bf16[9,256,64], index: 3, kind: input, shape index: {}]   ;;  %s7644_s4 = inlined_call_operand.vmem [shape: f32[1,64], index: 4, kind: input, shape index: {}]   ;;  %s7645_s5 = inlined_call_operand.vmem [shape: f32[1,64], index: 5, kind: input, shape index: {}]   ;;  %s7646_s6 = inlined_call_operand.vmem [shape: bf16[64,4], index: 6, kind: input, shape index: {}]   ;;  %s7647_s7 = inlined_call_operand.vmem [shape: f32[1,4], index: 7, kind: input, shape index: {}]   ;;  %s7648_s8 = inlined_call_operand.vmem [shape: f32[256,128], index: 8, kind: input, shape index: {}]   ;;  %s7649_s9 = inlined_call_operand.vmem [shape: f32[1,128], index: 9, kind: input, shape index: {}]   ;;  %s7650_s10 = inlined_call_operand.vmem [shape: f32[128,128], index: 10, kind: input, shape index: {}]   ;;  %s7651_s11 = inlined_call_operand.vmem [shape: f32[1,128], index: 11, kind: input, shape index: {}]   ;;  %s7652_s12 = inlined_call_operand.vmem [shape: f32[2,16,16,4], index: 12, kind: output, shape index: {0}]   ;;  %s7653_s13 = inlined_call_operand.hbm [shape: f32[2,1,128], index: 13, kind: output, shape index: {1}]  }
   0x1   :  { %7665 = sst [smem:[#allocation17_spill]] %s7651_s11 }
   0x2   :  { %7666 = sst [smem:[#allocation18_spill]] %s7653_s13 }
   0x3   :  { %19 = vsyncpa [#allocation5], 0 }
   0x4   :  { %21 = vsyncpa [#allocation5 + $0x1], 0  ;;  %s5836_s25 = smov 0   ;;  %s5838_s26 = smov 0  }
   0x5   :  { %s5840_s27 = smov 0   ;;  %s5842_s28 = smov 0  }
   0x6   :  { %s5844_s29 = smov 0   ;;  %s5846_s30 = smov 0  }
   0x7   :  { %s5848_s14 = smov 0   ;;  %s5850_s15 = smov 0  }
   0x8 LB: > { %7667 = sst [smem:[#allocation7_spill]] %s5728_s25  ;;  %s3773_s16 = sadd.s32 4294967295, %s5756_s15   ;;  %s5756_s15 = sphi %s5850_s15, %s27_s15   ;;  %s5752_s14 = sphi %s5848_s14, %s7729_s14   ;;  %s5748_s30 = sphi %s5846_s30, %s7728_s30   ;;  %s5744_s29 = sphi %s5844_s29, %s7727_s29   ;;  %s5740_s28 = sphi %s5842_s28, %s7726_s28   ;;  %s5736_s27 = sphi %s5840_s27, %s7725_s27   ;;  %s5732_s26 = sphi %s5838_s26, %s7731_s26   ;;  %s5728_s25 = sphi %s5836_s25, %s7730_s25  }
   0x9   : > { %7668 = sst [smem:[#allocation8_spill]] %s5736_s27  ;;  %s3774_s17 = sadd.s32 4294967294, %s5756_s15  }
   0xa   : > { %7669 = sst [smem:[#allocation9_spill]] %s5748_s30  ;;  %s36_s18 = sadd.s32 1, %s5748_s30 }
   0xb   : > { %7670 = sst [smem:[#allocation10_spill]] %s5752_s14  ;;  %p37_p0 = scmp.ge.s32.totalorder %s36_s18, 2 }
   0xc   : > { %7671 = sst [smem:[#allocation11_spill]] %s5756_s15  ;;  %s39_s19 = sadd.s32 1, %s5752_s14 }
   0xd   : > { %p341_p1 = scmp.ne.s32.totalorder %s5736_s27, %s5732_s26  ;;  %p342_p2 = scmp.eq.s32.totalorder %s3773_s16, 3 }
   0xe   : > { %s7733_s18 = smov (%p37_p0, %s36_s18), 0  ;;  %s7735_s19 = smov (!%p37_p0, %s39_s19), %s5752_s14 }
   0xf   : > { %7672 = sst [smem:[#allocation12_spill]] %s7733_s18  ;;  %p5885_p3 = por %p342_p2, %p341_p1 }
  0x10   : > { %p347_p4 = scmp.ne.s32.totalorder %s5732_s26, %s5728_s25  ;;  %p41_p5 = scmp.ge.s32.totalorder %s7735_s19, 2 }
  0x11   : > { %s7673_s20 = scalar_select %p5885_p3, 1, 0 }
  0x12   : > { %p348_p6 = scmp.eq.s32.totalorder %s3774_s17, 3  ;;  %p3777_p7 = scmp.ge.s32.totalorder %s5756_s15, 1 }
  0x13   : > { %7674 = sst [smem:[#allocation13_spill]] %s7673_s20  ;;  %p407_p8 = scmp.lt.s32.totalorder %s5756_s15, 5 }
  0x14   : > { %s7737_s19 = smov (%p41_p5, %s7735_s19), 0  ;;  %p5895_p9 = por %p348_p6, %p347_p4 }
  0x15   : > { %7675 = sst [smem:[#allocation14_spill]] %s7737_s19  ;;  %p408_p10 = pnand %p3777_p7, %p407_p8 }
  0x16   : > { %s7676_s21 = scalar_select %p5895_p9, 1, 0 }
  0x17   : > { %s328_s22 = ssub.s32 %s5752_s14, %s7737_s19  ;;  %s331_s23 = sadd.s32 1, %s5736_s27 }
  0x18   : > { %7677 = sst [smem:[#allocation15_spill]] %s7676_s21  ;;  %p329_p11 = scmp.eq.s32.totalorder %s328_s22, 0 }
  0x19   : > { %411 = sbr.rel (%p408_p10) target bundleno = 1522 (0x5f2), region = 68  ;;  %p460_p12 = scmp.lt.s32.totalorder (!%p408_p10), %s5744_s29, 1 }
  0x1a   : > { %s5903_s24 = scalar_select %p329_p11, %s5736_s27, %s331_s23  }
  0x1b   : > { %s5908_s17 = sshll.u32 (!%p408_p10), %s5740_s28, 3  ;;  %s7679_s20 = sand.u32 (!%p408_p10), 1, %s5732_s26  }
  0x1c   : > { %7678 = sst [smem:[#allocation16_spill]] %s5903_s24  ;;  %p468_p13 = scmp.lt.s32.totalorder (!%p408_p10), %s5908_s17, 15 }
  0x1d   : > { %s5925_s11 = scalar_lea.vmem (!%p408_p10), [#allocation4], %s7679_s20  ;;  %p3783_p0 = scmp.ne.s32.totalorder (!%p408_p10), %s5740_s28, 0 }
  0x20   : > { %s461_s18 = scalar_select %p460_p12, %s5744_s29, 1 }
  0x21   : > { %s469_s14 = scalar_select %p468_p13, %s5908_s17, 15 }
  0x22   : > { %s5425_s30 = smul.u32 144, %s461_s18  ;;  %s3781_s19 = sshll.u32 %s461_s18, 5  ;;  %v481_v0 = vlaneseq (!%p3783_p0)  ;;  %vm486_vm0 = vcmask (!%p3783_p0), 523264   ;;  %vm489_vm1 = vcmask (!%p3783_p0), 517120   ;;  %v5758_v1 = vmov (!%p3783_p0), 0.0  }
  0x23   : > { %s3780_s27 = sshll.u32 %s469_s14, 1  ;;  %480 = sbr.rel (%p3783_p0) target bundleno = 48 (0x30), region = 72  ;;  %487 = vst.msk [vmem:[#allocation3] sm:$0xff] (!%p3783_p0), %vm486_vm0, %v5758_v1  ;;  %488 = vst.msk [vmem:[#allocation3 + $0x8] sm:$0xff] (!%p3783_p0), %vm486_vm0, %v5758_v1 }
  0x24   : > { %s5916_s24 = scalar_lea.vmem %s7640_s0, %s5425_s30  ;;  %s472_s21 = sadd.s32 %s3781_s19, %s3780_s27  ;;  %491 = vst.msk [vmem:[#allocation3 + $0x18] sm:$0xff] (!%p3783_p0), %vm486_vm0, %v5758_v1  ;;  %492 = vst.msk [vmem:[#allocation3 + $0x20] sm:$0xff] (!%p3783_p0), %vm486_vm0, %v5758_v1  ;;  %vm483_vm2 = vcmp.lt.s32.totalorder (!%p3783_p0), %v481_v0, 256 }
  0x25   : > { %s3782_s25 = sshll.u32 %s472_s21, 3  ;;  %494 = vst.msk [vmem:[#allocation3 + $0x30] sm:$0xff] (!%p3783_p0), %vm486_vm0, %v5758_v1  ;;  %495 = vst.msk [vmem:[#allocation3 + $0x38] sm:$0xff] (!%p3783_p0), %vm486_vm0, %v5758_v1 }
  0x26   : > { %s5921_s13 = scalar_lea.vmem %s7652_s12, %s3782_s25  ;;  %497 = vst.msk [vmem:[#allocation3 + $0x48] sm:$0xff] (!%p3783_p0), %vm486_vm0, %v5758_v1  ;;  %498 = vst.msk [vmem:[#allocation3 + $0x50] sm:$0xff] (!%p3783_p0), %vm486_vm0, %v5758_v1 }
  0x27   : > { %500 = vst.msk [vmem:[#allocation3 + $0x60] sm:$0xff] (!%p3783_p0), %vm486_vm0, %v5758_v1  ;;  %501 = vst.msk [vmem:[#allocation3 + $0x68] sm:$0xff] (!%p3783_p0), %vm486_vm0, %v5758_v1 }
  0x28   : > { %503 = vst.msk [vmem:[#allocation3 + $0x78] sm:$0xff] (!%p3783_p0), %vm486_vm0, %v5758_v1  ;;  %504 = vst.msk [vmem:[#allocation3 + $0x80] sm:$0xff] (!%p3783_p0), %vm486_vm0, %v5758_v1 }
  0x29   : > { %506 = vst.msk [vmem:[#allocation3 + $0x90] sm:$0xff] (!%p3783_p0), %vm486_vm0, %v5758_v1  ;;  %507 = vst.msk [vmem:[#allocation3 + $0x98] sm:$0xff] (!%p3783_p0), %vm486_vm0, %v5758_v1 }
  0x2a   : > { %509 = vst.msk [vmem:[#allocation3 + $0xa8] sm:$0xff] %vm486_vm0, %v5758_v1  ;;  %510 = vst.msk [vmem:[#allocation3 + $0xb0] sm:$0xff] %vm486_vm0, %v5758_v1 }
  0x2b   : > { %490 = vst.msk [vmem:[#allocation3 + $0x10] sm:$0x3] %vm489_vm1, %v5758_v1  ;;  %493 = vst.msk [vmem:[#allocation3 + $0x28] sm:$0x3] %vm489_vm1, %v5758_v1 }
  0x2c   : > { %496 = vst.msk [vmem:[#allocation3 + $0x40] sm:$0x3] %vm489_vm1, %v5758_v1  ;;  %499 = vst.msk [vmem:[#allocation3 + $0x58] sm:$0x3] %vm489_vm1, %v5758_v1 }
  0x2d   : > { %502 = vst.msk [vmem:[#allocation3 + $0x70] sm:$0x3] %vm489_vm1, %v5758_v1  ;;  %505 = vst.msk [vmem:[#allocation3 + $0x88] sm:$0x3] %vm489_vm1, %v5758_v1 }
  0x2e   : > { %508 = vst.msk [vmem:[#allocation3 + $0xa0] sm:$0x3] %vm489_vm1, %v5758_v1  ;;  %511 = vst.msk [vmem:[#allocation3 + $0xb8] sm:$0x3] %vm489_vm1, %v5758_v1 }
  0x2f   : > { %485 = vst.msk [vmem:[#allocation2] sm:$0x3] %vm483_vm2, %v5758_v1 }
  0x30 PF: > { %v3797_v2 = vld.sshfl [vmem:[%s7641_s1] sm:$0x33 pattern:$0x76325410]  ;;  %vm639_vm3 = vcmask 1040384   ;;  %vm640_vm4 = vcmask 1041408   ;;  %v539_v54 = vlaneseq }
  0x31   : > { %v607_v3 = vcombine.high %v3797_v2, %v3797_v2  ;;  %s4661_s30 = sshll.u32 %s5740_s28, 6  ;;  %v5759_v4 = vmov 65535   ;;  %v5760_v6 = vmov 0   ;;  %v5514_v10 = vld [vmem:[%s7643_s3 + $0xc0] sm:$0xff]   ;;  %vm608_vm5 = vcmask 23552   ;;  %v5516_v14 = vld [vmem:[%s7643_s3 + $0xc8] sm:$0xff]  }
  0x32   : > { %v641_v5 = vsel %vm639_vm3, 4294967295, %v5759_v4  ;;  %681 = vmatprep.mubr.bf16.mxu0 %v5760_v6  ;;  %s5958_s14 = scalar_lea.vmem %s5916_s24, %s4661_s30  ;;  %v5515_v13 = vld [vmem:[%s7643_s3 + $0x80] sm:$0xff]   ;;  %v5517_v15 = vld [vmem:[%s7643_s3 + $0x88] sm:$0xff]   ;;  %v5520_v18 = vld [vmem:[%s7643_s3 + $0xd0] sm:$0xff]   ;;  %v6092_v55 = vshrl.u32 %v539_v54, 7  ;;  %s3808_s16 = sadd.s32 4294967295, %s5908_s17 }
  0x33   : > { %v642_v7 = vsel %vm640_vm4, %v641_v5, 0  ;;  %v5504_v11 = vld [vmem:[%s5958_s14] sm:$0xff]   ;;  %v5505_v12 = vld [vmem:[%s5958_s14 + $0x8] sm:$0xff]   ;;  %v5521_v19 = vld [vmem:[%s7643_s3 + $0x90] sm:$0xff]   ;;  %v6100_v59 = vstv %s3808_s16  ;;  %p4656_p1 = scmp.ne.s32.totalorder %s5740_s28, 1 }
  0x34   : > { %v647_v8 = vand.u32 %v642_v7, %v607_v3  ;;  %v644_v9 = vand.u32 %v3797_v2, %v642_v7  ;;  %v5518_v16 = vld [vmem:[%s7643_s3 + $0x240] sm:$0xff]   ;;  %v5506_v20 = vld [vmem:[%s5958_s14 + $0x10] sm:$0xff]   ;;  %v5522_v21 = vld [vmem:[%s7643_s3 + $0x248] sm:$0xff]   ;;  %v541_v56 = vsub.s32 0, %v6092_v55  ;;  %v545_v58 = vsub.s32 1, %v6092_v55  ;;  %s7716_s17 = sld [smem:[#allocation17_spill]] (!%p4656_p1) }
  0x35   : > { %v5519_v17 = vld [vmem:[%s7643_s3 + $0x200] sm:$0xff]   ;;  %4662 = vmatprep.subr.bf16.mxu1 %v5518_v16  ;;  %v5523_v22 = vld [vmem:[%s7643_s3 + $0x208] sm:$0xff]   ;;  %v5524_v23 = vld [vmem:[%s7643_s3 + $0xd8] sm:$0xff]   ;;  %vm793_vm6 = vcmp.ge.s32.totalorder %v6100_v59, 0  ;;  %vm803_vm7 = vcmp.lt.s32.totalorder %v6100_v59, 16  ;;  %v784_v4 = vadd.s32 1, %v6100_v59 }
  0x36   : > { %649 = vmatprep.subr.bf16.mxu0 %v647_v8  ;;  %4663 = vmatpush3.bf16.msra.mxu1 %v5519_v17  ;;  %v5525_v24 = vld [vmem:[%s7643_s3 + $0x98] sm:$0xff]   ;;  %v5526_v25 = vld [vmem:[%s7643_s3 + $0x250] sm:$0xff]   ;;  %v5528_v27 = vld [vmem:[%s7643_s3 + $0xe0] sm:$0xff]  }
  0x37   : > { %650 = vmatpush1.bf16.msra.mxu0 %v644_v9  ;;  %4664 = vmatprep.subr.bf16.mxu1 %v5522_v21  ;;  %v5527_v26 = vld [vmem:[%s7643_s3 + $0x210] sm:$0xff]   ;;  %v5529_v28 = vld [vmem:[%s7643_s3 + $0xa0] sm:$0xff]   ;;  %v5507_v29 = vld [vmem:[%s5958_s14 + $0x18] sm:$0xff]   ;;  %vm794_vm10 = vcmp.ge.s32.totalorder %v784_v4, 0  ;;  %vm804_vm11 = vcmp.lt.s32.totalorder %v784_v4, 16 }
  0x38   : > { %4726 = vmatprep.subr.bf16.mxu0 %v5514_v10  ;;  %v5530_v30 = vld [vmem:[%s7643_s3 + $0x258] sm:$0xff]   ;;  %v5532_v32 = vld [vmem:[%s7643_s3 + $0xe8] sm:$0xff]   ;;  %v5508_v34 = vld [vmem:[%s5958_s14 + $0x20] sm:$0xff]  }
  0x39   : > { %v5531_v31 = vld [vmem:[%s7643_s3 + $0x218] sm:$0xff]   ;;  %v5533_v33 = vld [vmem:[%s7643_s3 + $0xa8] sm:$0xff]   ;;  %v5510_v36 = vld [vmem:[%s5958_s14 + $0x30] sm:$0xff]  }
  0x3a   : > { %3798 = vmatmul.mubr.msk.bf16.vlgmr.msra.gmra.mrb[0].mxu0 %vm608_vm5, %v5504_v11  ;;  %4665 = vmatpush3.bf16.msra.mxu1 %v5523_v22  ;;  %v5509_v35 = vld [vmem:[%s5958_s14 + $0x28] sm:$0xff]   ;;  %v5511_v37 = vld [vmem:[%s5958_s14 + $0x38] sm:$0xff]   ;;  %v5512_v38 = vld [vmem:[%s5958_s14 + $0x40] sm:$0xff]  }
  0x3b   : > { %691 = vmatprep.mubr.bf16.mxu0 %v5760_v6  ;;  %4727 = vmatpush3.bf16.msra.mxu0 %v5515_v13  ;;  %v5513_v39 = vld [vmem:[%s5958_s14 + $0x48] sm:$0xff]   ;;  %v5534_v40 = vld [vmem:[%s7643_s3 + $0x260] sm:$0xff]   ;;  %v5536_v41 = vld [vmem:[%s7643_s3 + $0xf0] sm:$0xff]   ;;  %v785_v13 = vadd.s32 2, %v6100_v59 }
  0x3c   : > { %4728 = vmatprep.subr.bf16.mxu0 %v5516_v14  ;;  %4666 = vmatprep.subr.bf16.mxu1 %v5526_v25  ;;  %v5535_v42 = vld [vmem:[%s7643_s3 + $0x220] sm:$0xff]   ;;  %v5537_v43 = vld [vmem:[%s7643_s3 + $0xb0] sm:$0xff]   ;;  %v5538_v44 = vld [vmem:[%s7643_s3 + $0x268] sm:$0xff]  }
  0x3d   : > { %v5540_v45 = vld [vmem:[%s7643_s3 + $0xf8] sm:$0xff]   ;;  %v5539_v46 = vld [vmem:[%s7643_s3 + $0x228] sm:$0xff]   ;;  %v5542_v48 = vld [vmem:[%s7643_s3 + $0x270] sm:$0xff]   ;;  %vm795_vm13 = vcmp.ge.s32.totalorder %v785_v13, 0  ;;  %vm805_vm15 = vcmp.lt.s32.totalorder %v785_v13, 16 }
  0x3e   : > { %4667 = vmatpush3.bf16.msra.mxu1 %v5527_v26  ;;  %v5541_v47 = vld [vmem:[%s7643_s3 + $0xb8] sm:$0xff]   ;;  %v5543_v49 = vld [vmem:[%s7643_s3 + $0x230] sm:$0xff]   ;;  %v5546_v52 = vld [vmem:[%s7643_s3 + $0x3c0] sm:$0xff]  }
  0x3f   : > { %4729 = vmatpush3.bf16.msra.mxu0 %v5517_v15  ;;  %4668 = vmatprep.subr.bf16.mxu1 %v5530_v30  ;;  %v5544_v50 = vld [vmem:[%s7643_s3 + $0x278] sm:$0xff]   ;;  %v5554_v53 = vld [vmem:[%s7643_s3 + $0x1c0] sm:$0xff]   ;;  %vm813_vm8 = vmand %vm793_vm6, %vm803_vm7 }
  0x40   : > { %4730 = vmatprep.subr.bf16.mxu0 %v5520_v18  ;;  %v5545_v51 = vld [vmem:[%s7643_s3 + $0x238] sm:$0xff]   ;;  %v537_v57 = vld [vmem:[%s7642_s2] sm:$0x3]  ;;  %vm6119_vm9 = vmpackc.low %vm813_vm8, %vm813_vm8 }
  0x41   : > { %v6104_v60 = vrot.slane %v537_v57, %v541_v56  ;;  %v6110_v62 = vrot.slane %v537_v57, %v545_v58  ;;  %v5555_v10 = vld [vmem:[%s7643_s3 + $0x180] sm:$0xff]   ;;  %v5556_v11 = vld [vmem:[%s7643_s3 + $0x1c8] sm:$0xff]   ;;  %vm6139_vm12 = vmand %vm794_vm10, %vm804_vm11 }
  0x42   : > { %3799 = vmatmul.mubr.msk.bf16.gmra.mrb[4].mxu0 %vm608_vm5, %v5505_v12  ;;  %4669 = vmatpush3.bf16.msra.mxu1 %v5531_v31  ;;  %v5560_v22 = vld [vmem:[%s7643_s3 + $0x1d0] sm:$0xff]   ;;  %vm6157_vm14 = vmpackc.low %vm6139_vm12, %vm6139_vm12 }
  0x43   : > { %701 = vmatprep.mubr.bf16.mxu0 %v5760_v6  ;;  %4731 = vmatpush3.bf16.msra.mxu0 %v5521_v19  ;;  %v5557_v19 = vld [vmem:[%s7643_s3 + $0x188] sm:$0xff]   ;;  %vm6184_vm0 = vmand %vm795_vm13, %vm805_vm15  ;;  %v5551_v4 = vld [vmem:[%s7643_s3 + $0x390] sm:$0xff]  }
  0x44   : > { %4732 = vmatprep.subr.bf16.mxu0 %v5524_v23  ;;  %4670 = vmatprep.subr.bf16.mxu1 %v5534_v40  ;;  %vm6224_vm2 = vmpackc.low %vm6184_vm0, %vm6184_vm0  ;;  %v5646_v8 = vld [vmem:[%s7643_s3 + $0x450] sm:$0xff]  }
  0x45   : > { %v5647_v25 = vld [vmem:[%s7643_s3 + $0x410] sm:$0xff]  }
  0x46   : > { %4671 = vmatpush3.bf16.msra.mxu1 %v5535_v42 }
  0x47   : > { %4733 = vmatpush3.bf16.msra.mxu0 %v5525_v24  ;;  %4672 = vmatprep.subr.bf16.mxu1 %v5538_v44  ;;  %v5549_v44 = vld [vmem:[%s7643_s3 + $0x388] sm:$0xff]  }
  0x48   : > { %4734 = vmatprep.subr.bf16.mxu0 %v5528_v27 }
  0x4a   : > { %3800 = vmatmul.mubr.msk.bf16.gmra.mrb[8].mxu0 %vm608_vm5, %v5506_v20  ;;  %4673 = vmatpush3.bf16.msra.mxu1 %v5539_v46 }
  0x4b   : > { %711 = vmatprep.mubr.bf16.mxu0 %v5760_v6  ;;  %4735 = vmatpush3.bf16.msra.mxu0 %v5529_v28 }
  0x4c   : > { %4736 = vmatprep.subr.bf16.mxu0 %v5532_v32  ;;  %4674 = vmatprep.subr.bf16.mxu1 %v5542_v48  ;;  %v5547_v32 = vld [vmem:[%s7643_s3 + $0x380] sm:$0xff]  }
  0x4e   : > { %4675 = vmatpush3.bf16.msra.mxu1 %v5543_v49  ;;  %v5550_v49 = vld [vmem:[%s7643_s3 + $0x3d0] sm:$0xff]  }
  0x4f   : > { %4737 = vmatpush3.bf16.msra.mxu0 %v5533_v33  ;;  %4676 = vmatprep.subr.bf16.mxu1 %v5544_v50  ;;  %v5561_v33 = vld [vmem:[%s7643_s3 + $0x190] sm:$0xff]   ;;  %v5566_v50 = vld [vmem:[%s7643_s3 + $0x1e0] sm:$0xff]  }
  0x50   : > { %4738 = vmatprep.subr.bf16.mxu0 %v5536_v41 }
  0x52   : > { %3801 = vmatmul.mubr.msk.bf16.gmra.mrb[12].mxu0 %vm608_vm5, %v5507_v29  ;;  %4677 = vmatpush3.bf16.msra.mxu1 %v5545_v51 }
  0x53   : > { %721 = vmatprep.mubr.bf16.mxu0 %v5760_v6  ;;  %4739 = vmatpush3.bf16.msra.mxu0 %v5537_v43 }
  0x54   : > { %4740 = vmatprep.subr.bf16.mxu0 %v5540_v45  ;;  %4790 = vmatprep.subr.bf16.mxu1 %v5546_v52  ;;  %v5563_v45 = vld [vmem:[%s7643_s3 + $0x198] sm:$0xff]  }
  0x57   : > { %4741 = vmatpush3.bf16.msra.mxu0 %v5541_v47 }
  0x58   : > { %4854 = vmatprep.subr.bf16.mxu0 %v5554_v53 }
  0x5a   : > { %3802 = vmatmul.mubr.msk.bf16.gmra.mrb[16].mxu0 %vm608_vm5, %v5508_v34 }
  0x5b   : > { %731 = vmatprep.mubr.bf16.mxu0 %v5760_v6 }
  0x62   : > { %3803 = vmatmul.mubr.msk.bf16.gmra.mrb[20].mxu0 %vm608_vm5, %v5509_v35  ;;  %v5548_v35 = vld [vmem:[%s7643_s3 + $0x3c8] sm:$0xff]  }
  0x63   : > { %741 = vmatprep.mubr.bf16.mxu0 %v5760_v6 }
  0x6a   : > { %3804 = vmatmul.mubr.msk.bf16.gmra.mrb[24].mxu0 %vm608_vm5, %v5510_v36  ;;  %v5562_v36 = vld [vmem:[%s7643_s3 + $0x1d8] sm:$0xff]  }
  0x6b   : > { %751 = vmatprep.mubr.bf16.mxu0 %v5760_v6 }
  0x72   : > { %3805 = vmatmul.mubr.msk.bf16.gmra.mrb[28].mxu0 %vm608_vm5, %v5511_v37 }
  0x73   : > { %761 = vmatprep.mubr.bf16.mxu0 %v5760_v6 }
  0x7a   : > { %3806 = vmatmul.mubr.msk.bf16.gmra.mrb[32].mxu0 %vm608_vm5, %v5512_v38 }
  0x7b   : > { %771 = vmatprep.mubr.bf16.mxu0 %v5760_v6 }
  0x82   : > { %3807 = vmatmul.mubr.msk.bf16.gmra.mrb[36].mxu0 %vm608_vm5, %v5513_v39  ;;  %v786_v39 = vadd.s32 3, %v6100_v59 }
  0x84   : > { %vm796_vm1 = vcmp.ge.s32.totalorder %v786_v39, 0  ;;  %vm806_vm3 = vcmp.lt.s32.totalorder %v786_v39, 16  ;;  %v5559_v39 = vld [vmem:[%s7643_s3 + $0x3a0] sm:$0xff]  }
  0x85   : > { %vm6249_vm4 = vmand %vm796_vm1, %vm806_vm3 }
  0x86   : > { %vm6289_vm6 = vmpackc.low %vm6249_vm4, %vm6249_vm4 }
 0x10d   : > { %v683_v61 = vpop.f32.mrb[0].mxu0 }
 0x10e   : > { %v685_v63 = vpop.f32.mrb[1].mxu0  ;;  %v684_v1 = vadd.f32 %v683_v61, %v6104_v60 }
 0x10f   : > { %v687_v0 = vpop.f32.mrb[2].mxu0  ;;  %v686_v5 = vadd.f32 %v685_v63, %v6110_v62 }
 0x110   : > { %v688_v2 = vadd.f32 %v687_v0, %v6104_v60  ;;  %v689_v3 = vpop.f32.mrb[3].mxu0 }
 0x111   : > { %v690_v6 = vadd.f32 %v689_v3, %v6110_v62 }
 0x112   : > { %v6117_v7 = vpack.c.bf16 %v688_v2, %v684_v1 }
 0x113   : > { %v6123_v9 = vpack.c.bf16 %v690_v6, %v686_v5  ;;  %v5567_v5 = vld [vmem:[%s7643_s3 + $0x1a0] sm:$0xff]  }
 0x115   : > { %v693_v12 = vpop.f32.mrb[4].mxu0  ;;  %3955 = vmatprep.mubr.msk.bf16.mxu0 %vm6119_vm9, %v6123_v9 }
 0x116   : > { %v694_v14 = vadd.f32 %v693_v12, %v6104_v60  ;;  %v695_v15 = vpop.f32.mrb[5].mxu0  ;;  %3958 = vmatmul.mubr.msk.bf16.vlgmr.msra.gmra.mrb[40].mxu0 %vm6119_vm9, %v6117_v7 }
 0x117   : > { %v696_v17 = vadd.f32 %v695_v15, %v6110_v62  ;;  %v697_v18 = vpop.f32.mrb[6].mxu0  ;;  %4855 = vmatpush3.bf16.msra.mxu0 %v5555_v10  ;;  %v5552_v10 = vld [vmem:[%s7643_s3 + $0x3d8] sm:$0xff]  }
 0x118   : > { %v698_v20 = vadd.f32 %v697_v18, %v6104_v60  ;;  %v699_v21 = vpop.f32.mrb[7].mxu0  ;;  %4856 = vmatprep.subr.bf16.mxu0 %v5556_v11  ;;  %v847_v24 = vsel %vm6139_vm12, %v694_v14, 0.0  ;;  %v5568_v11 = vld [vmem:[%s7643_s3 + $0x1e8] sm:$0xff]  }
 0x119   : > { %v700_v23 = vadd.f32 %v699_v21, %v6110_v62  ;;  %v848_v28 = vsel %vm6139_vm12, %v696_v17, 0.0 }
 0x11a   : > { %v849_v26 = vsel %vm6139_vm12, %v698_v20, 0.0  ;;  %v6163_v27 = vpack.c.bf16 %v698_v20, %v694_v14  ;;  %v787_v14 = vadd.s32 4, %v6100_v59  ;;  %v5569_v20 = vld [vmem:[%s7643_s3 + $0x1a8] sm:$0xff]  }
 0x11b   : > { %v884_v29 = vadd.f32 %v849_v26, %v847_v24  ;;  %v850_v30 = vsel %vm6139_vm12, %v700_v23, 0.0  ;;  %v6169_v31 = vpack.c.bf16 %v700_v23, %v696_v17  ;;  %4857 = vmatpush3.bf16.msra.mxu0 %v5557_v19  ;;  %v5553_v19 = vld [vmem:[%s7643_s3 + $0x398] sm:$0xff]   ;;  %v5558_v24 = vld [vmem:[%s7643_s3 + $0x3e0] sm:$0xff]   ;;  %v5572_v26 = vld [vmem:[%s7643_s3 + $0x1f0] sm:$0xff]  }
 0x11c   : > { %v905_v34 = vadd.f32 %v850_v30, %v848_v28  ;;  %4858 = vmatprep.subr.bf16.mxu0 %v5560_v22  ;;  %vm797_vm5 = vcmp.ge.s32.totalorder %v787_v14, 0  ;;  %vm807_vm7 = vcmp.lt.s32.totalorder %v787_v14, 16 }
 0x11d   : > { %v703_v37 = vpop.f32.mrb[8].mxu0  ;;  %3891 = vmatprep.mubr.msk.bf16.mxu1 %vm6157_vm14, %v6169_v31  ;;  %3961 = vmatprep.mubr.msk.bf16.mxu0 %vm6157_vm14, %v6169_v31  ;;  %vm6314_vm8 = vmand %vm797_vm5, %vm807_vm7 }
 0x11e   : > { %v704_v40 = vadd.f32 %v703_v37, %v6104_v60  ;;  %v705_v41 = vpop.f32.mrb[9].mxu0  ;;  %3894 = vmatmul.mubr.msk.bf16.vlgmr.msra.gmra.mrb[0].mxu1 %vm6157_vm14, %v6163_v27  ;;  %3964 = vmatmul.mubr.msk.bf16.gmra.mrb[44].mxu0 %vm6157_vm14, %v6163_v27  ;;  %vm6354_vm11 = vmpackc.low %vm6314_vm8, %vm6314_vm8 }
 0x11f   : > { %v706_v42 = vadd.f32 %v705_v41, %v6110_v62  ;;  %4791 = vmatpush3.bf16.msra.mxu1 %v5547_v32  ;;  %v707_v43 = vpop.f32.mrb[10].mxu0  ;;  %4859 = vmatpush3.bf16.msra.mxu0 %v5561_v33 }
 0x120   : > { %v851_v46 = vsel %vm6184_vm0, %v704_v40, 0.0  ;;  %v708_v47 = vadd.f32 %v707_v43, %v6104_v60  ;;  %v709_v48 = vpop.f32.mrb[11].mxu0  ;;  %4792 = vmatprep.subr.bf16.mxu1 %v5548_v35  ;;  %4860 = vmatprep.subr.bf16.mxu0 %v5562_v36  ;;  %v5574_v43 = vld [vmem:[%s7643_s3 + $0x1f8] sm:$0xff]  }
 0x121   : > { %v885_v51 = vadd.f32 %v884_v29, %v851_v46  ;;  %v852_v52 = vsel %vm6184_vm0, %v706_v42, 0.0  ;;  %v710_v53 = vadd.f32 %v709_v48, %v6110_v62  ;;  %v788_v46 = vadd.s32 5, %v6100_v59 }
 0x122   : > { %v906_v61 = vadd.f32 %v905_v34, %v852_v52  ;;  %v853_v63 = vsel %vm6184_vm0, %v708_v47, 0.0  ;;  %v6230_v0 = vpack.c.bf16 %v708_v47, %v704_v40  ;;  %v5573_v40 = vld [vmem:[%s7643_s3 + $0x1b0] sm:$0xff]   ;;  %v5575_v52 = vld [vmem:[%s7643_s3 + $0x1b8] sm:$0xff]  }
 0x123   : > { %v886_v1 = vadd.f32 %v885_v51, %v853_v63  ;;  %v854_v2 = vsel %vm6184_vm0, %v710_v53, 0.0  ;;  %v6234_v3 = vpack.c.bf16 %v710_v53, %v706_v42  ;;  %4793 = vmatpush3.bf16.msra.mxu1 %v5549_v44  ;;  %4861 = vmatpush3.bf16.msra.mxu0 %v5563_v45  ;;  %v5564_v42 = vld [vmem:[%s7643_s3 + $0x3e8] sm:$0xff]   ;;  %vm798_vm10 = vcmp.ge.s32.totalorder %v788_v46, 0 }
 0x124   : > { %v907_v6 = vadd.f32 %v906_v61, %v854_v2  ;;  %4794 = vmatprep.subr.bf16.mxu1 %v5550_v49  ;;  %4862 = vmatprep.subr.bf16.mxu0 %v5566_v50  ;;  %v5565_v51 = vld [vmem:[%s7643_s3 + $0x3a8] sm:$0xff]   ;;  %v5586_v2 = vld [vmem:[%s7643_s3 + $0x340] sm:$0xff]   ;;  %vm808_vm12 = vcmp.lt.s32.totalorder %v788_v46, 16 }
 0x125   : > { %v713_v12 = vpop.f32.mrb[12].mxu0  ;;  %3897 = vmatprep.mubr.msk.bf16.mxu1 %vm6224_vm2, %v6234_v3  ;;  %3967 = vmatprep.mubr.msk.bf16.mxu0 %vm6224_vm2, %v6234_v3  ;;  %vm6373_vm13 = vmand %vm798_vm10, %vm808_vm12 }
 0x126   : > { %v714_v15 = vadd.f32 %v713_v12, %v6104_v60  ;;  %v715_v16 = vpop.f32.mrb[13].mxu0  ;;  %3900 = vmatmul.mubr.msk.bf16.gmra.mrb[4].mxu1 %vm6224_vm2, %v6230_v0  ;;  %3970 = vmatmul.mubr.msk.bf16.gmra.mrb[48].mxu0 %vm6224_vm2, %v6230_v0  ;;  %vm6407_vm0 = vmpackc.low %vm6373_vm13, %vm6373_vm13 }
 0x127   : > { %v716_v17 = vadd.f32 %v715_v16, %v6110_v62  ;;  %v717_v18 = vpop.f32.mrb[14].mxu0  ;;  %4795 = vmatpush3.bf16.msra.mxu1 %v5551_v4  ;;  %4863 = vmatpush3.bf16.msra.mxu0 %v5567_v5 }
 0x128   : > { %v855_v21 = vsel %vm6249_vm4, %v714_v15, 0.0  ;;  %v718_v22 = vadd.f32 %v717_v18, %v6104_v60  ;;  %v719_v23 = vpop.f32.mrb[15].mxu0  ;;  %4796 = vmatprep.subr.bf16.mxu1 %v5552_v10  ;;  %4864 = vmatprep.subr.bf16.mxu0 %v5568_v11 }
 0x129   : > { %v887_v28 = vadd.f32 %v886_v1, %v855_v21  ;;  %v856_v29 = vsel %vm6249_vm4, %v716_v17, 0.0  ;;  %v720_v30 = vadd.f32 %v719_v23, %v6110_v62  ;;  %v5570_v1 = vld [vmem:[%s7643_s3 + $0x3f0] sm:$0xff]  }
 0x12a   : > { %v908_v33 = vadd.f32 %v907_v6, %v856_v29  ;;  %v857_v34 = vsel %vm6249_vm4, %v718_v22, 0.0  ;;  %v6295_v35 = vpack.c.bf16 %v718_v22, %v714_v15  ;;  %v789_v22 = vadd.s32 6, %v6100_v59  ;;  %v5577_v29 = vld [vmem:[%s7643_s3 + $0x3b8] sm:$0xff]  }
 0x12b   : > { %v888_v36 = vadd.f32 %v887_v28, %v857_v34  ;;  %v858_v37 = vsel %vm6249_vm4, %v720_v30, 0.0  ;;  %v6299_v38 = vpack.c.bf16 %v720_v30, %v716_v17  ;;  %4797 = vmatpush3.bf16.msra.mxu1 %v5553_v19  ;;  %4865 = vmatpush3.bf16.msra.mxu0 %v5569_v20  ;;  %v5571_v17 = vld [vmem:[%s7643_s3 + $0x3b0] sm:$0xff]   ;;  %v5576_v19 = vld [vmem:[%s7643_s3 + $0x3f8] sm:$0xff]  }
 0x12c   : > { %v909_v41 = vadd.f32 %v908_v33, %v858_v37  ;;  %4798 = vmatprep.subr.bf16.mxu1 %v5558_v24  ;;  %4866 = vmatprep.subr.bf16.mxu0 %v5572_v26  ;;  %vm799_vm15 = vcmp.ge.s32.totalorder %v789_v22, 0  ;;  %vm809_vm1 = vcmp.lt.s32.totalorder %v789_v22, 16 }
 0x12d   : > { %v723_v44 = vpop.f32.mrb[16].mxu0  ;;  %3903 = vmatprep.mubr.msk.bf16.mxu1 %vm6289_vm6, %v6299_v38  ;;  %3973 = vmatprep.mubr.msk.bf16.mxu0 %vm6289_vm6, %v6299_v38  ;;  %vm6419_vm3 = vmand %vm799_vm15, %vm809_vm1 }
 0x12e   : > { %v724_v47 = vadd.f32 %v723_v44, %v6104_v60  ;;  %v725_v48 = vpop.f32.mrb[17].mxu0  ;;  %3906 = vmatmul.mubr.msk.bf16.gmra.mrb[8].mxu1 %vm6289_vm6, %v6295_v35  ;;  %3976 = vmatmul.mubr.msk.bf16.gmra.mrb[52].mxu0 %vm6289_vm6, %v6295_v35  ;;  %vm6447_vm5 = vmpackc.low %vm6419_vm3, %vm6419_vm3 }
 0x12f   : > { %v726_v49 = vadd.f32 %v725_v48, %v6110_v62  ;;  %v727_v50 = vpop.f32.mrb[18].mxu0  ;;  %4799 = vmatpush3.bf16.msra.mxu1 %v5559_v39  ;;  %4867 = vmatpush3.bf16.msra.mxu0 %v5573_v40 }
 0x130   : > { %v859_v53 = vsel %vm6314_vm8, %v724_v47, 0.0  ;;  %v728_v61 = vadd.f32 %v727_v50, %v6104_v60  ;;  %v729_v63 = vpop.f32.mrb[19].mxu0  ;;  %4800 = vmatprep.subr.bf16.mxu1 %v5564_v42  ;;  %4868 = vmatprep.subr.bf16.mxu0 %v5574_v43 }
 0x131   : > { %v889_v4 = vadd.f32 %v888_v36, %v859_v53  ;;  %v860_v5 = vsel %vm6314_vm8, %v726_v49, 0.0  ;;  %v730_v6 = vadd.f32 %v729_v63, %v6110_v62  ;;  %v5578_v36 = vld [vmem:[%s7643_s3 + $0x40] sm:$0xff]  }
 0x132   : > { %v910_v11 = vadd.f32 %v909_v41, %v860_v5  ;;  %v861_v12 = vsel %vm6314_vm8, %v728_v61, 0.0  ;;  %v6360_v13 = vpack.c.bf16 %v728_v61, %v724_v47 }
 0x133   : > { %v890_v14 = vadd.f32 %v889_v4, %v861_v12  ;;  %v862_v15 = vsel %vm6314_vm8, %v730_v6, 0.0  ;;  %v6364_v16 = vpack.c.bf16 %v730_v6, %v726_v49  ;;  %4801 = vmatpush3.bf16.msra.mxu1 %v5565_v51  ;;  %4869 = vmatpush3.bf16.msra.mxu0 %v5575_v52  ;;  %v790_v51 = vadd.s32 7, %v6100_v59 }
 0x134   : > { %v911_v18 = vadd.f32 %v910_v11, %v862_v15  ;;  %4802 = vmatprep.subr.bf16.mxu1 %v5570_v1  ;;  %4982 = vmatprep.subr.bf16.mxu0 %v5586_v2 }
 0x135   : > { %v733_v20 = vpop.f32.mrb[20].mxu0  ;;  %3909 = vmatprep.mubr.msk.bf16.mxu1 %vm6354_vm11, %v6364_v16  ;;  %3979 = vmatprep.mubr.msk.bf16.mxu0 %vm6354_vm11, %v6364_v16  ;;  %vm800_vm4 = vcmp.ge.s32.totalorder %v790_v51, 0  ;;  %vm810_vm7 = vcmp.lt.s32.totalorder %v790_v51, 16 }
 0x136   : > { %v734_v23 = vadd.f32 %v733_v20, %v6104_v60  ;;  %v735_v24 = vpop.f32.mrb[21].mxu0  ;;  %3912 = vmatmul.mubr.msk.bf16.gmra.mrb[12].mxu1 %vm6354_vm11, %v6360_v13  ;;  %3982 = vmatmul.mubr.msk.bf16.gmra.mrb[56].mxu0 %vm6354_vm11, %v6360_v13  ;;  %vm6459_vm8 = vmand %vm800_vm4, %vm810_vm7 }
 0x137   : > { %v736_v26 = vadd.f32 %v735_v24, %v6110_v62  ;;  %v737_v28 = vpop.f32.mrb[22].mxu0  ;;  %4803 = vmatpush3.bf16.msra.mxu1 %v5571_v17  ;;  %v791_v24 = vadd.s32 8, %v6100_v59  ;;  %vm6487_vm12 = vmpackc.low %vm6459_vm8, %vm6459_vm8 }
 0x138   : > { %v863_v30 = vsel %vm6373_vm13, %v734_v23, 0.0  ;;  %v738_v33 = vadd.f32 %v737_v28, %v6104_v60  ;;  %v739_v34 = vpop.f32.mrb[23].mxu0  ;;  %4804 = vmatprep.subr.bf16.mxu1 %v5576_v19 }
 0x139   : > { %v891_v37 = vadd.f32 %v890_v14, %v863_v30  ;;  %v864_v39 = vsel %vm6373_vm13, %v736_v26, 0.0  ;;  %v740_v40 = vadd.f32 %v739_v34, %v6110_v62  ;;  %vm801_vm10 = vcmp.ge.s32.totalorder %v791_v24, 0 }
 0x13a   : > { %v912_v42 = vadd.f32 %v911_v18, %v864_v39  ;;  %v865_v43 = vsel %vm6373_vm13, %v738_v33, 0.0  ;;  %v6413_v44 = vpack.c.bf16 %v738_v33, %v734_v23 }
 0x13b   : > { %v892_v45 = vadd.f32 %v891_v37, %v865_v43  ;;  %v866_v46 = vsel %vm6373_vm13, %v740_v40, 0.0  ;;  %v6417_v47 = vpack.c.bf16 %v740_v40, %v736_v26  ;;  %4805 = vmatpush3.bf16.msra.mxu1 %v5577_v29  ;;  %vm811_vm13 = vcmp.lt.s32.totalorder %v791_v24, 16 }
 0x13c   : > { %v913_v48 = vadd.f32 %v912_v42, %v866_v46  ;;  %4918 = vmatprep.subr.bf16.mxu1 %v5578_v36  ;;  %vm6499_vm15 = vmand %vm801_vm10, %vm811_vm13 }
 0x13d   : > { %v743_v49 = vpop.f32.mrb[24].mxu0  ;;  %3915 = vmatprep.mubr.msk.bf16.mxu1 %vm6407_vm0, %v6417_v47  ;;  %3985 = vmatprep.mubr.msk.bf16.mxu0 %vm6407_vm0, %v6417_v47  ;;  %vm6529_vm1 = vmpackc.low %vm6499_vm15, %vm6499_vm15 }
 0x13e   : > { %v744_v52 = vadd.f32 %v743_v49, %v6104_v60  ;;  %v745_v53 = vpop.f32.mrb[25].mxu0  ;;  %3918 = vmatmul.mubr.msk.bf16.gmra.mrb[16].mxu1 %vm6407_vm0, %v6413_v44  ;;  %3988 = vmatmul.mubr.msk.bf16.gmra.mrb[60].mxu0 %vm6407_vm0, %v6413_v44 }
 0x13f   : > { %v746_v61 = vadd.f32 %v745_v53, %v6110_v62  ;;  %v747_v63 = vpop.f32.mrb[26].mxu0 }
 0x140   : > { %v867_v1 = vsel %vm6419_vm3, %v744_v52, 0.0  ;;  %v748_v2 = vadd.f32 %v747_v63, %v6104_v60  ;;  %v749_v4 = vpop.f32.mrb[27].mxu0 }
 0x141   : > { %v893_v5 = vadd.f32 %v892_v45, %v867_v1  ;;  %v868_v6 = vsel %vm6419_vm3, %v746_v61, 0.0  ;;  %v750_v11 = vadd.f32 %v749_v4, %v6110_v62 }
 0x142   : > { %v914_v14 = vadd.f32 %v913_v48, %v868_v6  ;;  %v869_v15 = vsel %vm6419_vm3, %v748_v2, 0.0  ;;  %v6453_v17 = vpack.c.bf16 %v748_v2, %v744_v52 }
 0x143   : > { %v894_v18 = vadd.f32 %v893_v5, %v869_v15  ;;  %v870_v19 = vsel %vm6419_vm3, %v750_v11, 0.0  ;;  %v6457_v20 = vpack.c.bf16 %v750_v11, %v746_v61  ;;  %vm947_vm3 = vcmp.lt.s32.totalorder %v539_v54, 256  ;;  %v5590_v54 = vld [vmem:[%s7643_s3 + $0x60] sm:$0xff]  }
 0x144   : > { %v915_v21 = vadd.f32 %v914_v14, %v870_v19 }
 0x145   : > { %v753_v22 = vpop.f32.mrb[28].mxu0  ;;  %3921 = vmatprep.mubr.msk.bf16.mxu1 %vm6447_vm5, %v6457_v20  ;;  %3991 = vmatprep.mubr.msk.bf16.mxu0 %vm6447_vm5, %v6457_v20 }
 0x146   : > { %v754_v26 = vadd.f32 %v753_v22, %v6104_v60  ;;  %v755_v28 = vpop.f32.mrb[29].mxu0  ;;  %3924 = vmatmul.mubr.msk.bf16.gmra.mrb[20].mxu1 %vm6447_vm5, %v6453_v17  ;;  %3994 = vmatmul.mubr.msk.bf16.gmra.mrb[64].mxu0 %vm6447_vm5, %v6453_v17 }
 0x147   : > { %v756_v29 = vadd.f32 %v755_v28, %v6110_v62  ;;  %v757_v30 = vpop.f32.mrb[30].mxu0 }
 0x148   : > { %v871_v33 = vsel %vm6459_vm8, %v754_v26, 0.0  ;;  %v758_v34 = vadd.f32 %v757_v30, %v6104_v60  ;;  %v759_v36 = vpop.f32.mrb[31].mxu0 }
 0x149   : > { %v895_v37 = vadd.f32 %v894_v18, %v871_v33  ;;  %v872_v39 = vsel %vm6459_vm8, %v756_v29, 0.0  ;;  %v760_v40 = vadd.f32 %v759_v36, %v6110_v62  ;;  %v5588_v33 = vld [vmem:[%s7643_s3 + $0x348] sm:$0xff]  }
 0x14a   : > { %v916_v43 = vadd.f32 %v915_v21, %v872_v39  ;;  %v873_v45 = vsel %vm6459_vm8, %v758_v34, 0.0  ;;  %v6493_v46 = vpack.c.bf16 %v758_v34, %v754_v26 }
 0x14b   : > { %v896_v48 = vadd.f32 %v895_v37, %v873_v45  ;;  %v874_v49 = vsel %vm6459_vm8, %v760_v40, 0.0  ;;  %v6497_v50 = vpack.c.bf16 %v760_v40, %v756_v29  ;;  %v5587_v29 = vld [vmem:[%s7643_s3 + $0x300] sm:$0xff]  }
 0x14c   : > { %v917_v51 = vadd.f32 %v916_v43, %v874_v49  ;;  %v5761_v49 = vmov 1966171168  }
 0x14d   : > { %v763_v52 = vpop.f32.mrb[32].mxu0  ;;  %3927 = vmatprep.mubr.msk.bf16.mxu1 %vm6487_vm12, %v6497_v50  ;;  %3997 = vmatprep.mubr.msk.bf16.mxu0 %vm6487_vm12, %v6497_v50 }
 0x14e   : > { %v764_v61 = vadd.f32 %v763_v52, %v6104_v60  ;;  %v765_v63 = vpop.f32.mrb[33].mxu0  ;;  %3930 = vmatmul.mubr.msk.bf16.gmra.mrb[24].mxu1 %vm6487_vm12, %v6493_v46  ;;  %4000 = vmatmul.mubr.msk.bf16.gmra.mrb[68].mxu0 %vm6487_vm12, %v6493_v46  ;;  %v5589_v52 = vld [vmem:[%s7643_s3 + $0x308] sm:$0xff]  }
 0x14f   : > { %v766_v1 = vadd.f32 %v765_v63, %v6110_v62  ;;  %v767_v2 = vpop.f32.mrb[34].mxu0  ;;  %4147 = vmatprep.mubr.msk.bf16.mxu0 %vm6157_vm14, %v6169_v31 }
 0x150   : > { %v875_v4 = vsel %vm6499_vm15, %v764_v61, 0.0  ;;  %v768_v5 = vadd.f32 %v767_v2, %v6104_v60  ;;  %v769_v6 = vpop.f32.mrb[35].mxu0 }
 0x151   : > { %v897_v11 = vadd.f32 %v896_v48, %v875_v4  ;;  %v876_v14 = vsel %vm6499_vm15, %v766_v1, 0.0  ;;  %v770_v15 = vadd.f32 %v769_v6, %v6110_v62 }
 0x152   : > { %v918_v19 = vadd.f32 %v917_v51, %v876_v14  ;;  %v877_v21 = vsel %vm6499_vm15, %v768_v5, 0.0  ;;  %v6535_v22 = vpack.c.bf16 %v768_v5, %v764_v61  ;;  %v930_v51 = vunpack.c.l.s4 %v5761_v49  ;;  %v5599_v49 = vld [vmem:[%s7643_s3 + $0x320] sm:$0xff]  }
 0x153   : > { %v898_v23 = vadd.f32 %v897_v11, %v877_v21  ;;  %v878_v24 = vsel %vm6499_vm15, %v770_v15, 0.0  ;;  %v6539_v26 = vpack.c.bf16 %v770_v15, %v766_v1  ;;  %v5592_v1 = vld [vmem:[%s7643_s3 + $0x350] sm:$0xff]   ;;  %v5579_v11 = vld [vmem:[%s7643_s3] sm:$0xff]  }
 0x154   : > { %v919_v28 = vadd.f32 %v918_v19, %v878_v24  ;;  %v931_v15 = vunpack.c.0.s8 %v930_v51  ;;  %v5580_v19 = vld [vmem:[%s7643_s3 + $0x48] sm:$0xff]   ;;  %v5594_v24 = vld [vmem:[%s7643_s3 + $0x358] sm:$0xff]  }
 0x155   : > { %v899_v30 = vrot.slane %v898_v23, 4  ;;  %3933 = vmatprep.mubr.msk.bf16.mxu1 %vm6529_vm1, %v6539_v26  ;;  %v773_v34 = vpop.f32.mrb[36].mxu0 }
 0x156   : > { %v920_v36 = vrot.slane %v919_v28, 4  ;;  %3936 = vmatmul.mubr.msk.bf16.gmra.mrb[28].mxu1 %vm6529_vm1, %v6535_v22  ;;  %4150 = vmatmul.mubr.msk.bf16.vlgmr.msra.gmra.mrb[72].mxu0 %vm6157_vm14, %v6163_v27  ;;  %v774_v37 = vadd.f32 %v773_v34, %v6104_v60  ;;  %v775_v39 = vpop.f32.mrb[37].mxu0  ;;  %v5582_v34 = vld [vmem:[%s7643_s3 + $0x50] sm:$0xff]  }
 0x157   : > { %v900_v40 = vadd.f32 %v899_v30, %v898_v23  ;;  %4051 = vmatprep.mubr.msk.bf16.mxu1 %vm6224_vm2, %v6234_v3  ;;  %4153 = vmatprep.mubr.msk.bf16.mxu0 %vm6224_vm2, %v6234_v3  ;;  %v776_v43 = vadd.f32 %v775_v39, %v6110_v62  ;;  %v777_v45 = vpop.f32.mrb[38].mxu0 }
 0x158   : > { %v921_v48 = vadd.f32 %v920_v36, %v919_v28  ;;  %4983 = vmatpush3.bf16.msra.mxu0 %v5587_v29  ;;  %v778_v53 = vadd.f32 %v777_v45, %v6104_v60  ;;  %v779_v61 = vpop.f32.mrb[39].mxu0  ;;  %v5581_v29 = vld [vmem:[%s7643_s3 + $0x8] sm:$0xff]   ;;  %v5595_v36 = vld [vmem:[%s7643_s3 + $0x318] sm:$0xff]   ;;  %v883_v45 = vld [vmem:[#allocation2] sm:$0x3] }
 0x159   : > { %v901_v63 = vrot.slane %v900_v40, 2  ;;  %4984 = vmatprep.subr.bf16.mxu0 %v5588_v33  ;;  %v780_v2 = vadd.f32 %v779_v61, %v6110_v62  ;;  %v5593_v62 = vld [vmem:[%s7643_s3 + $0x310] sm:$0xff]   ;;  %v934_v33 = vsub.s32 %v931_v15, %v6092_v55  ;;  %v5585_v61 = vld [vmem:[%s7643_s3 + $0x18] sm:$0xff]  }
 0x15a   : > { %v922_v4 = vrot.slane %v921_v48, 2  ;;  %v6572_v5 = vpack.c.bf16 %v778_v53, %v774_v37  ;;  %v5602_v15 = vld [vmem:[%s7643_s3 + $0x70] sm:$0xff]  }
 0x15b   : > { %v902_v6 = vadd.f32 %v901_v63, %v900_v40  ;;  %v6577_v14 = vpack.c.bf16 %v780_v2, %v776_v43  ;;  %v5583_v40 = vld [vmem:[%s7643_s3 + $0x10] sm:$0xff]   ;;  %v5598_v43 = vld [vmem:[%s7643_s3 + $0x360] sm:$0xff]   ;;  %v5601_v63 = vld [vmem:[%s7643_s3 + $0x328] sm:$0xff]  }
 0x15c   : > { %v923_v60 = vadd.f32 %v922_v4, %v921_v48  ;;  %4985 = vmatpush3.bf16.msra.mxu0 %v5589_v52  ;;  %v5584_v48 = vld [vmem:[%s7643_s3 + $0x58] sm:$0xff]   ;;  %v5600_v52 = vld [vmem:[%s7643_s3 + $0x368] sm:$0xff]   ;;  %v5604_v2 = vld [vmem:[%s7643_s3 + $0x370] sm:$0xff]  }
 0x15d   : > { %v903_v21 = vrot.slane %v902_v6, 1  ;;  %4986 = vmatprep.subr.bf16.mxu0 %v5592_v1  ;;  %v5591_v1 = vld [vmem:[%s7643_s3 + $0x20] sm:$0xff]   ;;  %v5596_v4 = vld [vmem:[%s7643_s3 + $0x68] sm:$0xff]   ;;  %v3562_v55 = vld [vmem:[%s7650_s10 + $0x70] sm:$0xff] (!%p4656_p1) }
 0x15e   : > { %v924_v23 = vrot.slane %v923_v60, 1  ;;  %4054 = vmatmul.mubr.msk.bf16.vlgmr.msra.gmra.mrb[32].mxu1 %vm6224_vm2, %v6230_v0  ;;  %4156 = vmatmul.mubr.msk.bf16.gmra.mrb[76].mxu0 %vm6224_vm2, %v6230_v0 }
 0x15f   : > { %v904_v28 = vadd.f32 %v903_v21, %v902_v6  ;;  %4919 = vmatpush3.bf16.msra.mxu1 %v5579_v11  ;;  %4057 = vmatprep.mubr.msk.bf16.mxu1 %vm6289_vm6, %v6299_v38  ;;  %v5605_v6 = vld [vmem:[%s7643_s3 + $0x330] sm:$0xff]   ;;  %v5606_v11 = vld [vmem:[%s7643_s3 + $0x378] sm:$0xff]  }
 0x160   : > { %v925_v30 = vadd.f32 %v924_v23, %v923_v60  ;;  %4159 = vmatprep.mubr.msk.bf16.mxu0 %vm6289_vm6, %v6299_v38  ;;  %4920 = vmatprep.subr.bf16.mxu1 %v5580_v19  ;;  %v5597_v60 = vld [vmem:[%s7643_s3 + $0x28] sm:$0xff]   ;;  %v5607_v19 = vld [vmem:[%s7643_s3 + $0x338] sm:$0xff]   ;;  %v5603_v21 = vld [vmem:[%s7643_s3 + $0x30] sm:$0xff]  }
 0x161   : > { %4987 = vmatpush3.bf16.msra.mxu0 %v5593_v62  ;;  %v5618_v62 = vld [vmem:[%s7643_s3 + $0x140] sm:$0xff]   ;;  %v5608_v23 = vld [vmem:[%s7643_s3 + $0x78] sm:$0xff]  }
 0x162   : > { %v928_v37 = vcombine.low %v904_v28, %v925_v30  ;;  %4988 = vmatprep.subr.bf16.mxu0 %v5594_v24  ;;  %v5609_v24 = vld [vmem:[%s7643_s3 + $0x38] sm:$0xff]   ;;  %v5610_v28 = vld [vmem:[%s7643_s3 + $0x2c0] sm:$0xff]  }
 0x163   : > { %4921 = vmatpush3.bf16.msra.mxu1 %v5581_v29  ;;  %v792_v29 = vadd.s32 9, %v6100_v59  ;;  %v5619_v30 = vld [vmem:[%s7643_s3 + $0x100] sm:$0xff]  }
 0x164   : > { %v935_v39 = vrot.slane %v928_v37, %v934_v33  ;;  %4922 = vmatprep.subr.bf16.mxu1 %v5582_v34  ;;  %v5621_v34 = vld [vmem:[%s7643_s3 + $0x108] sm:$0xff]   ;;  %v5611_v37 = vld [vmem:[%s7643_s3 + $0x280] sm:$0xff]  }
 0x165   : > { %4989 = vmatpush3.bf16.msra.mxu0 %v5595_v36  ;;  %vm802_vm4 = vcmp.ge.s32.totalorder %v792_v29, 0  ;;  %vm812_vm7 = vcmp.lt.s32.totalorder %v792_v29, 16  ;;  %v5624_v36 = vld [vmem:[%s7643_s3 + $0x150] sm:$0xff]   ;;  %v5642_v29 = vld [vmem:[%s7643_s3 + $0x440] sm:$0xff]  }
 0x166   : > { %v942_v51 = vrot.slane %v935_v39, %v934_v33  ;;  %4060 = vmatmul.mubr.msk.bf16.gmra.mrb[36].mxu1 %vm6289_vm6, %v6295_v35  ;;  %4162 = vmatmul.mubr.msk.bf16.gmra.mrb[80].mxu0 %vm6289_vm6, %v6295_v35  ;;  %vm822_vm8 = vmand %vm802_vm4, %vm812_vm7  ;;  %v5620_v33 = vld [vmem:[%s7643_s3 + $0x148] sm:$0xff]  }
 0x167   : > { %4063 = vmatprep.mubr.msk.bf16.mxu1 %vm6354_vm11, %v6364_v16  ;;  %4165 = vmatprep.mubr.msk.bf16.mxu0 %vm6354_vm11, %v6364_v16  ;;  %vm6735_vm10 = vmpackc.low %vm822_vm8, %vm822_vm8  ;;  %v5612_v39 = vld [vmem:[%s7643_s3 + $0x2c8] sm:$0xff]  }
 0x168   : > { %v944_v53 = vadd.f32 %v942_v51, %v883_v45  ;;  %4923 = vmatpush3.bf16.msra.mxu1 %v5583_v40  ;;  %4990 = vmatprep.subr.bf16.mxu0 %v5598_v43  ;;  %v5625_v40 = vld [vmem:[%s7643_s3 + $0x110] sm:$0xff]   ;;  %v5626_v43 = vld [vmem:[%s7643_s3 + $0x158] sm:$0xff]   ;;  %v5613_v45 = vld [vmem:[%s7643_s3 + $0x288] sm:$0xff]  }
 0x169   : > { %4924 = vmatprep.subr.bf16.mxu1 %v5584_v48  ;;  %4991 = vmatpush3.bf16.msra.mxu0 %v5599_v49  ;;  %v5614_v48 = vld [vmem:[%s7643_s3 + $0x2d0] sm:$0xff]   ;;  %v5627_v49 = vld [vmem:[%s7643_s3 + $0x118] sm:$0xff]  }
 0x16a   : > { %949 = vst.msk [vmem:[#allocation2] sm:$0x3] %vm947_vm3, %v944_v53  ;;  %4992 = vmatprep.subr.bf16.mxu0 %v5600_v52  ;;  %v5615_v51 = vld [vmem:[%s7643_s3 + $0x290] sm:$0xff]   ;;  %v5630_v52 = vld [vmem:[%s7643_s3 + $0x160] sm:$0xff]   ;;  %v5616_v53 = vld [vmem:[%s7643_s3 + $0x2d8] sm:$0xff]  }
 0x16c   : > { %4925 = vmatpush3.bf16.msra.mxu1 %v5585_v61  ;;  %v5631_v61 = vld [vmem:[%s7643_s3 + $0x120] sm:$0xff]  }
 0x16d   : > { %4926 = vmatprep.subr.bf16.mxu1 %v5590_v54  ;;  %4993 = vmatpush3.bf16.msra.mxu0 %v5601_v63  ;;  %v5632_v54 = vld [vmem:[%s7643_s3 + $0x168] sm:$0xff]   ;;  %v5617_v63 = vld [vmem:[%s7643_s3 + $0x298] sm:$0xff]  }
 0x16e   : > { %4066 = vmatmul.mubr.msk.bf16.gmra.mrb[40].mxu1 %vm6354_vm11, %v6360_v13  ;;  %4168 = vmatmul.mubr.msk.bf16.gmra.mrb[84].mxu0 %vm6354_vm11, %v6360_v13 }
 0x16f   : > { %4069 = vmatprep.mubr.msk.bf16.mxu1 %vm6407_vm0, %v6417_v47  ;;  %4171 = vmatprep.mubr.msk.bf16.mxu0 %vm6407_vm0, %v6417_v47 }
 0x170   : > { %4927 = vmatpush3.bf16.msra.mxu1 %v5591_v1  ;;  %4994 = vmatprep.subr.bf16.mxu0 %v5604_v2  ;;  %v5622_v1 = vld [vmem:[%s7643_s3 + $0x2e0] sm:$0xff]   ;;  %v5633_v2 = vld [vmem:[%s7643_s3 + $0x128] sm:$0xff]  }
 0x171   : > { %4928 = vmatprep.subr.bf16.mxu1 %v5596_v4  ;;  %4995 = vmatpush3.bf16.msra.mxu0 %v5605_v6  ;;  %v5623_v4 = vld [vmem:[%s7643_s3 + $0x2a0] sm:$0xff]   ;;  %v5636_v6 = vld [vmem:[%s7643_s3 + $0x170] sm:$0xff]  }
 0x172   : > { %4996 = vmatprep.subr.bf16.mxu0 %v5606_v11  ;;  %v5628_v11 = vld [vmem:[%s7643_s3 + $0x2e8] sm:$0xff]  }
 0x174   : > { %4929 = vmatpush3.bf16.msra.mxu1 %v5597_v60  ;;  %v5637_v60 = vld [vmem:[%s7643_s3 + $0x130] sm:$0xff]  }
 0x175   : > { %4930 = vmatprep.subr.bf16.mxu1 %v5602_v15  ;;  %4997 = vmatpush3.bf16.msra.mxu0 %v5607_v19  ;;  %v5638_v15 = vld [vmem:[%s7643_s3 + $0x178] sm:$0xff]   ;;  %v5629_v19 = vld [vmem:[%s7643_s3 + $0x2a8] sm:$0xff]  }
 0x176   : > { %4072 = vmatmul.mubr.msk.bf16.gmra.mrb[44].mxu1 %vm6407_vm0, %v6413_v44  ;;  %4174 = vmatmul.mubr.msk.bf16.gmra.mrb[88].mxu0 %vm6407_vm0, %v6413_v44 }
 0x177   : > { %4075 = vmatprep.mubr.msk.bf16.mxu1 %vm6447_vm5, %v6457_v20  ;;  %4177 = vmatprep.mubr.msk.bf16.mxu0 %vm6447_vm5, %v6457_v20 }
 0x178   : > { %4931 = vmatpush3.bf16.msra.mxu1 %v5603_v21  ;;  %5110 = vmatprep.subr.bf16.mxu0 %v5618_v62  ;;  %v5634_v21 = vld [vmem:[%s7643_s3 + $0x2f0] sm:$0xff]   ;;  %v5639_v62 = vld [vmem:[%s7643_s3 + $0x138] sm:$0xff]  }
 0x179   : > { %4932 = vmatprep.subr.bf16.mxu1 %v5608_v23  ;;  %v5635_v23 = vld [vmem:[%s7643_s3 + $0x2b0] sm:$0xff]  }
 0x17c   : > { %4933 = vmatpush3.bf16.msra.mxu1 %v5609_v24  ;;  %v5640_v24 = vld [vmem:[%s7643_s3 + $0x2f8] sm:$0xff]  }
 0x17d   : > { %5046 = vmatprep.subr.bf16.mxu1 %v5610_v28  ;;  %v5641_v28 = vld [vmem:[%s7643_s3 + $0x2b8] sm:$0xff]  }
 0x17e   : > { %4078 = vmatmul.mubr.msk.bf16.gmra.mrb[48].mxu1 %vm6447_vm5, %v6453_v17  ;;  %4180 = vmatmul.mubr.msk.bf16.gmra.mrb[92].mxu0 %vm6447_vm5, %v6453_v17 }
 0x17f   : > { %4081 = vmatprep.mubr.msk.bf16.mxu1 %vm6487_vm12, %v6497_v50  ;;  %4183 = vmatprep.mubr.msk.bf16.mxu0 %vm6487_vm12, %v6497_v50 }
 0x186   : > { %4084 = vmatmul.mubr.msk.bf16.gmra.mrb[52].mxu1 %vm6487_vm12, %v6493_v46  ;;  %4186 = vmatmul.mubr.msk.bf16.gmra.mrb[96].mxu0 %vm6487_vm12, %v6493_v46 }
 0x187   : > { %4087 = vmatprep.mubr.msk.bf16.mxu1 %vm6529_vm1, %v6539_v26  ;;  %4189 = vmatprep.mubr.msk.bf16.mxu0 %vm6529_vm1, %v6539_v26 }
 0x18e   : > { %4090 = vmatmul.mubr.msk.bf16.gmra.mrb[56].mxu1 %vm6529_vm1, %v6535_v22  ;;  %4192 = vmatmul.mubr.msk.bf16.gmra.mrb[100].mxu0 %vm6529_vm1, %v6535_v22 }
 0x18f   : > { %4307 = vmatprep.mubr.msk.bf16.mxu0 %vm6224_vm2, %v6234_v3  ;;  %4093 = vmatprep.mubr.msk.bf16.mxu1 %vm6735_vm10, %v6577_v14 }
 0x196   : > { %4096 = vmatmul.mubr.msk.bf16.gmra.mrb[60].mxu1 %vm6735_vm10, %v6572_v5  ;;  %4310 = vmatmul.mubr.msk.bf16.vlgmr.msra.gmra.mrb[104].mxu0 %vm6224_vm2, %v6230_v0 }
 0x197   : > { %4211 = vmatprep.mubr.msk.bf16.mxu1 %vm6119_vm9, %v6123_v9  ;;  %4313 = vmatprep.mubr.msk.bf16.mxu0 %vm6289_vm6, %v6299_v38 }
 0x198   : > { %5111 = vmatpush3.bf16.msra.mxu0 %v5619_v30  ;;  %v5644_v30 = vld [vmem:[%s7643_s3 + $0x448] sm:$0xff]  }
 0x199   : > { %5112 = vmatprep.subr.bf16.mxu0 %v5620_v33 }
 0x19c   : > { %5113 = vmatpush3.bf16.msra.mxu0 %v5621_v34  ;;  %v5650_v34 = vld [vmem:[%s7643_s3 + $0x460] sm:$0xff]  }
 0x19d   : > { %5114 = vmatprep.subr.bf16.mxu0 %v5624_v36 }
 0x19e   : > { %4214 = vmatmul.mubr.msk.bf16.vlgmr.msra.gmra.mrb[64].mxu1 %vm6119_vm9, %v6117_v7  ;;  %4316 = vmatmul.mubr.msk.bf16.gmra.mrb[108].mxu0 %vm6289_vm6, %v6295_v35 }
 0x19f   : > { %5047 = vmatpush3.bf16.msra.mxu1 %v5611_v37  ;;  %4217 = vmatprep.mubr.msk.bf16.mxu1 %vm6157_vm14, %v6169_v31 }
 0x1a0   : > { %4319 = vmatprep.mubr.msk.bf16.mxu0 %vm6354_vm11, %v6364_v16  ;;  %5048 = vmatprep.subr.bf16.mxu1 %v5612_v39 }
 0x1a1   : > { %5115 = vmatpush3.bf16.msra.mxu0 %v5625_v40 }
 0x1a2   : > { %5116 = vmatprep.subr.bf16.mxu0 %v5626_v43  ;;  %v5651_v43 = vld [vmem:[%s7643_s3 + $0x420] sm:$0xff]  }
 0x1a3   : > { %5049 = vmatpush3.bf16.msra.mxu1 %v5613_v45 }
 0x1a4   : > { %5050 = vmatprep.subr.bf16.mxu1 %v5614_v48  ;;  %v5652_v48 = vld [vmem:[%s7643_s3 + $0x468] sm:$0xff]  }
 0x1a5   : > { %5117 = vmatpush3.bf16.msra.mxu0 %v5627_v49  ;;  %v5653_v49 = vld [vmem:[%s7643_s3 + $0x428] sm:$0xff]  }
 0x1a6   : > { %4220 = vmatmul.mubr.msk.bf16.gmra.mrb[68].mxu1 %vm6157_vm14, %v6163_v27  ;;  %4322 = vmatmul.mubr.msk.bf16.gmra.mrb[112].mxu0 %vm6354_vm11, %v6360_v13 }
 0x1a7   : > { %4223 = vmatprep.mubr.msk.bf16.mxu1 %vm6224_vm2, %v6234_v3  ;;  %4325 = vmatprep.mubr.msk.bf16.mxu0 %vm6407_vm0, %v6417_v47 }
 0x1a8   : > { %5051 = vmatpush3.bf16.msra.mxu1 %v5615_v51  ;;  %5118 = vmatprep.subr.bf16.mxu0 %v5630_v52 }
 0x1a9   : > { %5052 = vmatprep.subr.bf16.mxu1 %v5616_v53  ;;  %5119 = vmatpush3.bf16.msra.mxu0 %v5631_v61  ;;  %v5654_v53 = vld [vmem:[%s7643_s3 + $0x470] sm:$0xff]  }
 0x1aa   : > { %5120 = vmatprep.subr.bf16.mxu0 %v5632_v54 }
 0x1ac   : > { %5053 = vmatpush3.bf16.msra.mxu1 %v5617_v63 }
 0x1ad   : > { %5054 = vmatprep.subr.bf16.mxu1 %v5622_v1  ;;  %5121 = vmatpush3.bf16.msra.mxu0 %v5633_v2 }
 0x1ae   : > { %4226 = vmatmul.mubr.msk.bf16.gmra.mrb[72].mxu1 %vm6224_vm2, %v6230_v0  ;;  %4328 = vmatmul.mubr.msk.bf16.gmra.mrb[116].mxu0 %vm6407_vm0, %v6413_v44 }
 0x1af   : > { %4229 = vmatprep.mubr.msk.bf16.mxu1 %vm6289_vm6, %v6299_v38  ;;  %4331 = vmatprep.mubr.msk.bf16.mxu0 %vm6447_vm5, %v6457_v20 }
 0x1b0   : > { %5055 = vmatpush3.bf16.msra.mxu1 %v5623_v4  ;;  %5122 = vmatprep.subr.bf16.mxu0 %v5636_v6 }
 0x1b1   : > { %5056 = vmatprep.subr.bf16.mxu1 %v5628_v11  ;;  %5123 = vmatpush3.bf16.msra.mxu0 %v5637_v60  ;;  %v5655_v60 = vld [vmem:[%s7643_s3 + $0x430] sm:$0xff]  }
 0x1b2   : > { %5124 = vmatprep.subr.bf16.mxu0 %v5638_v15 }
 0x1b4   : > { %5057 = vmatpush3.bf16.msra.mxu1 %v5629_v19 }
 0x1b5   : > { %5058 = vmatprep.subr.bf16.mxu1 %v5634_v21  ;;  %5125 = vmatpush3.bf16.msra.mxu0 %v5639_v62  ;;  %v5656_v62 = vld [vmem:[%s7643_s3 + $0x478] sm:$0xff]  }
 0x1b6   : > { %4232 = vmatmul.mubr.msk.bf16.gmra.mrb[76].mxu1 %vm6289_vm6, %v6295_v35  ;;  %4334 = vmatmul.mubr.msk.bf16.gmra.mrb[120].mxu0 %vm6447_vm5, %v6453_v17 }
 0x1b7   : > { %4235 = vmatprep.mubr.msk.bf16.mxu1 %vm6354_vm11, %v6364_v16  ;;  %4337 = vmatprep.mubr.msk.bf16.mxu0 %vm6487_vm12, %v6497_v50 }
 0x1b8   : > { %5059 = vmatpush3.bf16.msra.mxu1 %v5635_v23 }
 0x1b9   : > { %5060 = vmatprep.subr.bf16.mxu1 %v5640_v24  ;;  %v5657_v24 = vld [vmem:[%s7643_s3 + $0x438] sm:$0xff]  }
 0x1bc   : > { %5061 = vmatpush3.bf16.msra.mxu1 %v5641_v28 }
 0x1bd   : > { %5174 = vmatprep.subr.bf16.mxu1 %v5642_v29 }
 0x1be   : > { %4238 = vmatmul.mubr.msk.bf16.gmra.mrb[80].mxu1 %vm6354_vm11, %v6360_v13  ;;  %4340 = vmatmul.mubr.msk.bf16.gmra.mrb[124].mxu0 %vm6487_vm12, %v6493_v46 }
 0x1bf   : > { %4241 = vmatprep.mubr.msk.bf16.mxu1 %vm6407_vm0, %v6417_v47  ;;  %4343 = vmatprep.mubr.msk.bf16.mxu0 %vm6529_vm1, %v6539_v26 }
 0x1c6   : > { %4244 = vmatmul.mubr.msk.bf16.gmra.mrb[84].mxu1 %vm6407_vm0, %v6413_v44  ;;  %4346 = vmatmul.mubr.msk.bf16.gmra.mrb[128].mxu0 %vm6529_vm1, %v6535_v22 }
 0x1c7   : > { %4247 = vmatprep.mubr.msk.bf16.mxu1 %vm6447_vm5, %v6457_v20  ;;  %4349 = vmatprep.mubr.msk.bf16.mxu0 %vm6735_vm10, %v6577_v14 }
 0x1ce   : > { %4250 = vmatmul.mubr.msk.bf16.gmra.mrb[88].mxu1 %vm6447_vm5, %v6453_v17  ;;  %4352 = vmatmul.mubr.msk.bf16.gmra.mrb[132].mxu0 %vm6735_vm10, %v6572_v5 }
 0x1cf   : > { %4253 = vmatprep.mubr.msk.bf16.mxu1 %vm6487_vm12, %v6497_v50  ;;  %4499 = vmatprep.mubr.msk.bf16.mxu0 %vm6119_vm9, %v6123_v9  ;;  %v5643_v9 = vld [vmem:[%s7643_s3 + $0x400] sm:$0xff]  }
 0x1d6   : > { %4256 = vmatmul.mubr.msk.bf16.gmra.mrb[92].mxu1 %vm6487_vm12, %v6493_v46  ;;  %4502 = vmatmul.mubr.msk.bf16.vlgmr.msra.gmra.mrb[136].mxu0 %vm6119_vm9, %v6117_v7  ;;  %v5645_v7 = vld [vmem:[%s7643_s3 + $0x408] sm:$0xff]   ;;  %vm1664_vm9 = vcmask 523264  }
 0x1d7   : > { %4435 = vmatprep.mubr.msk.bf16.mxu1 %vm6157_vm14, %v6169_v31  ;;  %4505 = vmatprep.mubr.msk.bf16.mxu0 %vm6157_vm14, %v6169_v31  ;;  %v5649_v31 = vld [vmem:[%s7643_s3 + $0x418] sm:$0xff]  }
 0x1de   : > { %4438 = vmatmul.mubr.msk.bf16.vlgmr.msra.gmra.mrb[96].mxu1 %vm6157_vm14, %v6163_v27  ;;  %4508 = vmatmul.mubr.msk.bf16.gmra.mrb[140].mxu0 %vm6157_vm14, %v6163_v27  ;;  %v5648_v27 = vld [vmem:[%s7643_s3 + $0x458] sm:$0xff]   ;;  %vm3410_vm14 = vcmask 31744  }
 0x1df   : > { %5175 = vmatpush3.bf16.msra.mxu1 %v5643_v9  ;;  %4441 = vmatprep.mubr.msk.bf16.mxu1 %vm6224_vm2, %v6234_v3 }
 0x1e0   : > { %4511 = vmatprep.mubr.msk.bf16.mxu0 %vm6224_vm2, %v6234_v3  ;;  %5176 = vmatprep.subr.bf16.mxu1 %v5644_v30 }
 0x1e3   : > { %5177 = vmatpush3.bf16.msra.mxu1 %v5645_v7 }
 0x1e4   : > { %5178 = vmatprep.subr.bf16.mxu1 %v5646_v8 }
 0x1e6   : > { %4444 = vmatmul.mubr.msk.bf16.gmra.mrb[100].mxu1 %vm6224_vm2, %v6230_v0  ;;  %4514 = vmatmul.mubr.msk.bf16.gmra.mrb[144].mxu0 %vm6224_vm2, %v6230_v0 }
 0x1e7   : > { %4447 = vmatprep.mubr.msk.bf16.mxu1 %vm6289_vm6, %v6299_v38  ;;  %4517 = vmatprep.mubr.msk.bf16.mxu0 %vm6289_vm6, %v6299_v38 }
 0x1e8   : > { %5179 = vmatpush3.bf16.msra.mxu1 %v5647_v25 }
 0x1e9   : > { %v4742_v33 = vpop.f32.mrb[40].mxu0  ;;  %5180 = vmatprep.subr.bf16.mxu1 %v5648_v27 }
 0x1ea   : > { %v4743_v36 = vpop.f32.mrb[41].mxu0 }
 0x1eb   : > { %v4744_v37 = vadd.f32 %v4743_v36, %v4742_v33  ;;  %v4745_v39 = vpop.f32.mrb[42].mxu0 }
 0x1ec   : > { %v4746_v40 = vpop.f32.mrb[43].mxu0  ;;  %5181 = vmatpush3.bf16.msra.mxu1 %v5649_v31 }
 0x1ed   : > { %v4747_v45 = vadd.f32 %v4746_v40, %v4745_v39  ;;  %5182 = vmatprep.subr.bf16.mxu1 %v5650_v34 }
 0x1ee   : > { %4450 = vmatmul.mubr.msk.bf16.gmra.mrb[104].mxu1 %vm6289_vm6, %v6295_v35  ;;  %4520 = vmatmul.mubr.msk.bf16.gmra.mrb[148].mxu0 %vm6289_vm6, %v6295_v35 }
 0x1ef   : > { %4453 = vmatprep.mubr.msk.bf16.mxu1 %vm6354_vm11, %v6364_v16  ;;  %4523 = vmatprep.mubr.msk.bf16.mxu0 %vm6354_vm11, %v6364_v16 }
 0x1f0   : > { %5183 = vmatpush3.bf16.msra.mxu1 %v5651_v43 }
 0x1f1   : > { %v4678_v51 = vpop.f32.mrb[0].mxu1  ;;  %v4748_v52 = vpop.f32.mrb[44].mxu0  ;;  %5184 = vmatprep.subr.bf16.mxu1 %v5652_v48 }
 0x1f2   : > { %v4679_v61 = vpop.f32.mrb[1].mxu1  ;;  %v4749_v54 = vpop.f32.mrb[45].mxu0 }
 0x1f3   : > { %v4680_v63 = vadd.f32 %v4679_v61, %v4678_v51  ;;  %v4750_v1 = vadd.f32 %v4749_v54, %v4748_v52  ;;  %v4681_v2 = vpop.f32.mrb[2].mxu1  ;;  %v4751_v4 = vpop.f32.mrb[46].mxu0 }
 0x1f4   : > { %v4682_v6 = vpop.f32.mrb[3].mxu1  ;;  %v4752_v11 = vpop.f32.mrb[47].mxu0  ;;  %5185 = vmatpush3.bf16.msra.mxu1 %v5653_v49 }
 0x1f5   : > { %v7027_v15 = vadd.f32 %v4744_v37, %v4680_v63  ;;  %v4683_v19 = vadd.f32 %v4682_v6, %v4681_v2  ;;  %v4753_v21 = vadd.f32 %v4752_v11, %v4751_v4  ;;  %5186 = vmatprep.subr.bf16.mxu1 %v5654_v53 }
 0x1f6   : > { %4456 = vmatmul.mubr.msk.bf16.gmra.mrb[108].mxu1 %vm6354_vm11, %v6360_v13  ;;  %4526 = vmatmul.mubr.msk.bf16.gmra.mrb[152].mxu0 %vm6354_vm11, %v6360_v13 }
 0x1f7   : > { %v7038_v23 = vadd.f32 %v4747_v45, %v4683_v19  ;;  %4459 = vmatprep.mubr.msk.bf16.mxu1 %vm6407_vm0, %v6417_v47  ;;  %4529 = vmatprep.mubr.msk.bf16.mxu0 %vm6407_vm0, %v6417_v47 }
 0x1f8   : > { %5187 = vmatpush3.bf16.msra.mxu1 %v5655_v60 }
 0x1f9   : > { %v4684_v28 = vpop.f32.mrb[4].mxu1  ;;  %v4754_v29 = vpop.f32.mrb[48].mxu0  ;;  %5188 = vmatprep.subr.bf16.mxu1 %v5656_v62 }
 0x1fa   : > { %v4685_v9 = vpop.f32.mrb[5].mxu1  ;;  %v4755_v30 = vpop.f32.mrb[49].mxu0 }
 0x1fb   : > { %v4686_v7 = vadd.f32 %v4685_v9, %v4684_v28  ;;  %v4756_v8 = vadd.f32 %v4755_v30, %v4754_v29  ;;  %v4687_v25 = vpop.f32.mrb[6].mxu1  ;;  %v4757_v27 = vpop.f32.mrb[50].mxu0 }
 0x1fc   : > { %v4688_v31 = vpop.f32.mrb[7].mxu1  ;;  %v4758_v33 = vpop.f32.mrb[51].mxu0  ;;  %5189 = vmatpush3.bf16.msra.mxu1 %v5657_v24 }
 0x1fd   : > { %v7049_v34 = vadd.f32 %v4750_v1, %v4686_v7  ;;  %v4689_v36 = vadd.f32 %v4688_v31, %v4687_v25  ;;  %v4759_v37 = vadd.f32 %v4758_v33, %v4757_v27 }
 0x1fe   : > { %4462 = vmatmul.mubr.msk.bf16.gmra.mrb[112].mxu1 %vm6407_vm0, %v6413_v44  ;;  %4532 = vmatmul.mubr.msk.bf16.gmra.mrb[156].mxu0 %vm6407_vm0, %v6413_v44 }
 0x1ff   : > { %v7057_v39 = vadd.f32 %v4753_v21, %v4689_v36  ;;  %4465 = vmatprep.mubr.msk.bf16.mxu1 %vm6447_vm5, %v6457_v20  ;;  %4535 = vmatprep.mubr.msk.bf16.mxu0 %vm6447_vm5, %v6457_v20 }
 0x201   : > { %v4690_v40 = vpop.f32.mrb[8].mxu1  ;;  %v4760_v43 = vpop.f32.mrb[52].mxu0 }
 0x202   : > { %v4691_v45 = vpop.f32.mrb[9].mxu1  ;;  %v4761_v48 = vpop.f32.mrb[53].mxu0 }
 0x203   : > { %v4692_v49 = vadd.f32 %v4691_v45, %v4690_v40  ;;  %v4762_v51 = vadd.f32 %v4761_v48, %v4760_v43  ;;  %v4693_v52 = vpop.f32.mrb[10].mxu1  ;;  %v4763_v53 = vpop.f32.mrb[54].mxu0 }
 0x204   : > { %v4694_v61 = vpop.f32.mrb[11].mxu1  ;;  %v4764_v54 = vpop.f32.mrb[55].mxu0 }
 0x205   : > { %v7065_v63 = vadd.f32 %v4756_v8, %v4692_v49  ;;  %v4695_v1 = vadd.f32 %v4694_v61, %v4693_v52  ;;  %v4765_v2 = vadd.f32 %v4764_v54, %v4763_v53 }
 0x206   : > { %4468 = vmatmul.mubr.msk.bf16.gmra.mrb[116].mxu1 %vm6447_vm5, %v6453_v17  ;;  %4538 = vmatmul.mubr.msk.bf16.gmra.mrb[160].mxu0 %vm6447_vm5, %v6453_v17 }
 0x207   : > { %v7073_v4 = vadd.f32 %v4759_v37, %v4695_v1  ;;  %4471 = vmatprep.mubr.msk.bf16.mxu1 %vm6487_vm12, %v6497_v50  ;;  %4541 = vmatprep.mubr.msk.bf16.mxu0 %vm6487_vm12, %v6497_v50 }
 0x209   : > { %v4696_v6 = vpop.f32.mrb[12].mxu1  ;;  %v4766_v11 = vpop.f32.mrb[56].mxu0 }
 0x20a   : > { %v4697_v60 = vpop.f32.mrb[13].mxu1  ;;  %v4767_v19 = vpop.f32.mrb[57].mxu0 }
 0x20b   : > { %v4698_v21 = vadd.f32 %v4697_v60, %v4696_v6  ;;  %v4768_v62 = vadd.f32 %v4767_v19, %v4766_v11  ;;  %v4699_v24 = vpop.f32.mrb[14].mxu1  ;;  %v4769_v28 = vpop.f32.mrb[58].mxu0 }
 0x20c   : > { %v4700_v29 = vpop.f32.mrb[15].mxu1  ;;  %v4770_v9 = vpop.f32.mrb[59].mxu0 }
 0x20d   : > { %v7081_v30 = vadd.f32 %v4762_v51, %v4698_v21  ;;  %v4701_v7 = vadd.f32 %v4700_v29, %v4699_v24  ;;  %v4771_v8 = vadd.f32 %v4770_v9, %v4769_v28 }
 0x20e   : > { %4474 = vmatmul.mubr.msk.bf16.gmra.mrb[120].mxu1 %vm6487_vm12, %v6493_v46  ;;  %4544 = vmatmul.mubr.msk.bf16.gmra.mrb[164].mxu0 %vm6487_vm12, %v6493_v46 }
 0x20f   : > { %v7089_v25 = vadd.f32 %v4765_v2, %v4701_v7  ;;  %4477 = vmatprep.mubr.msk.bf16.mxu1 %vm6529_vm1, %v6539_v26 }
 0x211   : > { %v4702_v27 = vpop.f32.mrb[16].mxu1  ;;  %v4772_v31 = vpop.f32.mrb[60].mxu0 }
 0x212   : > { %v4703_v33 = vpop.f32.mrb[17].mxu1  ;;  %v4773_v36 = vpop.f32.mrb[61].mxu0 }
 0x213   : > { %v4704_v37 = vadd.f32 %v4703_v33, %v4702_v27  ;;  %v4774_v40 = vadd.f32 %v4773_v36, %v4772_v31  ;;  %v4705_v43 = vpop.f32.mrb[18].mxu1  ;;  %v4775_v45 = vpop.f32.mrb[62].mxu0 }
 0x214   : > { %v4706_v48 = vpop.f32.mrb[19].mxu1  ;;  %v4776_v49 = vpop.f32.mrb[63].mxu0 }
 0x215   : > { %v7094_v51 = vadd.f32 %v4768_v62, %v4704_v37  ;;  %v4707_v52 = vadd.f32 %v4706_v48, %v4705_v43  ;;  %v4777_v53 = vadd.f32 %v4776_v49, %v4775_v45 }
 0x216   : > { %4480 = vmatmul.mubr.msk.bf16.gmra.mrb[124].mxu1 %vm6529_vm1, %v6535_v22 }
 0x217   : > { %v7099_v61 = vadd.f32 %v4771_v8, %v4707_v52  ;;  %4595 = vmatprep.mubr.msk.bf16.mxu1 %vm6224_vm2, %v6234_v3 }
 0x219   : > { %v4708_v54 = vpop.f32.mrb[20].mxu1  ;;  %v4778_v1 = vpop.f32.mrb[64].mxu0 }
 0x21a   : > { %v4709_v2 = vpop.f32.mrb[21].mxu1  ;;  %v4779_v6 = vpop.f32.mrb[65].mxu0 }
 0x21b   : > { %v4710_v11 = vadd.f32 %v4709_v2, %v4708_v54  ;;  %v4780_v60 = vadd.f32 %v4779_v6, %v4778_v1  ;;  %v4711_v19 = vpop.f32.mrb[22].mxu1  ;;  %v4781_v21 = vpop.f32.mrb[66].mxu0 }
 0x21c   : > { %v4712_v62 = vpop.f32.mrb[23].mxu1  ;;  %v4782_v24 = vpop.f32.mrb[67].mxu0 }
 0x21d   : > { %v7104_v28 = vadd.f32 %v4774_v40, %v4710_v11  ;;  %v4713_v29 = vadd.f32 %v4712_v62, %v4711_v19  ;;  %v4783_v9 = vadd.f32 %v4782_v24, %v4781_v21 }
 0x21e   : > { %4598 = vmatmul.mubr.msk.bf16.vlgmr.msra.gmra.mrb[128].mxu1 %vm6224_vm2, %v6230_v0  ;;  %vm5763_vm2 = vmmov (!%p4656_p1), 0  }
 0x21f   : > { %v7109_v7 = vadd.f32 %v4777_v53, %v4713_v29  ;;  %4601 = vmatprep.mubr.msk.bf16.mxu1 %vm6289_vm6, %v6299_v38 }
 0x221   : > { %v4714_v3 = vpop.f32.mrb[24].mxu1  ;;  %v4784_v8 = vpop.f32.mrb[68].mxu0 }
 0x222   : > { %v4715_v27 = vpop.f32.mrb[25].mxu1  ;;  %v4785_v31 = vpop.f32.mrb[69].mxu0 }
 0x223   : > { %v4716_v33 = vadd.f32 %v4715_v27, %v4714_v3  ;;  %v4786_v36 = vadd.f32 %v4785_v31, %v4784_v8  ;;  %v4717_v37 = vpop.f32.mrb[26].mxu1  ;;  %v4787_v40 = vpop.f32.mrb[70].mxu0 }
 0x224   : > { %v4718_v43 = vpop.f32.mrb[27].mxu1  ;;  %v4788_v45 = vpop.f32.mrb[71].mxu0 }
 0x225   : > { %v7114_v48 = vadd.f32 %v4780_v60, %v4716_v33  ;;  %v4719_v57 = vadd.f32 %v4718_v43, %v4717_v37  ;;  %v4789_v0 = vadd.f32 %v4788_v45, %v4787_v40 }
 0x226   : > { %4604 = vmatmul.mubr.msk.bf16.gmra.mrb[132].mxu1 %vm6289_vm6, %v6295_v35 }
 0x227   : > { %v7119_v49 = vadd.f32 %v4783_v9, %v4719_v57  ;;  %4607 = vmatprep.mubr.msk.bf16.mxu1 %vm6354_vm11, %v6364_v16 }
 0x229   : > { %v4720_v38 = vpop.f32.mrb[28].mxu1  ;;  %v4870_v52 = vpop.f32.mrb[72].mxu0 }
 0x22a   : > { %v4721_v53 = vpop.f32.mrb[29].mxu1  ;;  %v4871_v54 = vpop.f32.mrb[73].mxu0 }
 0x22b   : > { %v4722_v1 = vadd.f32 %v4721_v53, %v4720_v38  ;;  %v7124_v2 = vadd.f32 %v4871_v54, %v4870_v52  ;;  %v4723_v6 = vpop.f32.mrb[30].mxu1  ;;  %v4873_v11 = vpop.f32.mrb[74].mxu0 }
 0x22c   : > { %v4724_v60 = vpop.f32.mrb[31].mxu1  ;;  %v4874_v19 = vpop.f32.mrb[75].mxu0 }
 0x22d   : > { %v7126_v21 = vadd.f32 %v4786_v36, %v4722_v1  ;;  %v4725_v32 = vadd.f32 %v4724_v60, %v4723_v6  ;;  %v7128_v35 = vadd.f32 %v4874_v19, %v4873_v11 }
 0x22e   : > { %4610 = vmatmul.mubr.msk.bf16.gmra.mrb[136].mxu1 %vm6354_vm11, %v6360_v13 }
 0x22f   : > { %v7133_v16 = vadd.f32 %v4789_v0, %v4725_v32  ;;  %4613 = vmatprep.mubr.msk.bf16.mxu1 %vm6407_vm0, %v6417_v47 }
 0x231   : > { %v4806_v62 = vpop.f32.mrb[32].mxu1  ;;  %v4876_v24 = vpop.f32.mrb[76].mxu0 }
 0x232   : > { %v4807_v29 = vpop.f32.mrb[33].mxu1  ;;  %v4877_v9 = vpop.f32.mrb[77].mxu0 }
 0x233   : > { %v4808_v3 = vadd.f32 %v4807_v29, %v4806_v62  ;;  %v7138_v8 = vadd.f32 %v4877_v9, %v4876_v24  ;;  %v4809_v27 = vpop.f32.mrb[34].mxu1  ;;  %v4879_v31 = vpop.f32.mrb[78].mxu0 }
 0x234   : > { %v4810_v33 = vpop.f32.mrb[35].mxu1  ;;  %v4880_v36 = vpop.f32.mrb[79].mxu0 }
 0x235   : > { %v1648_v10 = vadd.f32 %v4808_v3, %v7027_v15  ;;  %v4811_v13 = vadd.f32 %v4810_v33, %v4809_v27  ;;  %v7141_v37 = vadd.f32 %v4880_v36, %v4879_v31 }
 0x236   : > { %4616 = vmatmul.mubr.msk.bf16.gmra.mrb[140].mxu1 %vm6407_vm0, %v6413_v44 }
 0x237   : > { %1665 = vst.msk [vmem:[#allocation3 + $0x1] sm:$0xff] %vm1664_vm9, %v1648_v10  ;;  %v1649_v47 = vadd.f32 %v4811_v13, %v7038_v23  ;;  %4619 = vmatprep.mubr.msk.bf16.mxu1 %vm6447_vm5, %v6457_v20 }
 0x239   : > { %1666 = vst.msk [vmem:[#allocation3 + $0x9] sm:$0xff] %vm1664_vm9, %v1649_v47  ;;  %v4812_v40 = vpop.f32.mrb[36].mxu1  ;;  %v4882_v43 = vpop.f32.mrb[80].mxu0 }
 0x23a   : > { %v4813_v15 = vpop.f32.mrb[37].mxu1  ;;  %v4883_v45 = vpop.f32.mrb[81].mxu0 }
 0x23b   : > { %v4814_v57 = vadd.f32 %v4813_v15, %v4812_v40  ;;  %v7152_v0 = vadd.f32 %v4883_v45, %v4882_v43  ;;  %v4815_v38 = vpop.f32.mrb[38].mxu1  ;;  %v4885_v41 = vpop.f32.mrb[82].mxu0 }
 0x23c   : > { %v4816_v44 = vpop.f32.mrb[39].mxu1  ;;  %v4886_v52 = vpop.f32.mrb[83].mxu0 }
 0x23d   : > { %v1650_v53 = vadd.f32 %v4814_v57, %v7049_v34  ;;  %v4817_v23 = vadd.f32 %v4816_v44, %v4815_v38  ;;  %v7155_v54 = vadd.f32 %v4886_v52, %v4885_v41 }
 0x23e   : > { %4622 = vmatmul.mubr.msk.bf16.gmra.mrb[144].mxu1 %vm6447_vm5, %v6453_v17 }
 0x23f   : > { %1667 = vst.msk [vmem:[#allocation3 + $0x19] sm:$0xff] %vm1664_vm9, %v1650_v53  ;;  %v1651_v20 = vadd.f32 %v4817_v23, %v7057_v39  ;;  %4625 = vmatprep.mubr.msk.bf16.mxu1 %vm6487_vm12, %v6497_v50 }
 0x241   : > { %1668 = vst.msk [vmem:[#allocation3 + $0x21] sm:$0xff] %vm1664_vm9, %v1651_v20  ;;  %v4818_v1 = vpop.f32.mrb[40].mxu1  ;;  %v4888_v6 = vpop.f32.mrb[84].mxu0 }
 0x242   : > { %v4819_v34 = vpop.f32.mrb[41].mxu1  ;;  %v4889_v11 = vpop.f32.mrb[85].mxu0 }
 0x243   : > { %v4820_v60 = vadd.f32 %v4819_v34, %v4818_v1  ;;  %v7166_v19 = vadd.f32 %v4889_v11, %v4888_v6  ;;  %v4821_v32 = vpop.f32.mrb[42].mxu1  ;;  %v4891_v12 = vpop.f32.mrb[86].mxu0 }
 0x244   : > { %v4822_v17 = vpop.f32.mrb[43].mxu1  ;;  %v4892_v62 = vpop.f32.mrb[87].mxu0 }
 0x245   : > { %v1652_v24 = vadd.f32 %v4820_v60, %v7065_v63  ;;  %v4823_v39 = vadd.f32 %v4822_v17, %v4821_v32  ;;  %v7169_v29 = vadd.f32 %v4892_v62, %v4891_v12 }
 0x246   : > { %4628 = vmatmul.mubr.msk.bf16.gmra.mrb[148].mxu1 %vm6487_vm12, %v6493_v46 }
 0x247   : > { %1669 = vst.msk [vmem:[#allocation3 + $0x31] sm:$0xff] %vm1664_vm9, %v1652_v24  ;;  %v1653_v50 = vadd.f32 %v4823_v39, %v7073_v4  ;;  %4631 = vmatprep.mubr.msk.bf16.mxu1 %vm6529_vm1, %v6539_v26 }
 0x249   : > { %1670 = vst.msk [vmem:[#allocation3 + $0x39] sm:$0xff] %vm1664_vm9, %v1653_v50  ;;  %v4824_v9 = vpop.f32.mrb[44].mxu1  ;;  %v4894_v3 = vpop.f32.mrb[88].mxu0 }
 0x24a   : > { %v4825_v63 = vpop.f32.mrb[45].mxu1  ;;  %v4895_v27 = vpop.f32.mrb[89].mxu0 }
 0x24b   : > { %v4826_v31 = vadd.f32 %v4825_v63, %v4824_v9  ;;  %v7180_v33 = vadd.f32 %v4895_v27, %v4894_v3  ;;  %v4827_v36 = vpop.f32.mrb[46].mxu1  ;;  %v4897_v42 = vpop.f32.mrb[90].mxu0 }
 0x24c   : > { %v4828_v46 = vpop.f32.mrb[47].mxu1  ;;  %v4898_v10 = vpop.f32.mrb[91].mxu0 }
 0x24d   : > { %v1654_v13 = vadd.f32 %v4826_v31, %v7081_v30  ;;  %v4829_v4 = vadd.f32 %v4828_v46, %v4827_v36  ;;  %v7183_v47 = vadd.f32 %v4898_v10, %v4897_v42 }
 0x24e   : > { %4634 = vmatmul.mubr.msk.bf16.gmra.mrb[152].mxu1 %vm6529_vm1, %v6535_v22 }
 0x24f   : > { %1671 = vst.msk [vmem:[#allocation3 + $0x49] sm:$0xff] %vm1664_vm9, %v1654_v13  ;;  %v1655_v26 = vadd.f32 %v4829_v4, %v7089_v25  ;;  %4637 = vmatprep.mubr.msk.bf16.mxu1 %vm6735_vm10, %v6577_v14 }
 0x251   : > { %1672 = vst.msk [vmem:[#allocation3 + $0x51] sm:$0xff] %vm1664_vm9, %v1655_v26  ;;  %v4830_v40 = vpop.f32.mrb[48].mxu1  ;;  %v4900_v43 = vpop.f32.mrb[92].mxu0 }
 0x252   : > { %v4831_v30 = vpop.f32.mrb[49].mxu1  ;;  %v4901_v15 = vpop.f32.mrb[93].mxu0 }
 0x253   : > { %v4832_v45 = vadd.f32 %v4831_v30, %v4830_v40  ;;  %v7194_v57 = vadd.f32 %v4901_v15, %v4900_v43  ;;  %v4833_v38 = vpop.f32.mrb[50].mxu1  ;;  %v4903_v18 = vpop.f32.mrb[94].mxu0 }
 0x254   : > { %v4834_v22 = vpop.f32.mrb[51].mxu1  ;;  %v4904_v41 = vpop.f32.mrb[95].mxu0 }
 0x255   : > { %v1656_v44 = vadd.f32 %v4832_v45, %v7094_v51  ;;  %v4835_v25 = vadd.f32 %v4834_v22, %v4833_v38  ;;  %v7197_v52 = vadd.f32 %v4904_v41, %v4903_v18 }
 0x256   : > { %4640 = vmatmul.mubr.msk.bf16.gmra.mrb[156].mxu1 %vm6735_vm10, %v6572_v5 }
 0x257   : > { %1673 = vst.msk [vmem:[#allocation3 + $0x61] sm:$0xff] %vm1664_vm9, %v1656_v44  ;;  %v1657_v14 = vadd.f32 %v4835_v25, %v7099_v61 }
 0x259   : > { %1674 = vst.msk [vmem:[#allocation3 + $0x69] sm:$0xff] %vm1664_vm9, %v1657_v14  ;;  %v4836_v53 = vpop.f32.mrb[52].mxu1  ;;  %v4906_v23 = vpop.f32.mrb[96].mxu0 }
 0x25a   : > { %v4837_v20 = vpop.f32.mrb[53].mxu1  ;;  %v4907_v1 = vpop.f32.mrb[97].mxu0 }
 0x25b   : > { %v4838_v6 = vadd.f32 %v4837_v20, %v4836_v53  ;;  %v7205_v34 = vadd.f32 %v4907_v1, %v4906_v23  ;;  %v4839_v51 = vpop.f32.mrb[54].mxu1  ;;  %v4909_v11 = vpop.f32.mrb[98].mxu0 }
 0x25c   : > { %v4840_v60 = vpop.f32.mrb[55].mxu1  ;;  %v4910_v32 = vpop.f32.mrb[99].mxu0 }
 0x25d   : > { %v1658_v59 = vadd.f32 %v4838_v6, %v7104_v28  ;;  %v4841_v5 = vadd.f32 %v4840_v60, %v4839_v51  ;;  %v7208_v12 = vadd.f32 %v4910_v32, %v4909_v11 }
 0x25f   : > { %1675 = vst.msk [vmem:[#allocation3 + $0x79] sm:$0xff] %vm1664_vm9, %v1658_v59  ;;  %v1659_v61 = vadd.f32 %v4841_v5, %v7109_v7 }
 0x261   : > { %1676 = vst.msk [vmem:[#allocation3 + $0x81] sm:$0xff] %vm1664_vm9, %v1659_v61  ;;  %v4842_v17 = vpop.f32.mrb[56].mxu1  ;;  %v4912_v62 = vpop.f32.mrb[100].mxu0 }
 0x262   : > { %v4843_v24 = vpop.f32.mrb[57].mxu1  ;;  %v4913_v39 = vpop.f32.mrb[101].mxu0 }
 0x263   : > { %v4844_v50 = vadd.f32 %v4843_v24, %v4842_v17  ;;  %v7213_v9 = vadd.f32 %v4913_v39, %v4912_v62  ;;  %v4845_v3 = vpop.f32.mrb[58].mxu1  ;;  %v4915_v63 = vpop.f32.mrb[102].mxu0  ;;  %v5658_v62 = vld [vmem:[%s7646_s6] sm:$0xff]   ;;  %v2375_v24 = vld [vmem:[#allocation3 + $0xa] sm:$0xff] }
 0x264   : > { %v4846_v27 = vpop.f32.mrb[59].mxu1  ;;  %v4916_v28 = vpop.f32.mrb[103].mxu0  ;;  %5302 = vmatprep.subr.bf16.mxu0 %v5658_v62  ;;  %5417 = vmatprep.subr.bf16.mxu1 %v5658_v62 }
 0x265   : > { %v1660_v31 = vadd.f32 %v4844_v50, %v7114_v48  ;;  %v4847_v36 = vadd.f32 %v4846_v27, %v4845_v3  ;;  %v7216_v42 = vadd.f32 %v4916_v28, %v4915_v63  ;;  %5303 = vmatpush3.bf16.msra.mxu0 %v5658_v62  ;;  %5421 = vmatpush3.bf16.msra.mxu1 %v5658_v62 }
 0x267   : > { %1677 = vst.msk [vmem:[#allocation3 + $0x91] sm:$0xff] %vm1664_vm9, %v1660_v31  ;;  %v1661_v7 = vadd.f32 %v4847_v36, %v7119_v49 }
 0x269   : > { %1678 = vst.msk [vmem:[#allocation3 + $0x99] sm:$0xff] %vm1664_vm9, %v1661_v7  ;;  %v4848_v46 = vpop.f32.mrb[60].mxu1  ;;  %v4998_v10 = vpop.f32.mrb[104].mxu0 }
 0x26a   : > { %v4849_v13 = vpop.f32.mrb[61].mxu1  ;;  %v4999_v4 = vpop.f32.mrb[105].mxu0 }
 0x26b   : > { %v4850_v26 = vadd.f32 %v4849_v13, %v4848_v46  ;;  %v5000_v40 = vadd.f32 %v4999_v4, %v4998_v10  ;;  %v4851_v43 = vpop.f32.mrb[62].mxu1  ;;  %v5001_v30 = vpop.f32.mrb[106].mxu0  ;;  %v2376_v4 = vld [vmem:[#allocation3 + $0x1a] sm:$0xff] }
 0x26c   : > { %v4852_v15 = vpop.f32.mrb[63].mxu1  ;;  %v5002_v45 = vpop.f32.mrb[107].mxu0 }
 0x26d   : > { %v1662_v48 = vadd.f32 %v4850_v26, %v7126_v21  ;;  %v4853_v38 = vadd.f32 %v4852_v15, %v4851_v43  ;;  %v5003_v18 = vadd.f32 %v5002_v45, %v5001_v30  ;;  %v2377_v15 = vld [vmem:[#allocation3 + $0x22] sm:$0xff] }
 0x26f   : > { %1679 = vst.msk [vmem:[#allocation3 + $0xa9] sm:$0xff] %vm1664_vm9, %v1662_v48  ;;  %v1663_v49 = vadd.f32 %v4853_v38, %v7133_v16  ;;  %v2374_v16 = vld [vmem:[#allocation3 + $0x2] sm:$0xff] }
 0x271   : > { %1680 = vst.msk [vmem:[#allocation3 + $0xb1] sm:$0xff] %vm1664_vm9, %v1663_v49  ;;  %v4934_v22 = vpop.f32.mrb[64].mxu1  ;;  %v5004_v41 = vpop.f32.mrb[108].mxu0 }
 0x272   : > { %v4935_v44 = vpop.f32.mrb[65].mxu1  ;;  %v5005_v25 = vpop.f32.mrb[109].mxu0 }
 0x273   : > { %v4936_v14 = vadd.f32 %v4935_v44, %v4934_v22  ;;  %v5006_v53 = vadd.f32 %v5005_v25, %v5004_v41  ;;  %v4937_v23 = vpop.f32.mrb[66].mxu1  ;;  %v5007_v20 = vpop.f32.mrb[110].mxu0 }
 0x274   : > { %v4938_v1 = vpop.f32.mrb[67].mxu1  ;;  %v5008_v6 = vpop.f32.mrb[111].mxu0 }
 0x275   : > { %v2070_v21 = vadd.f32 %v4936_v14, %v7124_v2  ;;  %v4939_v51 = vadd.f32 %v4938_v1, %v4937_v23  ;;  %v5009_v11 = vadd.f32 %v5008_v6, %v5007_v20  ;;  %v2378_v1 = vld [vmem:[#allocation3 + $0x32] sm:$0xff] }
 0x277   : > { %v2358_v60 = vadd.f32 %v5000_v40, %v2070_v21  ;;  %v2073_v32 = vadd.f32 %v4939_v51, %v7128_v35 }
 0x279   : > { %v2390_v59 = vadd.f32 %v2374_v16, %v2358_v60  ;;  %v2359_v5 = vadd.f32 %v5003_v18, %v2073_v32  ;;  %v4940_v61 = vpop.f32.mrb[68].mxu1  ;;  %v5010_v17 = vpop.f32.mrb[112].mxu0  ;;  %v2379_v60 = vld [vmem:[#allocation3 + $0x3a] sm:$0xff]  ;;  %v5660_v16 = vld [vmem:[%s7646_s6 + $0x10] sm:$0xff]  }
 0x27a   : > { %v4941_v39 = vpop.f32.mrb[69].mxu1  ;;  %v5011_v50 = vpop.f32.mrb[113].mxu0 }
 0x27b   : > { %2406 = vst.msk [vmem:[#allocation3 + $0x2] sm:$0xff] %vm1664_vm9, %v2390_v59  ;;  %v2391_v2 = vadd.f32 %v2375_v24, %v2359_v5  ;;  %v4942_v3 = vadd.f32 %v4941_v39, %v4940_v61  ;;  %v5012_v63 = vadd.f32 %v5011_v50, %v5010_v17  ;;  %v4943_v27 = vpop.f32.mrb[70].mxu1  ;;  %v5013_v28 = vpop.f32.mrb[114].mxu0 }
 0x27c   : > { %v4944_v35 = vpop.f32.mrb[71].mxu1  ;;  %v5014_v31 = vpop.f32.mrb[115].mxu0 }
 0x27d   : > { %2407 = vst.msk [vmem:[#allocation3 + $0xa] sm:$0xff] %vm1664_vm9, %v2391_v2  ;;  %v2078_v36 = vadd.f32 %v4942_v3, %v7138_v8  ;;  %v4945_v7 = vadd.f32 %v4944_v35, %v4943_v27  ;;  %v5015_v46 = vadd.f32 %v5014_v31, %v5013_v28  ;;  %v5661_v3 = vld [vmem:[%s7646_s6 + $0x18] sm:$0xff]   ;;  %v2380_v28 = vld [vmem:[#allocation3 + $0x4a] sm:$0xff] }
 0x27f   : > { %v2360_v10 = vadd.f32 %v5006_v53, %v2078_v36  ;;  %v2081_v13 = vadd.f32 %v4945_v7, %v7141_v37  ;;  %v5659_v53 = vld [vmem:[%s7646_s6 + $0x8] sm:$0xff]  }
 0x280   : > { %5304 = vmatprep.subr.bf16.mxu0 %v5659_v53  ;;  %5418 = vmatprep.subr.bf16.mxu1 %v5659_v53 }
 0x281   : > { %v2392_v26 = vadd.f32 %v2376_v4, %v2360_v10  ;;  %v2361_v40 = vadd.f32 %v5009_v11, %v2081_v13  ;;  %v4946_v43 = vpop.f32.mrb[72].mxu1  ;;  %v5016_v30 = vpop.f32.mrb[116].mxu0  ;;  %5305 = vmatpush3.bf16.msra.mxu0 %v5659_v53  ;;  %5422 = vmatpush3.bf16.msra.mxu1 %v5659_v53 }
 0x282   : > { %v4947_v45 = vpop.f32.mrb[73].mxu1  ;;  %v5017_v48 = vpop.f32.mrb[117].mxu0  ;;  %5306 = vmatprep.subr.bf16.mxu0 %v5660_v16  ;;  %5419 = vmatprep.subr.bf16.mxu1 %v5660_v16 }
 0x283   : > { %2408 = vst.msk [vmem:[#allocation3 + $0x1a] sm:$0xff] %vm1664_vm9, %v2392_v26  ;;  %v2393_v38 = vadd.f32 %v2377_v15, %v2361_v40  ;;  %v4948_v18 = vadd.f32 %v4947_v45, %v4946_v43  ;;  %v5018_v49 = vadd.f32 %v5017_v48, %v5016_v30  ;;  %v4949_v22 = vpop.f32.mrb[74].mxu1  ;;  %v5019_v8 = vpop.f32.mrb[118].mxu0 }
 0x284   : > { %v4950_v41 = vpop.f32.mrb[75].mxu1  ;;  %v5020_v44 = vpop.f32.mrb[119].mxu0 }
 0x285   : > { %2409 = vst.msk [vmem:[#allocation3 + $0x22] sm:$0xff] %vm1664_vm9, %v2393_v38  ;;  %v2086_v37 = vadd.f32 %v4948_v18, %v7152_v0  ;;  %v4951_v25 = vadd.f32 %v4950_v41, %v4949_v22  ;;  %v5021_v14 = vadd.f32 %v5020_v44, %v5019_v8  ;;  %5307 = vmatpush3.bf16.msra.mxu0 %v5660_v16 }
 0x286   : > { %5423 = vmatpush3.bf16.msra.mxu1 %v5660_v16  ;;  %5308 = vmatprep.subr.bf16.mxu0 %v5661_v3 }
 0x287   : > { %v2362_v23 = vadd.f32 %v5012_v63, %v2086_v37  ;;  %v2089_v20 = vadd.f32 %v4951_v25, %v7155_v54  ;;  %5420 = vmatprep.subr.bf16.mxu1 %v5661_v3  ;;  %v2383_v37 = vld [vmem:[#allocation3 + $0x6a] sm:$0xff] }
 0x289   : > { %v2394_v6 = vadd.f32 %v2378_v1, %v2362_v23  ;;  %v2363_v21 = vadd.f32 %v5015_v46, %v2089_v20  ;;  %v4952_v51 = vpop.f32.mrb[76].mxu1  ;;  %v5022_v11 = vpop.f32.mrb[120].mxu0  ;;  %5309 = vmatpush3.bf16.msra.mxu0 %v5661_v3 }
 0x28a   : > { %v4953_v0 = vpop.f32.mrb[77].mxu1  ;;  %v5023_v32 = vpop.f32.mrb[121].mxu0  ;;  %5424 = vmatpush3.bf16.msra.mxu1 %v5661_v3 }
 0x28b   : > { %2410 = vst.msk [vmem:[#allocation3 + $0x32] sm:$0xff] %vm1664_vm9, %v2394_v6  ;;  %v2395_v59 = vadd.f32 %v2379_v60, %v2363_v21  ;;  %v4954_v54 = vadd.f32 %v4953_v0, %v4952_v51  ;;  %v5024_v5 = vadd.f32 %v5023_v32, %v5022_v11  ;;  %v4955_v61 = vpop.f32.mrb[78].mxu1  ;;  %v5025_v17 = vpop.f32.mrb[122].mxu0  ;;  %v2384_v32 = vld [vmem:[#allocation3 + $0x7a] sm:$0xff] }
 0x28c   : > { %v4956_v62 = vpop.f32.mrb[79].mxu1  ;;  %v5026_v24 = vpop.f32.mrb[123].mxu0 }
 0x28d   : > { %2411 = vst.msk [vmem:[#allocation3 + $0x3a] sm:$0xff] %vm1664_vm9, %v2395_v59  ;;  %v2094_v39 = vadd.f32 %v4954_v54, %v7166_v19  ;;  %v4957_v50 = vadd.f32 %v4956_v62, %v4955_v61  ;;  %v5027_v2 = vadd.f32 %v5026_v24, %v5025_v17  ;;  %v2381_v19 = vld [vmem:[#allocation3 + $0x52] sm:$0xff]  ;;  %v2385_v61 = vld [vmem:[#allocation3 + $0x82] sm:$0xff] }
 0x28f   : > { %v2364_v63 = vadd.f32 %v5018_v49, %v2094_v39  ;;  %v2097_v27 = vadd.f32 %v4957_v50, %v7169_v29  ;;  %v2382_v49 = vld [vmem:[#allocation3 + $0x62] sm:$0xff] }
 0x291   : > { %v2396_v35 = vadd.f32 %v2380_v28, %v2364_v63  ;;  %v2365_v31 = vadd.f32 %v5021_v14, %v2097_v27  ;;  %v4958_v36 = vpop.f32.mrb[80].mxu1  ;;  %v5028_v7 = vpop.f32.mrb[124].mxu0 }
 0x292   : > { %v4959_v46 = vpop.f32.mrb[81].mxu1  ;;  %v5029_v10 = vpop.f32.mrb[125].mxu0 }
 0x293   : > { %2412 = vst.msk [vmem:[#allocation3 + $0x4a] sm:$0xff] %vm1664_vm9, %v2396_v35  ;;  %v2397_v13 = vadd.f32 %v2381_v19, %v2365_v31  ;;  %v4960_v4 = vadd.f32 %v4959_v46, %v4958_v36  ;;  %v5030_v26 = vadd.f32 %v5029_v10, %v5028_v7  ;;  %v4961_v40 = vpop.f32.mrb[82].mxu1  ;;  %v5031_v43 = vpop.f32.mrb[126].mxu0  ;;  %v2386_v36 = vld [vmem:[#allocation3 + $0x92] sm:$0xff] }
 0x294   : > { %v4962_v29 = vpop.f32.mrb[83].mxu1  ;;  %v5032_v30 = vpop.f32.mrb[127].mxu0 }
 0x295   : > { %2413 = vst.msk [vmem:[#allocation3 + $0x52] sm:$0xff] %vm1664_vm9, %v2397_v13  ;;  %v2102_v15 = vadd.f32 %v4960_v4, %v7180_v33  ;;  %v4963_v45 = vadd.f32 %v4962_v29, %v4961_v40  ;;  %v5033_v48 = vadd.f32 %v5032_v30, %v5031_v43  ;;  %v2387_v13 = vld [vmem:[#allocation3 + $0x9a] sm:$0xff] }
 0x297   : > { %v2366_v38 = vadd.f32 %v5024_v5, %v2102_v15  ;;  %v2105_v18 = vadd.f32 %v4963_v45, %v7183_v47 }
 0x299   : > { %v2398_v22 = vadd.f32 %v2382_v49, %v2366_v38  ;;  %v2367_v8 = vadd.f32 %v5027_v2, %v2105_v18  ;;  %v4964_v41 = vpop.f32.mrb[84].mxu1  ;;  %v5034_v44 = vpop.f32.mrb[128].mxu0 }
 0x29a   : > { %v4965_v25 = vpop.f32.mrb[85].mxu1  ;;  %v5035_v14 = vpop.f32.mrb[129].mxu0 }
 0x29b   : > { %2414 = vst.msk [vmem:[#allocation3 + $0x62] sm:$0xff] %vm1664_vm9, %v2398_v22  ;;  %v2399_v53 = vadd.f32 %v2383_v37, %v2367_v8  ;;  %v4966_v23 = vadd.f32 %v4965_v25, %v4964_v41  ;;  %v5036_v20 = vadd.f32 %v5035_v14, %v5034_v44  ;;  %v4967_v1 = vpop.f32.mrb[86].mxu1  ;;  %v5037_v33 = vpop.f32.mrb[130].mxu0  ;;  %v2388_v22 = vld [vmem:[#allocation3 + $0xaa] sm:$0xff]  ;;  %v2389_v25 = vld [vmem:[#allocation3 + $0xb2] sm:$0xff] }
 0x29c   : > { %v4968_v6 = vpop.f32.mrb[87].mxu1  ;;  %v5038_v21 = vpop.f32.mrb[131].mxu0 }
 0x29d   : > { %2415 = vst.msk [vmem:[#allocation3 + $0x6a] sm:$0xff] %vm1664_vm9, %v2399_v53  ;;  %v2110_v47 = vadd.f32 %v4966_v23, %v7194_v57  ;;  %v4969_v51 = vadd.f32 %v4968_v6, %v4967_v1  ;;  %v5039_v11 = vadd.f32 %v5038_v21, %v5037_v33 }
 0x29f   : > { %v2368_v60 = vadd.f32 %v5030_v26, %v2110_v47  ;;  %v2113_v0 = vadd.f32 %v4969_v51, %v7197_v52 }
 0x2a1   : > { %v2400_v16 = vadd.f32 %v2384_v32, %v2368_v60  ;;  %v2369_v59 = vadd.f32 %v5033_v48, %v2113_v0  ;;  %v4970_v54 = vpop.f32.mrb[88].mxu1  ;;  %v5040_v5 = vpop.f32.mrb[132].mxu0 }
 0x2a2   : > { %v4971_v17 = vpop.f32.mrb[89].mxu1  ;;  %v5041_v62 = vpop.f32.mrb[133].mxu0 }
 0x2a3   : > { %2416 = vst.msk [vmem:[#allocation3 + $0x7a] sm:$0xff] %vm1664_vm9, %v2400_v16  ;;  %v2401_v24 = vadd.f32 %v2385_v61, %v2369_v59  ;;  %v4972_v39 = vadd.f32 %v4971_v17, %v4970_v54  ;;  %v5042_v50 = vadd.f32 %v5041_v62, %v5040_v5  ;;  %v4973_v2 = vpop.f32.mrb[90].mxu1  ;;  %v5043_v57 = vpop.f32.mrb[134].mxu0 }
 0x2a4   : > { %v4974_v3 = vpop.f32.mrb[91].mxu1  ;;  %v5044_v63 = vpop.f32.mrb[135].mxu0 }
 0x2a5   : > { %2417 = vst.msk [vmem:[#allocation3 + $0x82] sm:$0xff] %vm1664_vm9, %v2401_v24  ;;  %v2118_v52 = vadd.f32 %v4972_v39, %v7205_v34  ;;  %v4975_v27 = vadd.f32 %v4974_v3, %v4973_v2  ;;  %v5045_v28 = vadd.f32 %v5044_v63, %v5043_v57 }
 0x2a7   : > { %v2370_v35 = vadd.f32 %v5036_v20, %v2118_v52  ;;  %v2121_v31 = vadd.f32 %v4975_v27, %v7208_v12 }
 0x2a9   : > { %v2402_v7 = vadd.f32 %v2386_v36, %v2370_v35  ;;  %v2371_v19 = vadd.f32 %v5039_v11, %v2121_v31  ;;  %v4976_v46 = vpop.f32.mrb[92].mxu1  ;;  %v5126_v10 = vpop.f32.mrb[136].mxu0 }
 0x2aa   : > { %v4977_v4 = vpop.f32.mrb[93].mxu1  ;;  %v5127_v26 = vpop.f32.mrb[137].mxu0 }
 0x2ab   : > { %2418 = vst.msk [vmem:[#allocation3 + $0x92] sm:$0xff] %vm1664_vm9, %v2402_v7  ;;  %v2403_v40 = vadd.f32 %v2387_v13, %v2371_v19  ;;  %v4978_v43 = vadd.f32 %v4977_v4, %v4976_v46  ;;  %v5128_v29 = vadd.f32 %v5127_v26, %v5126_v10  ;;  %v4979_v30 = vpop.f32.mrb[94].mxu1  ;;  %v5129_v34 = vpop.f32.mrb[138].mxu0 }
 0x2ac   : > { %v4980_v15 = vpop.f32.mrb[95].mxu1  ;;  %v5130_v45 = vpop.f32.mrb[139].mxu0 }
 0x2ad   : > { %2419 = vst.msk [vmem:[#allocation3 + $0x9a] sm:$0xff] %vm1664_vm9, %v2403_v40  ;;  %v2126_v12 = vadd.f32 %v4978_v43, %v7213_v9  ;;  %v4981_v48 = vadd.f32 %v4980_v15, %v4979_v30  ;;  %v5131_v38 = vadd.f32 %v5130_v45, %v5129_v34 }
 0x2af   : > { %v2372_v18 = vadd.f32 %v5042_v50, %v2126_v12  ;;  %v2129_v49 = vadd.f32 %v4981_v48, %v7216_v42 }
 0x2b1   : > { %v2404_v8 = vadd.f32 %v2388_v22, %v2372_v18  ;;  %v2373_v41 = vadd.f32 %v5045_v28, %v2129_v49  ;;  %v5062_v44 = vpop.f32.mrb[96].mxu1  ;;  %v5132_v37 = vpop.f32.mrb[140].mxu0 }
 0x2b2   : > { %v5063_v14 = vpop.f32.mrb[97].mxu1  ;;  %v5133_v53 = vpop.f32.mrb[141].mxu0 }
 0x2b3   : > { %2420 = vst.msk [vmem:[#allocation3 + $0xaa] sm:$0xff] %vm1664_vm9, %v2404_v8  ;;  %v2405_v23 = vadd.f32 %v2389_v25, %v2373_v41  ;;  %v5064_v20 = vadd.f32 %v5063_v14, %v5062_v44  ;;  %v5134_v1 = vadd.f32 %v5133_v53, %v5132_v37  ;;  %v5065_v33 = vpop.f32.mrb[98].mxu1  ;;  %v5135_v9 = vpop.f32.mrb[142].mxu0 }
 0x2b4   : > { %v5066_v6 = vpop.f32.mrb[99].mxu1  ;;  %v5136_v21 = vpop.f32.mrb[143].mxu0 }
 0x2b5   : > { %2421 = vst.msk [vmem:[#allocation3 + $0xb2] sm:$0xff] %vm1664_vm9, %v2405_v23  ;;  %v7269_v42 = vadd.f32 %v5128_v29, %v5064_v20  ;;  %v5067_v47 = vadd.f32 %v5066_v6, %v5065_v33  ;;  %v5137_v51 = vadd.f32 %v5136_v21, %v5135_v9 }
 0x2b7   : > { %v7271_v11 = vadd.f32 %v5131_v38, %v5067_v47 }
 0x2b9   : > { %v5068_v60 = vpop.f32.mrb[100].mxu1  ;;  %v5138_v0 = vpop.f32.mrb[144].mxu0 }
 0x2ba   : > { %v5069_v32 = vpop.f32.mrb[101].mxu1  ;;  %v5139_v16 = vpop.f32.mrb[145].mxu0 }
 0x2bb   : > { %v5070_v59 = vadd.f32 %v5069_v32, %v5068_v60  ;;  %v5140_v54 = vadd.f32 %v5139_v16, %v5138_v0  ;;  %v5071_v5 = vpop.f32.mrb[102].mxu1  ;;  %v5141_v61 = vpop.f32.mrb[146].mxu0 }
 0x2bc   : > { %v5072_v17 = vpop.f32.mrb[103].mxu1  ;;  %v5142_v62 = vpop.f32.mrb[147].mxu0 }
 0x2bd   : > { %v7273_v24 = vadd.f32 %v5134_v1, %v5070_v59  ;;  %v5073_v39 = vadd.f32 %v5072_v17, %v5071_v5  ;;  %v5143_v50 = vadd.f32 %v5142_v62, %v5141_v61 }
 0x2bf   : > { %v7275_v2 = vadd.f32 %v5137_v51, %v5073_v39 }
 0x2c1   : > { %v5074_v57 = vpop.f32.mrb[104].mxu1  ;;  %v5144_v3 = vpop.f32.mrb[148].mxu0 }
 0x2c2   : > { %v5075_v63 = vpop.f32.mrb[105].mxu1  ;;  %v5145_v52 = vpop.f32.mrb[149].mxu0 }
 0x2c3   : > { %v5076_v27 = vadd.f32 %v5075_v63, %v5074_v57  ;;  %v5146_v28 = vadd.f32 %v5145_v52, %v5144_v3  ;;  %v5077_v35 = vpop.f32.mrb[106].mxu1  ;;  %v5147_v31 = vpop.f32.mrb[150].mxu0 }
 0x2c4   : > { %v5078_v36 = vpop.f32.mrb[107].mxu1  ;;  %v5148_v7 = vpop.f32.mrb[151].mxu0 }
 0x2c5   : > { %v7277_v19 = vadd.f32 %v5140_v54, %v5076_v27  ;;  %v5079_v46 = vadd.f32 %v5078_v36, %v5077_v35  ;;  %v5149_v10 = vadd.f32 %v5148_v7, %v5147_v31 }
 0x2c7   : > { %v7279_v13 = vadd.f32 %v5143_v50, %v5079_v46 }
 0x2c9   : > { %v5080_v4 = vpop.f32.mrb[108].mxu1  ;;  %v5150_v26 = vpop.f32.mrb[152].mxu0 }
 0x2ca   : > { %v5081_v40 = vpop.f32.mrb[109].mxu1  ;;  %v5151_v43 = vpop.f32.mrb[153].mxu0 }
 0x2cb   : > { %v5082_v29 = vadd.f32 %v5081_v40, %v5080_v4  ;;  %v5152_v30 = vadd.f32 %v5151_v43, %v5150_v26  ;;  %v5083_v34 = vpop.f32.mrb[110].mxu1  ;;  %v5153_v15 = vpop.f32.mrb[154].mxu0 }
 0x2cc   : > { %v5084_v45 = vpop.f32.mrb[111].mxu1  ;;  %v5154_v12 = vpop.f32.mrb[155].mxu0 }
 0x2cd   : > { %v7281_v48 = vadd.f32 %v5146_v28, %v5082_v29  ;;  %v5085_v38 = vadd.f32 %v5084_v45, %v5083_v34  ;;  %v5155_v18 = vadd.f32 %v5154_v12, %v5153_v15 }
 0x2cf   : > { %v7283_v49 = vadd.f32 %v5149_v10, %v5085_v38 }
 0x2d1   : > { %v5086_v22 = vpop.f32.mrb[112].mxu1  ;;  %v5156_v8 = vpop.f32.mrb[156].mxu0 }
 0x2d2   : > { %v5087_v41 = vpop.f32.mrb[113].mxu1  ;;  %v5157_v44 = vpop.f32.mrb[157].mxu0 }
 0x2d3   : > { %v5088_v37 = vadd.f32 %v5087_v41, %v5086_v22  ;;  %v5158_v25 = vadd.f32 %v5157_v44, %v5156_v8  ;;  %v5089_v14 = vpop.f32.mrb[114].mxu1  ;;  %v5159_v53 = vpop.f32.mrb[158].mxu0 }
 0x2d4   : > { %v5090_v23 = vpop.f32.mrb[115].mxu1  ;;  %v5160_v20 = vpop.f32.mrb[159].mxu0 }
 0x2d5   : > { %v7285_v1 = vadd.f32 %v5152_v30, %v5088_v37  ;;  %v5091_v33 = vadd.f32 %v5090_v23, %v5089_v14  ;;  %v5161_v9 = vadd.f32 %v5160_v20, %v5159_v53  ;;  %v3116_v37 = vld [vmem:[#allocation3] sm:$0xff]  ;;  %v3117_v53 = vld [vmem:[#allocation3 + $0x8] sm:$0xff] }
 0x2d7   : > { %v7287_v6 = vadd.f32 %v5155_v18, %v5091_v33 }
 0x2d9   : > { %v5092_v21 = vpop.f32.mrb[116].mxu1  ;;  %v5162_v47 = vpop.f32.mrb[160].mxu0 }
 0x2da   : > { %v5093_v51 = vpop.f32.mrb[117].mxu1  ;;  %v5163_v60 = vpop.f32.mrb[161].mxu0 }
 0x2db   : > { %v5094_v0 = vadd.f32 %v5093_v51, %v5092_v21  ;;  %v5164_v32 = vadd.f32 %v5163_v60, %v5162_v47  ;;  %v5095_v16 = vpop.f32.mrb[118].mxu1  ;;  %v5165_v59 = vpop.f32.mrb[162].mxu0 }
 0x2dc   : > { %v5096_v54 = vpop.f32.mrb[119].mxu1  ;;  %v5166_v5 = vpop.f32.mrb[163].mxu0 }
 0x2dd   : > { %v7289_v61 = vadd.f32 %v5158_v25, %v5094_v0  ;;  %v5097_v17 = vadd.f32 %v5096_v54, %v5095_v16  ;;  %v5167_v62 = vadd.f32 %v5166_v5, %v5165_v59  ;;  %v3119_v16 = vld [vmem:[#allocation3 + $0x20] sm:$0xff] }
 0x2df   : > { %v7291_v39 = vadd.f32 %v5161_v9, %v5097_v17 }
 0x2e1   : > { %v5098_v50 = vpop.f32.mrb[120].mxu1  ;;  %v5168_v57 = vpop.f32.mrb[164].mxu0 }
 0x2e2   : > { %v5099_v3 = vpop.f32.mrb[121].mxu1  ;;  %v5169_v63 = vpop.f32.mrb[165].mxu0 }
 0x2e3   : > { %v5100_v52 = vadd.f32 %v5099_v3, %v5098_v50  ;;  %v5170_v27 = vadd.f32 %v5169_v63, %v5168_v57  ;;  %v5101_v28 = vpop.f32.mrb[122].mxu1  ;;  %v5171_v35 = vpop.f32.mrb[166].mxu0 }
 0x2e4   : > { %v5102_v31 = vpop.f32.mrb[123].mxu1  ;;  %v5172_v36 = vpop.f32.mrb[167].mxu0 }
 0x2e5   : > { %v7293_v7 = vadd.f32 %v5164_v32, %v5100_v52  ;;  %v5103_v46 = vadd.f32 %v5102_v31, %v5101_v28  ;;  %v5173_v10 = vadd.f32 %v5172_v36, %v5171_v35  ;;  %v3120_v31 = vld [vmem:[#allocation3 + $0x30] sm:$0xff] }
 0x2e7   : > { %v7295_v4 = vadd.f32 %v5167_v62, %v5103_v46 }
 0x2e9   : > { %v5104_v26 = vpop.f32.mrb[124].mxu1 }
 0x2ea   : > { %v5105_v40 = vpop.f32.mrb[125].mxu1 }
 0x2eb   : > { %v5106_v43 = vadd.f32 %v5105_v40, %v5104_v26  ;;  %v5107_v29 = vpop.f32.mrb[126].mxu1  ;;  %v3121_v40 = vld [vmem:[#allocation3 + $0x38] sm:$0xff] }
 0x2ec   : > { %v5108_v30 = vpop.f32.mrb[127].mxu1 }
 0x2ed   : > { %v7297_v34 = vadd.f32 %v5170_v27, %v5106_v43  ;;  %v5109_v15 = vadd.f32 %v5108_v30, %v5107_v29 }
 0x2ef   : > { %v7299_v45 = vadd.f32 %v5173_v10, %v5109_v15 }
 0x2f1   : > { %v5190_v12 = vpop.f32.mrb[128].mxu1 }
 0x2f2   : > { %v5191_v38 = vpop.f32.mrb[129].mxu1 }
 0x2f3   : > { %v5192_v18 = vadd.f32 %v5191_v38, %v5190_v12  ;;  %v5193_v22 = vpop.f32.mrb[130].mxu1 }
 0x2f4   : > { %v5194_v8 = vpop.f32.mrb[131].mxu1 }
 0x2f5   : > { %v3100_v41 = vadd.f32 %v5192_v18, %v7269_v42  ;;  %v5195_v44 = vadd.f32 %v5194_v8, %v5193_v22  ;;  %v3118_v42 = vld [vmem:[#allocation3 + $0x18] sm:$0xff] }
 0x2f7   : > { %v3132_v25 = vadd.f32 %v3116_v37, %v3100_v41  ;;  %v3101_v14 = vadd.f32 %v5195_v44, %v7271_v11  ;;  %v7310_v11 = vld [vmem:[%s7644_s4] ss:$0 sm:$0xff] }
 0x2f9   : > { %3148 = vst.msk [vmem:[#allocation3] sm:$0xff] %vm1664_vm9, %v3132_v25  ;;  %v3133_v23 = vadd.f32 %v3117_v53, %v3101_v14  ;;  %v5196_v20 = vpop.f32.mrb[132].mxu1  ;;  %v3122_v14 = vld [vmem:[#allocation3 + $0x48] sm:$0xff] }
 0x2fa   : > { %v5197_v33 = vpop.f32.mrb[133].mxu1 }
 0x2fb   : > { %3149 = vst.msk [vmem:[#allocation3 + $0x8] sm:$0xff] %vm1664_vm9, %v3133_v23  ;;  %v5198_v9 = vadd.f32 %v5197_v33, %v5196_v20  ;;  %v5199_v21 = vpop.f32.mrb[134].mxu1 }
 0x2fc   : > { %v5200_v47 = vpop.f32.mrb[135].mxu1 }
 0x2fd   : > { %v3102_v51 = vadd.f32 %v5198_v9, %v7273_v24  ;;  %v5201_v60 = vadd.f32 %v5200_v47, %v5199_v21  ;;  %v7316_v24 = vld [vmem:[%s7645_s5] ss:$0 sm:$0xff]  ;;  %v3123_v9 = vld [vmem:[#allocation3 + $0x50] sm:$0xff] }
 0x2ff   : > { %v3134_v0 = vadd.f32 %v3118_v42, %v3102_v51  ;;  %v3103_v32 = vadd.f32 %v5201_v60, %v7275_v2 }
 0x301   : > { %3150 = vst.msk [vmem:[#allocation3 + $0x18] sm:$0xff] %vm1664_vm9, %v3134_v0  ;;  %v3135_v59 = vadd.f32 %v3119_v16, %v3103_v32  ;;  %v5202_v54 = vpop.f32.mrb[136].mxu1 }
 0x302   : > { %v5203_v5 = vpop.f32.mrb[137].mxu1  ;;  %v3164_v17 = vld [vmem:[#allocation3 + $0x1] sm:$0xff]  ;;  %v3165_v62 = vld [vmem:[#allocation3 + $0x9] sm:$0xff] }
 0x303   : > { %3151 = vst.msk [vmem:[#allocation3 + $0x20] sm:$0xff] %vm1664_vm9, %v3135_v59  ;;  %v5204_v2 = vadd.f32 %v5203_v5, %v5202_v54  ;;  %v5205_v50 = vpop.f32.mrb[138].mxu1  ;;  %v3187_v57 = vmul.f32 %v7310_v11, %v3164_v17  ;;  %v3188_v3 = vmul.f32 %v7310_v11, %v3165_v62 }
 0x304   : > { %v5206_v63 = vpop.f32.mrb[139].mxu1 }
 0x305   : > { %v3104_v52 = vadd.f32 %v5204_v2, %v7277_v19  ;;  %v5207_v27 = vadd.f32 %v5206_v63, %v5205_v50  ;;  %v3210_v28 = vadd.f32 %v7316_v24, %v3187_v57  ;;  %v3211_v35 = vadd.f32 %v7316_v24, %v3188_v3  ;;  %v3124_v2 = vld [vmem:[#allocation3 + $0x60] sm:$0xff] }
 0x307   : > { %v3136_v36 = vadd.f32 %v3120_v31, %v3104_v52  ;;  %v3105_v46 = vadd.f32 %v5207_v27, %v7279_v13  ;;  %v3226_v10 = vmax.f32 %v3210_v28, 0.0  ;;  %v3227_v26 = vmax.f32 %v3211_v35, 0.0  ;;  %v3125_v52 = vld [vmem:[#allocation3 + $0x68] sm:$0xff] }
 0x309   : > { %3152 = vst.msk [vmem:[#allocation3 + $0x30] sm:$0xff] %vm1664_vm9, %v3136_v36  ;;  %v3137_v43 = vadd.f32 %v3121_v40, %v3105_v46  ;;  %v5208_v29 = vpop.f32.mrb[140].mxu1  ;;  %v3242_v30 = vpack.c.bf16 %v3227_v26, %v3226_v10 }
 0x30a   : > { %v5209_v15 = vpop.f32.mrb[141].mxu1  ;;  %v3166_v12 = vld [vmem:[#allocation3 + $0x19] sm:$0xff]  ;;  %v3167_v19 = vld [vmem:[#allocation3 + $0x21] sm:$0xff] }
 0x30b   : > { %3153 = vst.msk [vmem:[#allocation3 + $0x38] sm:$0xff] %vm1664_vm9, %v3137_v43  ;;  %v5210_v38 = vadd.f32 %v5209_v15, %v5208_v29  ;;  %v5211_v18 = vpop.f32.mrb[142].mxu1  ;;  %5310 = vmatprep.mubr.msk.bf16.mxu0 %vm1664_vm9, %v3242_v30  ;;  %v3189_v22 = vmul.f32 %v7310_v11, %v3166_v12  ;;  %v3190_v13 = vmul.f32 %v7310_v11, %v3167_v19  ;;  %v3126_v12 = vld [vmem:[#allocation3 + $0x78] sm:$0xff] }
 0x30c   : > { %v5212_v8 = vpop.f32.mrb[143].mxu1 }
 0x30d   : > { %v3106_v41 = vadd.f32 %v5210_v38, %v7281_v48  ;;  %v5213_v44 = vadd.f32 %v5212_v8, %v5211_v18  ;;  %v3212_v37 = vadd.f32 %v7316_v24, %v3189_v22  ;;  %v3213_v25 = vadd.f32 %v7316_v24, %v3190_v13  ;;  %v3127_v13 = vld [vmem:[#allocation3 + $0x80] sm:$0xff] }
 0x30f   : > { %v3138_v53 = vadd.f32 %v3122_v14, %v3106_v41  ;;  %v3107_v23 = vadd.f32 %v5213_v44, %v7283_v49  ;;  %v3228_v20 = vmax.f32 %v3212_v37, 0.0  ;;  %v3229_v33 = vmax.f32 %v3213_v25, 0.0 }
 0x311   : > { %3154 = vst.msk [vmem:[#allocation3 + $0x48] sm:$0xff] %vm1664_vm9, %v3138_v53  ;;  %v3139_v21 = vadd.f32 %v3123_v9, %v3107_v23  ;;  %v5214_v47 = vpop.f32.mrb[144].mxu1  ;;  %v3243_v51 = vpack.c.bf16 %v3229_v33, %v3228_v20 }
 0x312   : > { %v5215_v60 = vpop.f32.mrb[145].mxu1  ;;  %v3168_v42 = vld [vmem:[#allocation3 + $0x31] sm:$0xff]  ;;  %v3169_v48 = vld [vmem:[#allocation3 + $0x39] sm:$0xff] }
 0x313   : > { %3155 = vst.msk [vmem:[#allocation3 + $0x50] sm:$0xff] %vm1664_vm9, %v3139_v21  ;;  %v5216_v0 = vadd.f32 %v5215_v60, %v5214_v47  ;;  %v5217_v32 = vpop.f32.mrb[146].mxu1  ;;  %5311 = vmatmul.mubr.msk.bf16.vlgmr.msra.gmra.mrb[168].mxu0 %vm1664_vm9, %v3243_v51  ;;  %v3191_v16 = vmul.f32 %v7310_v11, %v3168_v42  ;;  %v3192_v49 = vmul.f32 %v7310_v11, %v3169_v48  ;;  %v3128_v51 = vld [vmem:[#allocation3 + $0x90] sm:$0xff] }
 0x314   : > { %v5218_v59 = vpop.f32.mrb[147].mxu1 }
 0x315   : > { %v3108_v54 = vadd.f32 %v5216_v0, %v7285_v1  ;;  %v5219_v5 = vadd.f32 %v5218_v59, %v5217_v32  ;;  %v3214_v17 = vadd.f32 %v7316_v24, %v3191_v16  ;;  %v3215_v62 = vadd.f32 %v7316_v24, %v3192_v49  ;;  %v3129_v32 = vld [vmem:[#allocation3 + $0x98] sm:$0xff] }
 0x317   : > { %v3140_v50 = vadd.f32 %v3124_v2, %v3108_v54  ;;  %v3109_v57 = vadd.f32 %v5219_v5, %v7287_v6  ;;  %v3230_v3 = vmax.f32 %v3214_v17, 0.0  ;;  %v3231_v63 = vmax.f32 %v3215_v62, 0.0 }
 0x319   : > { %3156 = vst.msk [vmem:[#allocation3 + $0x60] sm:$0xff] %vm1664_vm9, %v3140_v50  ;;  %v3141_v27 = vadd.f32 %v3125_v52, %v3109_v57  ;;  %v5220_v28 = vpop.f32.mrb[148].mxu1  ;;  %v3244_v35 = vpack.c.bf16 %v3231_v63, %v3230_v3 }
 0x31a   : > { %v5221_v31 = vpop.f32.mrb[149].mxu1  ;;  %v3170_v36 = vld [vmem:[#allocation3 + $0x49] sm:$0xff]  ;;  %v3171_v1 = vld [vmem:[#allocation3 + $0x51] sm:$0xff] }
 0x31b   : > { %3157 = vst.msk [vmem:[#allocation3 + $0x68] sm:$0xff] %vm1664_vm9, %v3141_v27  ;;  %v5222_v46 = vadd.f32 %v5221_v31, %v5220_v28  ;;  %v5223_v10 = vpop.f32.mrb[150].mxu1  ;;  %5314 = vmatprep.mubr.msk.bf16.mxu0 %vm1664_vm9, %v3244_v35  ;;  %v3193_v26 = vmul.f32 %v7310_v11, %v3170_v36  ;;  %v3194_v6 = vmul.f32 %v7310_v11, %v3171_v1  ;;  %v3130_v27 = vld [vmem:[#allocation3 + $0xa8] sm:$0xff]  ;;  %v3131_v1 = vld [vmem:[#allocation3 + $0xb0] sm:$0xff] }
 0x31c   : > { %v5224_v40 = vpop.f32.mrb[151].mxu1 }
 0x31d   : > { %v3110_v43 = vadd.f32 %v5222_v46, %v7289_v61  ;;  %v5225_v29 = vadd.f32 %v5224_v40, %v5223_v10  ;;  %v3216_v30 = vadd.f32 %v7316_v24, %v3193_v26  ;;  %v3217_v15 = vadd.f32 %v7316_v24, %v3194_v6 }
 0x31f   : > { %v3142_v19 = vadd.f32 %v3126_v12, %v3110_v43  ;;  %v3111_v38 = vadd.f32 %v5225_v29, %v7291_v39  ;;  %v3232_v18 = vmax.f32 %v3216_v30, 0.0  ;;  %v3233_v22 = vmax.f32 %v3217_v15, 0.0 }
 0x321   : > { %3158 = vst.msk [vmem:[#allocation3 + $0x78] sm:$0xff] %vm1664_vm9, %v3142_v19  ;;  %v3143_v8 = vadd.f32 %v3127_v13, %v3111_v38  ;;  %v5226_v41 = vpop.f32.mrb[152].mxu1  ;;  %v3245_v44 = vpack.c.bf16 %v3233_v22, %v3232_v18 }
 0x322   : > { %v5227_v37 = vpop.f32.mrb[153].mxu1  ;;  %v3172_v25 = vld [vmem:[#allocation3 + $0x61] sm:$0xff]  ;;  %v3173_v61 = vld [vmem:[#allocation3 + $0x69] sm:$0xff] }
 0x323   : > { %3159 = vst.msk [vmem:[#allocation3 + $0x80] sm:$0xff] %vm1664_vm9, %v3143_v8  ;;  %v5228_v14 = vadd.f32 %v5227_v37, %v5226_v41  ;;  %v5229_v53 = vpop.f32.mrb[154].mxu1  ;;  %5315 = vmatmul.mubr.msk.bf16.gmra.mrb[172].mxu0 %vm1664_vm9, %v3245_v44  ;;  %v3195_v23 = vmul.f32 %v7310_v11, %v3172_v25  ;;  %v3196_v39 = vmul.f32 %v7310_v11, %v3173_v61  ;;  %v4643_v37 = vld [vmem:[%s7647_s7] ss:$0 sm:$0xff] }
 0x324   : > { %v5230_v20 = vpop.f32.mrb[155].mxu1 }
 0x325   : > { %v3112_v33 = vadd.f32 %v5228_v14, %v7293_v7  ;;  %v5231_v9 = vadd.f32 %v5230_v20, %v5229_v53  ;;  %v3218_v21 = vadd.f32 %v7316_v24, %v3195_v23  ;;  %v3219_v47 = vadd.f32 %v7316_v24, %v3196_v39 }
 0x327   : > { %v3144_v60 = vadd.f32 %v3128_v51, %v3112_v33  ;;  %v3113_v42 = vadd.f32 %v5231_v9, %v7295_v4  ;;  %v3234_v48 = vmax.f32 %v3218_v21, 0.0  ;;  %v3235_v0 = vmax.f32 %v3219_v47, 0.0 }
 0x329   : > { %3160 = vst.msk [vmem:[#allocation3 + $0x90] sm:$0xff] %vm1664_vm9, %v3144_v60  ;;  %v3145_v16 = vadd.f32 %v3129_v32, %v3113_v42  ;;  %v5232_v49 = vpop.f32.mrb[156].mxu1  ;;  %v3246_v59 = vpack.c.bf16 %v3235_v0, %v3234_v48 }
 0x32a   : > { %v5233_v54 = vpop.f32.mrb[157].mxu1  ;;  %v3174_v5 = vld [vmem:[#allocation3 + $0x79] sm:$0xff]  ;;  %v3175_v7 = vld [vmem:[#allocation3 + $0x81] sm:$0xff] }
 0x32b   : > { %3161 = vst.msk [vmem:[#allocation3 + $0x98] sm:$0xff] %vm1664_vm9, %v3145_v16  ;;  %v5234_v17 = vadd.f32 %v5233_v54, %v5232_v49  ;;  %v5235_v62 = vpop.f32.mrb[158].mxu1  ;;  %5318 = vmatprep.mubr.msk.bf16.mxu0 %vm1664_vm9, %v3246_v59  ;;  %v3197_v2 = vmul.f32 %v7310_v11, %v3174_v5  ;;  %v3198_v4 = vmul.f32 %v7310_v11, %v3175_v7 }
 0x32c   : > { %v5236_v50 = vpop.f32.mrb[159].mxu1 }
 0x32d   : > { %v3114_v57 = vadd.f32 %v5234_v17, %v7297_v34  ;;  %v5237_v3 = vadd.f32 %v5236_v50, %v5235_v62  ;;  %v3220_v63 = vadd.f32 %v7316_v24, %v3197_v2  ;;  %v3221_v52 = vadd.f32 %v7316_v24, %v3198_v4 }
 0x32f   : > { %v3146_v28 = vadd.f32 %v3130_v27, %v3114_v57  ;;  %v3115_v35 = vadd.f32 %v5237_v3, %v7299_v45  ;;  %v3236_v31 = vmax.f32 %v3220_v63, 0.0  ;;  %v3237_v36 = vmax.f32 %v3221_v52, 0.0  ;;  %v3449_v63 = vld [vmem:[%s7648_s8 + $0x80] sm:$0xff] (!%p4656_p1)  ;;  %v3450_v52 = vld [vmem:[%s7648_s8 + $0x88] sm:$0xff] (!%p4656_p1) }
 0x330   : > { %v3433_v27 = vld [vmem:[%s7648_s8] sm:$0xff] (!%p4656_p1) }
 0x331   : > { %3162 = vst.msk [vmem:[#allocation3 + $0xa8] sm:$0xff] %vm1664_vm9, %v3146_v28  ;;  %v3147_v46 = vadd.f32 %v3131_v1, %v3115_v35  ;;  %v3247_v10 = vpack.c.bf16 %v3237_v36, %v3236_v31  ;;  %v5361_v28 = vpack.c.bf16 (!%p4656_p1), %v3450_v52, %v3449_v63  ;;  %v3434_v35 = vld [vmem:[%s7648_s8 + $0x8] sm:$0xff] (!%p4656_p1)  ;;  %v3451_v31 = vld [vmem:[%s7648_s8 + $0x90] sm:$0xff] (!%p4656_p1)  ;;  %v3452_v36 = vld [vmem:[%s7648_s8 + $0x98] sm:$0xff] (!%p4656_p1)  ;;  %v5762_v1 = vmov (!%p4656_p1), 0.0|0.0  }
 0x332   : > { %v3176_v26 = vld [vmem:[#allocation3 + $0x91] sm:$0xff]  ;;  %v3177_v6 = vld [vmem:[#allocation3 + $0x99] sm:$0xff]  ;;  %5393 = vmatprep.subr.bf16.mxu1 (!%p4656_p1), %v5762_v1 }
 0x333   : > { %3163 = vst.msk [vmem:[#allocation3 + $0xb0] sm:$0xff] %vm1664_vm9, %v3147_v46  ;;  %5319 = vmatmul.mubr.msk.bf16.gmra.mrb[176].mxu0 %vm1664_vm9, %v3247_v10  ;;  %v3199_v34 = vmul.f32 %v7310_v11, %v3176_v26  ;;  %v3200_v40 = vmul.f32 %v7310_v11, %v3177_v6  ;;  %v5363_v46 = vpack.c.bf16 (!%p4656_p1), %v3434_v35, %v3433_v27  ;;  %v3435_v26 = vld [vmem:[%s7648_s8 + $0x10] sm:$0xff] (!%p4656_p1)  ;;  %v3436_v6 = vld [vmem:[%s7648_s8 + $0x18] sm:$0xff] (!%p4656_p1) }
 0x334   : > { %v5365_v10 = vpack.c.bf16 (!%p4656_p1), %v3452_v36, %v3451_v31  ;;  %5362 = vmatprep.subr.bf16.mxu0 (!%p4656_p1), %v5361_v28  ;;  %v3447_v52 = vld [vmem:[%s7648_s8 + $0x70] sm:$0xff] (!%p4656_p1)  ;;  %v3448_v27 = vld [vmem:[%s7648_s8 + $0x78] sm:$0xff] (!%p4656_p1) }
 0x335   : > { %v3222_v43 = vadd.f32 %v7316_v24, %v3199_v34  ;;  %v3223_v45 = vadd.f32 %v7316_v24, %v3200_v40  ;;  %v3453_v34 = vld [vmem:[%s7648_s8 + $0xa0] sm:$0xff] (!%p4656_p1)  ;;  %v3454_v40 = vld [vmem:[%s7648_s8 + $0xa8] sm:$0xff] (!%p4656_p1)  ;;  %5364 = vmatpush3.bf16.msra.mxu0 (!%p4656_p1), %v5363_v46  ;;  %v3558_v35 = vld [vmem:[%s7650_s10 + $0x50] sm:$0xff] (!%p4656_p1)  ;;  %v5391_v36 = vpack.c.bf16 (!%p4656_p1), %v3448_v27, %v3447_v52 }
 0x336   : > { %5366 = vmatprep.subr.bf16.mxu0 (!%p4656_p1), %v5365_v10  ;;  %v3559_v31 = vld [vmem:[%s7650_s10 + $0x58] sm:$0xff] (!%p4656_p1) }
 0x337   : > { %v3238_v29 = vmax.f32 %v3222_v43, 0.0  ;;  %v3239_v30 = vmax.f32 %v3223_v45, 0.0  ;;  %v5367_v43 = vpack.c.bf16 (!%p4656_p1), %v3436_v6, %v3435_v26  ;;  %v5369_v45 = vpack.c.bf16 (!%p4656_p1), %v3454_v40, %v3453_v34  ;;  %v3560_v26 = vld [vmem:[%s7650_s10 + $0x60] sm:$0xff] (!%p4656_p1)  ;;  %v3561_v6 = vld [vmem:[%s7650_s10 + $0x68] sm:$0xff] (!%p4656_p1) }
 0x338   : > { %v5409_v46 = vpack.c.bf16 (!%p4656_p1), %v3559_v31, %v3558_v35  ;;  %v5412_v34 = vpack.c.bf16 (!%p4656_p1), %v3561_v6, %v3560_v26 }
 0x339   : > { %v3248_v15 = vpack.c.bf16 %v3239_v30, %v3238_v29  ;;  %v3437_v29 = vld [vmem:[%s7648_s8 + $0x20] sm:$0xff] (!%p4656_p1)  ;;  %v3438_v30 = vld [vmem:[%s7648_s8 + $0x28] sm:$0xff] (!%p4656_p1)  ;;  %5368 = vmatpush3.bf16.msra.mxu0 (!%p4656_p1), %v5367_v43  ;;  %v5764_v43 = vmov (!%p4656_p1), 0.0  }
 0x33a   : > { %v3178_v12 = vld [vmem:[#allocation3 + $0xa9] sm:$0xff]  ;;  %v3179_v19 = vld [vmem:[#allocation3 + $0xb1] sm:$0xff]  ;;  %5370 = vmatprep.subr.bf16.mxu0 (!%p4656_p1), %v5369_v45 }
 0x33b   : > { %5322 = vmatprep.mubr.msk.bf16.mxu1 %vm1664_vm9, %v3248_v15  ;;  %v3201_v38 = vmul.f32 %v7310_v11, %v3178_v12  ;;  %v3202_v18 = vmul.f32 %v7310_v11, %v3179_v19  ;;  %v3455_v15 = vld [vmem:[%s7648_s8 + $0xb0] sm:$0xff] (!%p4656_p1)  ;;  %v3456_v12 = vld [vmem:[%s7648_s8 + $0xb8] sm:$0xff] (!%p4656_p1)  ;;  %v5371_v19 = vpack.c.bf16 (!%p4656_p1), %v3438_v30, %v3437_v29  ;;  %v3465_v29 = vld [vmem:[%s7649_s9] sm:$0x1] (!%p4656_p1) }
 0x33d   : > { %v3224_v22 = vadd.f32 %v7316_v24, %v3201_v38  ;;  %v3225_v13 = vadd.f32 %v7316_v24, %v3202_v18  ;;  %v5373_v38 = vpack.c.bf16 (!%p4656_p1), %v3456_v12, %v3455_v15  ;;  %v3439_v18 = vld [vmem:[%s7648_s8 + $0x30] sm:$0xff] (!%p4656_p1)  ;;  %5372 = vmatpush3.bf16.msra.mxu0 (!%p4656_p1), %v5371_v19  ;;  %v3564_v19 = vld [vmem:[%s7716_s17] sm:$0x1] (!%p4656_p1) }
 0x33f   : > { %v3240_v8 = vmax.f32 %v3224_v22, 0.0  ;;  %v3241_v41 = vmax.f32 %v3225_v13, 0.0  ;;  %v3440_v22 = vld [vmem:[%s7648_s8 + $0x38] sm:$0xff] (!%p4656_p1)  ;;  %v3457_v13 = vld [vmem:[%s7648_s8 + $0xc0] sm:$0xff] (!%p4656_p1)  ;;  %5374 = vmatprep.subr.bf16.mxu0 (!%p4656_p1), %v5373_v38 }
 0x341   : > { %v3249_v44 = vpack.c.bf16 %v3241_v41, %v3240_v8  ;;  %v3458_v8 = vld [vmem:[%s7648_s8 + $0xc8] sm:$0xff] (!%p4656_p1)  ;;  %v3431_v41 = vld [vmem:[#allocation2] sm:$0x3] (!%p4656_p1) }
 0x343   : > { %5323 = vmatmul.mubr.msk.bf16.vlgmr.msra.gmra.mrb[160].mxu1 %vm1664_vm9, %v3249_v44  ;;  %v7474_v44 = vmul.f32 (!%p4656_p1), 0.00390625, %v3431_v41 }
 0x344   : > { %5358 = vmatprep.mubr.msk.f32.mxu1 (!%p4656_p1), %vm5763_vm2, %v5764_v43 }
 0x345   : > { %v3470_v10 = vrot.slane (!%p4656_p1), %v7474_v44, %v541_v56  ;;  %v3563_v56 = vld [vmem:[%s7650_s10 + $0x78] sm:$0xff] (!%p4656_p1) }
 0x346   : > { %v5415_v40 = vpack.c.bf16 (!%p4656_p1), %v3563_v56, %v3562_v55 }
 0x3e6   : > { %v5312_v25 = vpop.f32.mrb[168].mxu0 }
 0x3e7   : > { %v3356_v61 = vadd.f32 %v5312_v25, %v4643_v37  ;;  %v3347_v11 = vpop.f32.mrb[169].mxu0  ;;  %v3549_v25 = vld [vmem:[%s7650_s10 + $0x8] sm:$0xff] (!%p4656_p1) }
 0x3e8   : > { %v3348_v14 = vadd.f32 %v4643_v37, %v3347_v11  ;;  %v5313_v53 = vpop.f32.mrb[170].mxu0  ;;  %v5375_v11 = vpack.c.bf16 (!%p4656_p1), %v3440_v22, %v3439_v18 }
 0x3e9   : > { %3413 = vst.msk [vmem:[%s5921_s13 + $0x10] sm:$0xff] %vm3410_vm14, %v3356_v61  ;;  %v3359_v24 = vadd.f32 %v5313_v53, %v4643_v37  ;;  %v3350_v23 = vpop.f32.mrb[171].mxu0  ;;  %v3550_v61 = vld [vmem:[%s7650_s10 + $0x10] sm:$0xff] (!%p4656_p1)  ;;  %v3551_v53 = vld [vmem:[%s7650_s10 + $0x18] sm:$0xff] (!%p4656_p1) }
 0x3ea   : > { %3411 = vst.msk [vmem:[%s5921_s13] sm:$0xff] %vm3410_vm14, %v3348_v14  ;;  %v3351_v39 = vadd.f32 %v4643_v37, %v3350_v23  ;;  %v3441_v23 = vld [vmem:[%s7648_s8 + $0x40] sm:$0xff] (!%p4656_p1)  ;;  %5376 = vmatpush3.bf16.msra.mxu0 (!%p4656_p1), %v5375_v11 }
 0x3eb   : > { %3414 = vst.msk [vmem:[%s5921_s13 + $0x18] sm:$0xff] %vm3410_vm14, %v3359_v24  ;;  %v5377_v24 = vpack.c.bf16 (!%p4656_p1), %v3458_v8, %v3457_v13 }
 0x3ec   : > { %3412 = vst.msk [vmem:[%s5921_s13 + $0x8] sm:$0xff] %vm3410_vm14, %v3351_v39  ;;  %v3442_v39 = vld [vmem:[%s7648_s8 + $0x48] sm:$0xff] (!%p4656_p1) }
 0x3ed   : > { %5378 = vmatprep.subr.bf16.mxu0 (!%p4656_p1), %v5377_v24 }
 0x3f6   : > { %v5316_v20 = vpop.f32.mrb[172].mxu0 }
 0x3f7   : > { %v3372_v33 = vadd.f32 %v5316_v20, %v4643_v37  ;;  %v3363_v9 = vpop.f32.mrb[173].mxu0  ;;  %v3474_v20 = vrot.slane (!%p4656_p1), %v7474_v44, %v545_v58  ;;  %v3553_v58 = vld [vmem:[%s7650_s10 + $0x28] sm:$0xff] (!%p4656_p1) }
 0x3f8   : > { %v3364_v21 = vadd.f32 %v4643_v37, %v3363_v9  ;;  %v5317_v47 = vpop.f32.mrb[174].mxu0  ;;  %v3460_v9 = vld [vmem:[%s7648_s8 + $0xd8] sm:$0xff] (!%p4656_p1) }
 0x3f9   : > { %3417 = vst.msk [vmem:[%s5921_s13 + $0x30] sm:$0xff] %vm3410_vm14, %v3372_v33  ;;  %v3375_v51 = vadd.f32 %v5317_v47, %v4643_v37  ;;  %v3366_v60 = vpop.f32.mrb[175].mxu0  ;;  %v3459_v33 = vld [vmem:[%s7648_s8 + $0xd0] sm:$0xff] (!%p4656_p1)  ;;  %3541 = vmatprep.mubr.f32.mxu0 (!%p4656_p1), %v3474_v20  ;;  %v3552_v47 = vld [vmem:[%s7650_s10 + $0x20] sm:$0xff] (!%p4656_p1) }
 0x3fa   : > { %3415 = vst.msk [vmem:[%s5921_s13 + $0x20] sm:$0xff] %vm3410_vm14, %v3364_v21  ;;  %v3367_v42 = vadd.f32 %v4643_v37, %v3366_v60  ;;  %v5397_v21 = vpack.c.bf16 (!%p4656_p1), %v3551_v53, %v3550_v61  ;;  %v5381_v60 = vpack.c.bf16 (!%p4656_p1), %v3460_v9, %v3459_v33 }
 0x3fb   : > { %3418 = vst.msk [vmem:[%s5921_s13 + $0x38] sm:$0xff] %vm3410_vm14, %v3375_v51  ;;  %v5379_v51 = vpack.c.bf16 (!%p4656_p1), %v3442_v39, %v3441_v23 }
 0x3fc   : > { %3416 = vst.msk [vmem:[%s5921_s13 + $0x28] sm:$0xff] %vm3410_vm14, %v3367_v42  ;;  %v3443_v42 = vld [vmem:[%s7648_s8 + $0x50] sm:$0xff] (!%p4656_p1) }
 0x3fd   : > { %5380 = vmatpush3.bf16.msra.mxu0 (!%p4656_p1), %v5379_v51 }
 0x3fe   : > { %5382 = vmatprep.subr.bf16.mxu0 (!%p4656_p1), %v5381_v60 }
 0x406   : > { %v5320_v48 = vpop.f32.mrb[176].mxu0 }
 0x407   : > { %v3388_v0 = vadd.f32 %v5320_v48, %v4643_v37  ;;  %v3379_v32 = vpop.f32.mrb[177].mxu0  ;;  %v3444_v48 = vld [vmem:[%s7648_s8 + $0x58] sm:$0xff] (!%p4656_p1) }
 0x408   : > { %v3380_v16 = vadd.f32 %v4643_v37, %v3379_v32  ;;  %v5321_v49 = vpop.f32.mrb[178].mxu0  ;;  %v3462_v32 = vld [vmem:[%s7648_s8 + $0xe8] sm:$0xff] (!%p4656_p1) }
 0x409   : > { %3421 = vst.msk [vmem:[%s5921_s13 + $0x50] sm:$0xff] %vm3410_vm14, %v3388_v0  ;;  %v3391_v59 = vadd.f32 %v5321_v49, %v4643_v37  ;;  %v3382_v54 = vpop.f32.mrb[179].mxu0  ;;  %v3461_v0 = vld [vmem:[%s7648_s8 + $0xe0] sm:$0xff] (!%p4656_p1)  ;;  %v3554_v49 = vld [vmem:[%s7650_s10 + $0x30] sm:$0xff] (!%p4656_p1) }
 0x40a   : > { %3419 = vst.msk [vmem:[%s5921_s13 + $0x40] sm:$0xff] %vm3410_vm14, %v3380_v16  ;;  %v3383_v5 = vadd.f32 %v4643_v37, %v3382_v54  ;;  %v5400_v16 = vpack.c.bf16 (!%p4656_p1), %v3553_v58, %v3552_v47  ;;  %v5383_v54 = vpack.c.bf16 (!%p4656_p1), %v3444_v48, %v3443_v42 }
 0x40b   : > { %3422 = vst.msk [vmem:[%s5921_s13 + $0x58] sm:$0xff] %vm3410_vm14, %v3391_v59  ;;  %v3555_v59 = vld [vmem:[%s7650_s10 + $0x38] sm:$0xff] (!%p4656_p1) }
 0x40c   : > { %3420 = vst.msk [vmem:[%s5921_s13 + $0x48] sm:$0xff] %vm3410_vm14, %v3383_v5  ;;  %v5385_v5 = vpack.c.bf16 (!%p4656_p1), %v3462_v32, %v3461_v0  ;;  %5384 = vmatpush3.bf16.msra.mxu0 (!%p4656_p1), %v5383_v54 }
 0x40e   : > { %5386 = vmatprep.subr.bf16.mxu0 (!%p4656_p1), %v5385_v5 }
 0x416   : > { %v5324_v7 = vpop.f32.mrb[160].mxu1  ;;  %3430 = sbr.rel (%p4656_p1) target bundleno = 1495 (0x5d7), region = 76 }
 0x417   : > { %v3404_v17 = vadd.f32 %v5324_v7, %v4643_v37  ;;  %v3395_v62 = vpop.f32.mrb[161].mxu1  ;;  %v3445_v7 = vld [vmem:[%s7648_s8 + $0x60] sm:$0xff] (!%p4656_p1) }
 0x418   : > { %v3396_v2 = vadd.f32 %v4643_v37, %v3395_v62  ;;  %v5325_v4 = vpop.f32.mrb[162].mxu1  ;;  %v3463_v62 = vld [vmem:[%s7648_s8 + $0xf0] sm:$0xff] (!%p4656_p1) }
 0x419   : > { %3425 = vst.msk [vmem:[%s5921_s13 + $0x70] sm:$0xff] %vm3410_vm14, %v3404_v17  ;;  %v3407_v50 = vadd.f32 %v5325_v4, %v4643_v37  ;;  %v3398_v57 = vpop.f32.mrb[163].mxu1  ;;  %v3446_v17 = vld [vmem:[%s7648_s8 + $0x68] sm:$0xff] (!%p4656_p1)  ;;  %v5403_v4 = vpack.c.bf16 (!%p4656_p1), %v3555_v59, %v3554_v49 }
 0x41a   : > { %3423 = vst.msk [vmem:[%s5921_s13 + $0x60] sm:$0xff] %vm3410_vm14, %v3396_v2  ;;  %v3399_v3 = vadd.f32 %v4643_v37, %v3398_v57  ;;  %v3548_v37 = vld [vmem:[%s7650_s10] sm:$0xff] (!%p4656_p1)  ;;  %v3464_v2 = vld [vmem:[%s7648_s8 + $0xf8] sm:$0xff] (!%p4656_p1)  ;;  %v3557_v57 = vld [vmem:[%s7650_s10 + $0x48] sm:$0xff] (!%p4656_p1) }
 0x41b   : > { %3426 = vst.msk [vmem:[%s5921_s13 + $0x78] sm:$0xff] %vm3410_vm14, %v3407_v50  ;;  %v5394_v14 = vpack.c.bf16 (!%p4656_p1), %v3549_v25, %v3548_v37  ;;  %v3556_v50 = vld [vmem:[%s7650_s10 + $0x40] sm:$0xff] (!%p4656_p1)  ;;  %v5389_v63 = vpack.c.bf16 (!%p4656_p1), %v3464_v2, %v3463_v62 }
 0x41c   : > { %3424 = vst.msk [vmem:[%s5921_s13 + $0x68] sm:$0xff] %vm3410_vm14, %v3399_v3  ;;  %v5387_v3 = vpack.c.bf16 (!%p4656_p1), %v3446_v17, %v3445_v7  ;;  %v5406_v28 = vpack.c.bf16 (!%p4656_p1), %v3557_v57, %v3556_v50 }
 0x41d   : > { %5395 = vmatpush3.bf16.msra.mxu1 %v5394_v14 }
 0x41e   : > { %5396 = vmatprep.subr.bf16.mxu1 %v5762_v1  ;;  %5388 = vmatpush3.bf16.msra.mxu0 %v5387_v3 }
 0x41f   : > { %5390 = vmatprep.subr.bf16.mxu0 %v5389_v63 }
 0x421   : > { %5398 = vmatpush3.bf16.msra.mxu1 %v5397_v21 }
 0x422   : > { %5399 = vmatprep.subr.bf16.mxu1 %v5762_v1  ;;  %5392 = vmatpush3.bf16.msra.mxu0 %v5391_v36 }
 0x425   : > { %5401 = vmatpush3.bf16.msra.mxu1 %v5400_v16  ;;  %3542 = vmatmul.mubr.f32.vlgmr.msra.gmra.mrb[0].mxu0 %v3470_v10 }
 0x426   : > { %5402 = vmatprep.subr.bf16.mxu1 %v5762_v1 }
 0x429   : > { %5404 = vmatpush3.bf16.msra.mxu1 %v5403_v4 }
 0x42a   : > { %5405 = vmatprep.subr.bf16.mxu1 %v5762_v1 }
 0x42d   : > { %5407 = vmatpush3.bf16.msra.mxu1 %v5406_v28 }
 0x42e   : > { %5408 = vmatprep.subr.bf16.mxu1 %v5762_v1 }
 0x431   : > { %5410 = vmatpush3.bf16.msra.mxu1 %v5409_v46 }
 0x432   : > { %5411 = vmatprep.subr.bf16.mxu1 %v5762_v1 }
 0x435   : > { %5413 = vmatpush3.bf16.msra.mxu1 %v5412_v34 }
 0x436   : > { %5414 = vmatprep.subr.bf16.mxu1 %v5762_v1 }
 0x439   : > { %5416 = vmatpush3.bf16.msra.mxu1 %v5415_v40 }
 0x4f8   : > { %v5282_v45 = vpop.f32.mrb[0].mxu0 }
 0x4f9   : > { %v5283_v1 = vpop.f32.mrb[1].mxu0 }
 0x4fa   : > { %v5284_v30 = vadd.f32 %v5283_v1, %v5282_v45 }
 0x4fc   : > { %v3544_v15 = vadd.f32 %v5284_v30, %v3465_v29 }
 0x4fe   : > { %v3547_v12 = vmax.f32 %v3544_v15, 0.0 }
 0x500   : > { %5359 = vmatmul.mubr.f32.vlgmr.msra.gmra.mrb[0].mxu1 %v3547_v12 }
 0x5d3   : > { %v3631_v38 = vpop.f32.mrb[0].mxu1 }
 0x5d4   : > { %v3632_v18 = vadd.f32 %v3631_v38, %v3564_v19  ;;  %v5360_v22 = vpop.f32.mrb[1].mxu1 }
 0x5d6   : > { %3635 = vst [vmem:[%s5925_s11] sm:$0x1] %v3632_v18 }
 0x5d7 PF: > { %s4657_s27 = sshll.u32 %s5744_s29, 4  ;;  %s7718_s28 = sld [smem:[#allocation18_spill]] }
 0x5d8   : > { %s3663_s15 = sshll.u32 %s5925_s11, 4  ;;  %s7720_s19 = sand.u32 1, %s5732_s26   ;;  %s3664_s15 = int_to_ptr.vmem [resolvable:$true] %s3663_s15 }
 0x5d9   : > { %s3647_s20 = scalar_lea.sflag [#allocation5], %s7720_s19  ;;  %s5662_s21 = scalar_lea.vmem %s3664_s15, 16 }
 0x5da   : > { %p5663_p2 = scmp.ne.s32.totalorder %s3664_s15, %s5662_s21  ;;  %s5765_s24 = smov [#allocation4]  }
 0x5db   : > { %s5666_s16 = sshll.u32 %s5765_s24, 4  ;;  %s5667_s16 = int_to_ptr.vmem [resolvable:$false] %s5666_s16 }
 0x5dc   : > { %p5664_p4 = pnand %p5663_p2, %p5885_p3  ;;  %s5668_s22 = scalar_lea.vmem %s5667_s16, 32 }
 0x5dd   : > { %s7719_s18 = smov %s7718_s28  ;;  %s7590_s14 = scalar_lea.hbm %s7718_s28, %s4657_s27 }
 0x5de   : > { %p5665_p5 = pneg %p5664_p4  ;;  %p5669_p6 = scmp.lt.s32.totalorder %s3664_s15, %s5667_s16 }
 0x5df   : > { %p5670_p7 = scmp.lt.s32.totalorder %s5668_s22, %s5662_s21 }
 0x5e1   : > { %p5671_p8 = por %p5670_p7, %p5669_p6 }
 0x5e3   : > { %p5672_p10 = pnand %p5671_p8, %p5665_p5 }
 0x5e5   : > { %5675 = shalt.err (!%p5672_p10)
}
 0x5e6   : > { %s5676_s11 = scalar_lea.hbm %s7590_s14, 16  ;;  %s5680_s17 = scalar_lea.hbm %s7719_s18, 32 }
 0x5e7   : > { %p5677_p11 = scmp.ne.s32.totalorder %s7590_s14, %s5676_s11  ;;  %p5681_p0 = scmp.lt.u32.totalorder %s7590_s14, %s7719_s18 }
 0x5e8   : > { %p5682_p1 = scmp.lt.u32.totalorder %s5680_s17, %s5676_s11  ;;  %p5684_p4 = scmp.lt.u32.totalorder %s5676_s11, %s7590_s14 }
 0x5e9   : > { %p5678_p12 = pnand %p5677_p11, %p5885_p3 }
 0x5ea   : > { %p5683_p2 = por %p5682_p1, %p5681_p0 }
 0x5eb   : > { %p5679_p13 = pneg %p5678_p12 }
 0x5ec   : > { %p5685_p5 = por %p5684_p4, %p5683_p2 }
 0x5ee   : > { %p5686_p6 = pnand %p5685_p5, %p5679_p13 }
 0x5f0   : > { %5689 = shalt.err (!%p5686_p6)
}
 0x5f1   : > { %5426 = dma.vmem_to_hbm [thread:$0]  (%p5885_p3), %s3664_s15, 16, %s7590_s14, %s3647_s20  }
 0x5f2 PF: > { %s7721_s13 = sld [smem:[#allocation11_spill]]  ;;  %s7722_s28 = sld [smem:[#allocation7_spill]] }
 0x5f8   : > { %p5432_p7 = scmp.ge.s32.totalorder %s7721_s13, 2  ;;  %s3688_s21 = sand.u32 1, %s7722_s28  }
 0x5f9   : > { %s3689_s24 = scalar_lea.sflag [#allocation5], %s3688_s21 }
 0x5fa   : > { %p5429_p8 = pnand %p5432_p7, %p5895_p9 }
 0x5fc   : > { %5723 = dma.done.wait (!%p5429_p8), %s3689_s24, 16  }
 0x5fd   : > { %5725 = vsyncadd (!%p5429_p8), %s3689_s24, 4294967280  ;;  %s27_s15 = sadd.s32 1, %s7721_s13   ;;  %s7724_s16 = sld [smem:[#allocation8_spill]] }
 0x5fe   : > { %p24_p10 = scmp.ge.s32.totalorder %s27_s15, 6   ;;  %s7725_s27 = sld [smem:[#allocation16_spill]] }
 0x5ff   : > { %s7726_s28 = sld [smem:[#allocation9_spill]]  ;;  %s7727_s29 = sld [smem:[#allocation10_spill]] }
 0x600   : > { %s7728_s30 = sld [smem:[#allocation12_spill]]  ;;  %s7729_s14 = sld [smem:[#allocation14_spill]] }
 0x601   : > { %s7730_s25 = smov %s5732_s26  ;;  %26 = sbr.rel (!%p24_p10) target bundleno = 8 (0x8), region = 132 }
 0x603   : > { %s7731_s26 = smov %s7724_s16 }
 0x608   :  { %3693 = vsyncpa [#allocation5], 1 }
 0x609   :  { %3695 = vsyncpa [#allocation5 + $0x1], 1 }

</bundles_post_ra>
